<compile_context>
chip_gen: v6e
topology: v6e:2x2x1
jax: 0.10.0
libtpu: 0.0.40
codegen_flags: <defaults>
</compile_context>

<pallas_src>
import functools

import jax
import jax.numpy as jnp
from jax.experimental import pallas as pl
from jax.experimental.pallas import tpu as pltpu


def _round_up(x, m):
    return ((x + m - 1) // m) * m


def _pick_c_block(C, H, W, itemsize, budget_bytes):
    """Largest divisor of C whose double-buffered input block fits the budget."""
    for d in range(C, 0, -1):
        if C % d == 0 and 2 * d * H * W * itemsize <= budget_bytes:
            return d
    return 1


def _spatial_attention_kernel(x_ref, w1_ref, b1_ref, wsa_ref, bsa_ref, o_ref,
                              sum_ref, max_ref, *, C, H, W, WP, WOUT):
    c_idx = pl.program_id(1)

    # ---- per-chunk channel reduction (accumulate in f32) -------------------
    xb = x_ref[0].astype(jnp.float32)            # (C_BLK, H, W)
    part_sum = jnp.sum(xb, axis=0)               # (H, W)
    part_max = jnp.max(xb, axis=0)               # (H, W)
    # NOTE: if the reduction ever shows up as VPU-bound (v5e), the sum could be
    # moved to the MXU via ones(1, C_BLK) @ xb.reshape(C_BLK, H*W).

    @pl.when(c_idx == 0)
    def _init():
        sum_ref[...] = part_sum
        max_ref[...] = part_max

    @pl.when(c_idx > 0)
    def _accum():
        sum_ref[...] = sum_ref[...] + part_sum
        max_ref[...] = jnp.maximum(max_ref[...], part_max)

    # ---- finalize: 1x1 conv + ReLU, reflect pad, 7x7 conv ------------------
    @pl.when(c_idx == pl.num_programs(1) - 1)
    def _finalize():
        x_avg = sum_ref[...] * (1.0 / C)         # (H, W)  mean over channels
        x_max = max_ref[...]                     # (H, W)

        # Widen to a lane-aligned working width WP (multiple of 128). Columns
        # >= W are zero -> everything downstream there is finite & discarded.
        pad = jnp.zeros((H, WP - W), jnp.float32)
        avg_w = jnp.concatenate([x_avg, pad], axis=1)   # (H, WP)
        max_w = jnp.concatenate([x_max, pad], axis=1)   # (H, WP)

        # 1x1 conv (2->2) + bias + ReLU: per-pixel 2x2 matmul done as
        # scalar * vector mul-adds on the VPU.
        a0 = jnp.maximum(w1_ref[0, 0] * avg_w + w1_ref[0, 1] * max_w + b1_ref[0], 0.0)
        a1 = jnp.maximum(w1_ref[1, 0] * avg_w + w1_ref[1, 1] * max_w + b1_ref[1], 0.0)

        col = jax.lax.broadcasted_iota(jnp.int32, (H, WP), 1)

        def reflect_w(a):
            # Columns [0, W+6) hold the reflect(3)-padded row content; the
            # buffer stays (H, WP) so all later taps are on clean 128-lane
            # tiles.  Boundary columns are built with rolls + one-column masks
            # (no misaligned lane concatenates).
            out = pltpu.roll(a, 3, 1)            # col c -> a[:, c-3] (interior)
            for tgt, src in ((0, 3), (1, 2), (2, 1),
                             (W + 3, W - 2), (W + 4, W - 3), (W + 5, W - 4)):
                sh = (tgt - src) % WP
                r = a if sh == 0 else pltpu.roll(a, sh, 1)
                out = jnp.where(col == tgt, r, out)
            return out

        def reflect_h(a):
            # Row (sublane) reflect padding: full-lane row slices + concat.
            top = jnp.concatenate([a[3:4], a[2:3], a[1:2]], axis=0)
            bot = jnp.concatenate([a[H - 2:H - 1], a[H - 3:H - 2],
                                   a[H - 4:H - 3]], axis=0)
            return jnp.concatenate([top, a, bot], axis=0)     # (H+6, WP)

        p0 = reflect_h(reflect_w(a0))
        p1 = reflect_h(reflect_w(a1))

        # 7x7 conv (2->1) + bias.  kx lane shifts hoisted out of the ky loop:
        # one roll per (channel, kx), reused for all 7 ky.
        acc = jnp.zeros((H, WP), jnp.float32) + bsa_ref[0]
        for ci, p in enumerate((p0, p1)):
            for kx in range(7):
                r = p if kx == 0 else pltpu.roll(p, WP - kx, 1)  # col j -> p[:, j+kx]
                for ky in range(7):
                    acc = acc + wsa_ref[ci, ky * 7 + kx] * r[ky:ky + H, :]

        o_ref[0, 0] = acc[:, :WOUT].astype(o_ref.dtype)


def spatial_attention(x, w1, b1, wsa, bsa, *, c_block_budget_bytes=8 << 20):
    """x: (N, C, H, W). Returns (N, 1, H, W). Matches the PyTorch module."""
    N, C, H, W = x.shape
    assert H >= 4 and W >= 4, "reflect padding of 3 requires H >= 4 and W >= 4"

    w1_2d = w1.reshape(2, 2).astype(jnp.float32)       # (out=2, in=2)
    b1_v = b1.reshape(2).astype(jnp.float32)
    wsa_2d = wsa.reshape(2, 49).astype(jnp.float32)    # (in=2, 7*7), single out ch
    bsa_v = bsa.reshape(1).astype(jnp.float32)

    wp = _round_up(W + 6, 128)        # lane-aligned working width
    wout = _round_up(W, 128)          # lane-dense output width (sliced below)
    c_blk = _pick_c_block(C, H, W, x.dtype.itemsize, c_block_budget_bytes)
    n_cb = C // c_blk

    kernel = functools.partial(_spatial_attention_kernel,
                               C=C, H=H, W=W, WP=wp, WOUT=wout)

    out_padded = pl.pallas_call(
        kernel,
        out_shape=jax.ShapeDtypeStruct((N, 1, H, wout), x.dtype),
        # N parallel (keeps both v7x TensorCores busy), C reduction last and
        # arbitrary.  For very small H, W one could also fold several images
        # per step to amortize the ~0.35 us/step overhead (trades parallelism).
        grid=(N, n_cb),
        in_specs=[
            pl.BlockSpec((1, c_blk, H, W), lambda n, c: (n, c, 0, 0)),
            pl.BlockSpec(memory_space=pltpu.MemorySpace.SMEM),  # conv1x1 w (2, 2)
            pl.BlockSpec(memory_space=pltpu.MemorySpace.SMEM),  # conv1x1 b (2,)
            pl.BlockSpec(memory_space=pltpu.MemorySpace.SMEM),  # sa weight (2, 49)
            pl.BlockSpec(memory_space=pltpu.MemorySpace.SMEM),  # sa bias   (1,)
        ],
        out_specs=pl.BlockSpec((1, 1, H, wout), lambda n, c: (n, 0, 0, 0)),
        scratch_shapes=[
            pltpu.VMEM((H, W), jnp.float32),   # running channel sum
            pltpu.VMEM((H, W), jnp.float32),   # running channel max
        ],
        compiler_params=pltpu.CompilerParams(
            dimension_semantics=("parallel", "arbitrary"),
            vmem_limit_bytes=32 * 1024 * 1024,   # explicit, v7x-safe budget
        ),
    )(x, w1_2d, b1_v, wsa_2d, bsa_v)

    return out_padded[..., :W] if wout != W else out_padded


def reference(x, w1, b1, wsa, bsa):
    """Pure-JAX reference mirroring the PyTorch forward pass."""
    x_avg = jnp.mean(x, axis=1, keepdims=True)
    x_max = jnp.max(x, axis=1, keepdims=True)
    x2 = jnp.concatenate([x_avg, x_max], axis=1)                       # (N,2,H,W)
    y = jax.lax.conv_general_dilated(
        x2, w1, (1, 1), "VALID",
        dimension_numbers=("NCHW", "OIHW", "NCHW")) + b1.reshape(1, 2, 1, 1)
    y = jnp.maximum(y, 0.0)
    y_pad = jnp.pad(y, ((0, 0), (0, 0), (3, 3), (3, 3)), mode="reflect")
    out = jax.lax.conv_general_dilated(
        y_pad, wsa, (1, 1), "VALID",
        dimension_numbers=("NCHW", "OIHW", "NCHW")) + bsa.reshape(1, 1, 1, 1)
    return out


if __name__ == "__main__":
    key = jax.random.PRNGKey(0)
    k_x, k_w1, k_b1, k_ws, k_bs = jax.random.split(key, 5)

    N, C, H, W = 2, 4, 16, 16
    x = jax.random.normal(k_x, (N, C, H, W), dtype=jnp.float32)

    # Deterministic synthetic parameters (shapes match nn.Conv2d in __init__).
    w1 = jax.random.uniform(k_w1, (2, 2, 1, 1), jnp.float32, -0.5, 0.5)   # conv1x1
    b1 = jax.random.uniform(k_b1, (2,), jnp.float32, -0.5, 0.5)
    wsa = jax.random.uniform(k_ws, (1, 2, 7, 7), jnp.float32, -0.1, 0.1)  # sa (7x7)
    bsa = jax.random.uniform(k_bs, (1,), jnp.float32, -0.1, 0.1)

    out = spatial_attention(x, w1, b1, wsa, bsa)
    out = jax.block_until_ready(out)

    ref = jax.block_until_ready(reference(x, w1, b1, wsa, bsa))
    assert out.shape == (N, 1, H, W), out.shape
    assert jnp.allclose(out, ref, atol=1e-4, rtol=1e-4), \
        float(jnp.max(jnp.abs(out - ref)))

    print("KERNEL_OK")
</pallas_src>

<mosaic_0001>
module attributes {stable_mosaic.version = 11 : i64} {
  func.func @_spatial_attention_kernel(%arg0: i32, %arg1: i32, %arg2: memref<1x4x16x16xf32, #tpu.memory_space<vmem>>, %arg3: memref<2x2xf32, #tpu.memory_space<smem>>, %arg4: memref<2xf32, #tpu.memory_space<smem>>, %arg5: memref<2x49xf32, #tpu.memory_space<smem>>, %arg6: memref<1xf32, #tpu.memory_space<smem>>, %arg7: memref<1x1x16x128xf32, #tpu.memory_space<vmem>>, %arg8: memref<16x16xf32, #tpu.memory_space<vmem>>, %arg9: memref<16x16xf32, #tpu.memory_space<vmem>>) attributes {dimension_semantics = [#tpu.dimension_semantics<parallel>, #tpu.dimension_semantics<arbitrary>], iteration_bounds = array<i64: 2, 1>, scalar_prefetch = 0 : i64, scratch_operands = 2 : i64, tpu.core_type = #tpu.core_type<tc>, window_params = [{transform_indices = @transform_0, window_bounds = array<i64: 1, 4, 16, 16>}, {transform_indices = @transform_1, window_bounds = array<i64: 2, 2>}, {transform_indices = @transform_2, window_bounds = array<i64: 2>}, {transform_indices = @transform_3, window_bounds = array<i64: 2, 49>}, {transform_indices = @transform_4, window_bounds = array<i64: 1>}, {transform_indices = @transform_5, window_bounds = array<i64: 1, 1, 16, 128>}]} {
    %c0 = arith.constant 0 : index
    %c0_0 = arith.constant 0 : index
    %c0_1 = arith.constant 0 : index
    %c0_2 = arith.constant 0 : index
    %0 = vector.load %arg2[%c0, %c0_0, %c0_1, %c0_2] : memref<1x4x16x16xf32, #tpu.memory_space<vmem>>, vector<1x4x16x16xf32>
    %1 = vector.shape_cast %0 : vector<1x4x16x16xf32> to vector<4x16x16xf32>
    %cst = arith.constant dense<0.000000e+00> : vector<16x16xf32>
    %2 = vector.multi_reduction <add>, %1, %cst [0] : vector<4x16x16xf32> to vector<16x16xf32>
    %cst_3 = arith.constant dense<0xFF800000> : vector<16x16xf32>
    %3 = vector.multi_reduction <maximumf>, %1, %cst_3 [0] : vector<4x16x16xf32> to vector<16x16xf32>
    %c0_i32 = arith.constant 0 : i32
    %4 = arith.cmpi eq, %arg1, %c0_i32 : i32
    %5 = arith.extui %4 : i1 to i32
    %c0_i32_4 = arith.constant 0 : i32
    %6 = arith.cmpi ne, %5, %c0_i32_4 : i32
    scf.if %6 {
      %c0_9 = arith.constant 0 : index
      %c0_10 = arith.constant 0 : index
      %13 = vector.load %arg8[%c0_9, %c0_10] : memref<16x16xf32, #tpu.memory_space<vmem>>, vector<16x16xf32>
      tpu.vector_store %arg8[%c0_9, %c0_10], %2 {strides = array<i32>} : memref<16x16xf32, #tpu.memory_space<vmem>>, vector<16x16xf32>,
      %c0_11 = arith.constant 0 : index
      %c0_12 = arith.constant 0 : index
      %14 = vector.load %arg9[%c0_11, %c0_12] : memref<16x16xf32, #tpu.memory_space<vmem>>, vector<16x16xf32>
      tpu.vector_store %arg9[%c0_11, %c0_12], %3 {strides = array<i32>} : memref<16x16xf32, #tpu.memory_space<vmem>>, vector<16x16xf32>,
    } else {
    }
    %c0_i32_5 = arith.constant 0 : i32
    %7 = arith.cmpi sgt, %arg1, %c0_i32_5 : i32
    %8 = arith.extui %7 : i1 to i32
    %c0_i32_6 = arith.constant 0 : i32
    %9 = arith.cmpi ne, %8, %c0_i32_6 : i32
    scf.if %9 {
      %c0_9 = arith.constant 0 : index
      %c0_10 = arith.constant 0 : index
      %13 = vector.load %arg8[%c0_9, %c0_10] : memref<16x16xf32, #tpu.memory_space<vmem>>, vector<16x16xf32>
      %14 = arith.addf %13, %2 : vector<16x16xf32>
      %c0_11 = arith.constant 0 : index
      %c0_12 = arith.constant 0 : index
      %15 = vector.load %arg8[%c0_11, %c0_12] : memref<16x16xf32, #tpu.memory_space<vmem>>, vector<16x16xf32>
      tpu.vector_store %arg8[%c0_11, %c0_12], %14 {strides = array<i32>} : memref<16x16xf32, #tpu.memory_space<vmem>>, vector<16x16xf32>,
      %c0_13 = arith.constant 0 : index
      %c0_14 = arith.constant 0 : index
      %16 = vector.load %arg9[%c0_13, %c0_14] : memref<16x16xf32, #tpu.memory_space<vmem>>, vector<16x16xf32>
      %17 = arith.maximumf %16, %3 : vector<16x16xf32>
      %c0_15 = arith.constant 0 : index
      %c0_16 = arith.constant 0 : index
      %18 = vector.load %arg9[%c0_15, %c0_16] : memref<16x16xf32, #tpu.memory_space<vmem>>, vector<16x16xf32>
      tpu.vector_store %arg9[%c0_15, %c0_16], %17 {strides = array<i32>} : memref<16x16xf32, #tpu.memory_space<vmem>>, vector<16x16xf32>,
    } else {
    }
    %c0_i32_7 = arith.constant 0 : i32
    %10 = arith.cmpi eq, %arg1, %c0_i32_7 : i32
    %11 = arith.extui %10 : i1 to i32
    %c0_i32_8 = arith.constant 0 : i32
    %12 = arith.cmpi ne, %11, %c0_i32_8 : i32
    scf.if %12 {
      %c0_9 = arith.constant 0 : index
      %c0_10 = arith.constant 0 : index
      %13 = vector.load %arg8[%c0_9, %c0_10] : memref<16x16xf32, #tpu.memory_space<vmem>>, vector<16x16xf32>
      %cst_11 = arith.constant 2.500000e-01 : f32
      %14 = vector.broadcast %cst_11 : f32 to vector<16x16xf32>
      %15 = arith.mulf %13, %14 : vector<16x16xf32>
      %c0_12 = arith.constant 0 : index
      %c0_13 = arith.constant 0 : index
      %16 = vector.load %arg9[%c0_12, %c0_13] : memref<16x16xf32, #tpu.memory_space<vmem>>, vector<16x16xf32>
      %cst_14 = arith.constant 0.000000e+00 : f32
      %17 = vector.broadcast %cst_14 : f32 to vector<16x112xf32>
      %18 = tpu.concatenate %15, %17 in 1 : vector<16x16xf32>, vector<16x112xf32> -> vector<16x128xf32>
      %19 = tpu.concatenate %16, %17 in 1 : vector<16x16xf32>, vector<16x112xf32> -> vector<16x128xf32>
      %c0_15 = arith.constant 0 : index
      %c0_16 = arith.constant 0 : index
      %20 = memref.load %arg3[%c0_15, %c0_16] : memref<2x2xf32, #tpu.memory_space<smem>>
      %21 = vector.broadcast %20 : f32 to vector<16x128xf32>
      %22 = arith.mulf %21, %18 : vector<16x128xf32>
      %c0_17 = arith.constant 0 : index
      %c1 = arith.constant 1 : index
      %23 = memref.load %arg3[%c0_17, %c1] : memref<2x2xf32, #tpu.memory_space<smem>>
      %24 = vector.broadcast %23 : f32 to vector<16x128xf32>
      %25 = arith.mulf %24, %19 : vector<16x128xf32>
      %26 = arith.addf %22, %25 : vector<16x128xf32>
      %c0_18 = arith.constant 0 : index
      %27 = memref.load %arg4[%c0_18] : memref<2xf32, #tpu.memory_space<smem>>
      %28 = vector.broadcast %27 : f32 to vector<16x128xf32>
      %29 = arith.addf %26, %28 : vector<16x128xf32>
      %cst_19 = arith.constant 0.000000e+00 : f32
      %30 = vector.broadcast %cst_19 : f32 to vector<16x128xf32>
      %31 = arith.maximumf %29, %30 : vector<16x128xf32>
      %c1_20 = arith.constant 1 : index
      %c0_21 = arith.constant 0 : index
      %32 = memref.load %arg3[%c1_20, %c0_21] : memref<2x2xf32, #tpu.memory_space<smem>>
      %33 = vector.broadcast %32 : f32 to vector<16x128xf32>
      %34 = arith.mulf %33, %18 : vector<16x128xf32>
      %c1_22 = arith.constant 1 : index
      %c1_23 = arith.constant 1 : index
      %35 = memref.load %arg3[%c1_22, %c1_23] : memref<2x2xf32, #tpu.memory_space<smem>>
      %36 = vector.broadcast %35 : f32 to vector<16x128xf32>
      %37 = arith.mulf %36, %19 : vector<16x128xf32>
      %38 = arith.addf %34, %37 : vector<16x128xf32>
      %c1_24 = arith.constant 1 : index
      %39 = memref.load %arg4[%c1_24] : memref<2xf32, #tpu.memory_space<smem>>
      %40 = vector.broadcast %39 : f32 to vector<16x128xf32>
      %41 = arith.addf %38, %40 : vector<16x128xf32>
      %cst_25 = arith.constant 0.000000e+00 : f32
      %42 = vector.broadcast %cst_25 : f32 to vector<16x128xf32>
      %43 = arith.maximumf %41, %42 : vector<16x128xf32>
      %44 = tpu.iota {dimensions = array<i32: 1>} : vector<16x128xi32>
      %c3_i32 = arith.constant 3 : i32
      %45 = tpu.dynamic_rotate %31 by %c3_i32 dim 1 : vector<16x128xf32>, i32 -> vector<16x128xf32>
      %c125_i32 = arith.constant 125 : i32
      %46 = tpu.dynamic_rotate %31 by %c125_i32 dim 1 : vector<16x128xf32>, i32 -> vector<16x128xf32>
      %c0_i32_26 = arith.constant 0 : i32
      %47 = vector.broadcast %c0_i32_26 : i32 to vector<16x128xi32>
      %48 = arith.cmpi eq, %44, %47 : vector<16x128xi32>
      %49 = arith.select %48, %46, %45 : vector<16x128xi1>, vector<16x128xf32>
      %c127_i32 = arith.constant 127 : i32
      %50 = tpu.dynamic_rotate %31 by %c127_i32 dim 1 : vector<16x128xf32>, i32 -> vector<16x128xf32>
      %c1_i32 = arith.constant 1 : i32
      %51 = vector.broadcast %c1_i32 : i32 to vector<16x128xi32>
      %52 = arith.cmpi eq, %44, %51 : vector<16x128xi32>
      %53 = arith.select %52, %50, %49 : vector<16x128xi1>, vector<16x128xf32>
      %c1_i32_27 = arith.constant 1 : i32
      %54 = tpu.dynamic_rotate %31 by %c1_i32_27 dim 1 : vector<16x128xf32>, i32 -> vector<16x128xf32>
      %c2_i32 = arith.constant 2 : i32
      %55 = vector.broadcast %c2_i32 : i32 to vector<16x128xi32>
      %56 = arith.cmpi eq, %44, %55 : vector<16x128xi32>
      %57 = arith.select %56, %54, %53 : vector<16x128xi1>, vector<16x128xf32>
      %c5_i32 = arith.constant 5 : i32
      %58 = tpu.dynamic_rotate %31 by %c5_i32 dim 1 : vector<16x128xf32>, i32 -> vector<16x128xf32>
      %c19_i32 = arith.constant 19 : i32
      %59 = vector.broadcast %c19_i32 : i32 to vector<16x128xi32>
      %60 = arith.cmpi eq, %44, %59 : vector<16x128xi32>
      %61 = arith.select %60, %58, %57 : vector<16x128xi1>, vector<16x128xf32>
      %c7_i32 = arith.constant 7 : i32
      %62 = tpu.dynamic_rotate %31 by %c7_i32 dim 1 : vector<16x128xf32>, i32 -> vector<16x128xf32>
      %c20_i32 = arith.constant 20 : i32
      %63 = vector.broadcast %c20_i32 : i32 to vector<16x128xi32>
      %64 = arith.cmpi eq, %44, %63 : vector<16x128xi32>
      %65 = arith.select %64, %62, %61 : vector<16x128xi1>, vector<16x128xf32>
      %c9_i32 = arith.constant 9 : i32
      %66 = tpu.dynamic_rotate %31 by %c9_i32 dim 1 : vector<16x128xf32>, i32 -> vector<16x128xf32>
      %c21_i32 = arith.constant 21 : i32
      %67 = vector.broadcast %c21_i32 : i32 to vector<16x128xi32>
      %68 = arith.cmpi eq, %44, %67 : vector<16x128xi32>
      %69 = arith.select %68, %66, %65 : vector<16x128xi1>, vector<16x128xf32>
      %70 = vector.extract_strided_slice %69 {offsets = [3, 0], sizes = [1, 128], strides = [1, 1]} : vector<16x128xf32> to vector<1x128xf32>
      %71 = vector.extract_strided_slice %69 {offsets = [2, 0], sizes = [1, 128], strides = [1, 1]} : vector<16x128xf32> to vector<1x128xf32>
      %72 = vector.extract_strided_slice %69 {offsets = [1, 0], sizes = [1, 128], strides = [1, 1]} : vector<16x128xf32> to vector<1x128xf32>
      %73 = tpu.concatenate %70, %71, %72 in 0 : vector<1x128xf32>, vector<1x128xf32>, vector<1x128xf32> -> vector<3x128xf32>
      %74 = vector.extract_strided_slice %69 {offsets = [14, 0], sizes = [1, 128], strides = [1, 1]} : vector<16x128xf32> to vector<1x128xf32>
      %75 = vector.extract_strided_slice %69 {offsets = [13, 0], sizes = [1, 128], strides = [1, 1]} : vector<16x128xf32> to vector<1x128xf32>
      %76 = vector.extract_strided_slice %69 {offsets = [12, 0], sizes = [1, 128], strides = [1, 1]} : vector<16x128xf32> to vector<1x128xf32>
      %77 = tpu.concatenate %74, %75, %76 in 0 : vector<1x128xf32>, vector<1x128xf32>, vector<1x128xf32> -> vector<3x128xf32>
      %78 = tpu.concatenate %73, %69, %77 in 0 : vector<3x128xf32>, vector<16x128xf32>, vector<3x128xf32> -> vector<22x128xf32>
      %c3_i32_28 = arith.constant 3 : i32
      %79 = tpu.dynamic_rotate %43 by %c3_i32_28 dim 1 : vector<16x128xf32>, i32 -> vector<16x128xf32>
      %c125_i32_29 = arith.constant 125 : i32
      %80 = tpu.dynamic_rotate %43 by %c125_i32_29 dim 1 : vector<16x128xf32>, i32 -> vector<16x128xf32>
      %c0_i32_30 = arith.constant 0 : i32
      %81 = vector.broadcast %c0_i32_30 : i32 to vector<16x128xi32>
      %82 = arith.cmpi eq, %44, %81 : vector<16x128xi32>
      %83 = arith.select %82, %80, %79 : vector<16x128xi1>, vector<16x128xf32>
      %c127_i32_31 = arith.constant 127 : i32
      %84 = tpu.dynamic_rotate %43 by %c127_i32_31 dim 1 : vector<16x128xf32>, i32 -> vector<16x128xf32>
      %c1_i32_32 = arith.constant 1 : i32
      %85 = vector.broadcast %c1_i32_32 : i32 to vector<16x128xi32>
      %86 = arith.cmpi eq, %44, %85 : vector<16x128xi32>
      %87 = arith.select %86, %84, %83 : vector<16x128xi1>, vector<16x128xf32>
      %c1_i32_33 = arith.constant 1 : i32
      %88 = tpu.dynamic_rotate %43 by %c1_i32_33 dim 1 : vector<16x128xf32>, i32 -> vector<16x128xf32>
      %c2_i32_34 = arith.constant 2 : i32
      %89 = vector.broadcast %c2_i32_34 : i32 to vector<16x128xi32>
      %90 = arith.cmpi eq, %44, %89 : vector<16x128xi32>
      %91 = arith.select %90, %88, %87 : vector<16x128xi1>, vector<16x128xf32>
      %c5_i32_35 = arith.constant 5 : i32
      %92 = tpu.dynamic_rotate %43 by %c5_i32_35 dim 1 : vector<16x128xf32>, i32 -> vector<16x128xf32>
      %c19_i32_36 = arith.constant 19 : i32
      %93 = vector.broadcast %c19_i32_36 : i32 to vector<16x128xi32>
      %94 = arith.cmpi eq, %44, %93 : vector<16x128xi32>
      %95 = arith.select %94, %92, %91 : vector<16x128xi1>, vector<16x128xf32>
      %c7_i32_37 = arith.constant 7 : i32
      %96 = tpu.dynamic_rotate %43 by %c7_i32_37 dim 1 : vector<16x128xf32>, i32 -> vector<16x128xf32>
      %c20_i32_38 = arith.constant 20 : i32
      %97 = vector.broadcast %c20_i32_38 : i32 to vector<16x128xi32>
      %98 = arith.cmpi eq, %44, %97 : vector<16x128xi32>
      %99 = arith.select %98, %96, %95 : vector<16x128xi1>, vector<16x128xf32>
      %c9_i32_39 = arith.constant 9 : i32
      %100 = tpu.dynamic_rotate %43 by %c9_i32_39 dim 1 : vector<16x128xf32>, i32 -> vector<16x128xf32>
      %c21_i32_40 = arith.constant 21 : i32
      %101 = vector.broadcast %c21_i32_40 : i32 to vector<16x128xi32>
      %102 = arith.cmpi eq, %44, %101 : vector<16x128xi32>
      %103 = arith.select %102, %100, %99 : vector<16x128xi1>, vector<16x128xf32>
      %104 = vector.extract_strided_slice %103 {offsets = [3, 0], sizes = [1, 128], strides = [1, 1]} : vector<16x128xf32> to vector<1x128xf32>
      %105 = vector.extract_strided_slice %103 {offsets = [2, 0], sizes = [1, 128], strides = [1, 1]} : vector<16x128xf32> to vector<1x128xf32>
      %106 = vector.extract_strided_slice %103 {offsets = [1, 0], sizes = [1, 128], strides = [1, 1]} : vector<16x128xf32> to vector<1x128xf32>
      %107 = tpu.concatenate %104, %105, %106 in 0 : vector<1x128xf32>, vector<1x128xf32>, vector<1x128xf32> -> vector<3x128xf32>
      %108 = vector.extract_strided_slice %103 {offsets = [14, 0], sizes = [1, 128], strides = [1, 1]} : vector<16x128xf32> to vector<1x128xf32>
      %109 = vector.extract_strided_slice %103 {offsets = [13, 0], sizes = [1, 128], strides = [1, 1]} : vector<16x128xf32> to vector<1x128xf32>
      %110 = vector.extract_strided_slice %103 {offsets = [12, 0], sizes = [1, 128], strides = [1, 1]} : vector<16x128xf32> to vector<1x128xf32>
      %111 = tpu.concatenate %108, %109, %110 in 0 : vector<1x128xf32>, vector<1x128xf32>, vector<1x128xf32> -> vector<3x128xf32>
      %112 = tpu.concatenate %107, %103, %111 in 0 : vector<3x128xf32>, vector<16x128xf32>, vector<3x128xf32> -> vector<22x128xf32>
      %cst_41 = arith.constant 0.000000e+00 : f32
      %113 = vector.broadcast %cst_41 : f32 to vector<16x128xf32>
      %c0_42 = arith.constant 0 : index
      %114 = memref.load %arg6[%c0_42] : memref<1xf32, #tpu.memory_space<smem>>
      %115 = vector.broadcast %114 : f32 to vector<16x128xf32>
      %116 = arith.addf %113, %115 : vector<16x128xf32>
      %c0_43 = arith.constant 0 : index
      %c0_44 = arith.constant 0 : index
      %117 = memref.load %arg5[%c0_43, %c0_44] : memref<2x49xf32, #tpu.memory_space<smem>>
      %118 = vector.extract_strided_slice %78 {offsets = [0, 0], sizes = [16, 128], strides = [1, 1]} : vector<22x128xf32> to vector<16x128xf32>
      %119 = vector.broadcast %117 : f32 to vector<16x128xf32>
      %120 = arith.mulf %119, %118 : vector<16x128xf32>
      %121 = arith.addf %116, %120 : vector<16x128xf32>
      %c0_45 = arith.constant 0 : index
      %c7 = arith.constant 7 : index
      %122 = memref.load %arg5[%c0_45, %c7] : memref<2x49xf32, #tpu.memory_space<smem>>
      %123 = vector.extract_strided_slice %78 {offsets = [1, 0], sizes = [16, 128], strides = [1, 1]} : vector<22x128xf32> to vector<16x128xf32>
      %124 = vector.broadcast %122 : f32 to vector<16x128xf32>
      %125 = arith.mulf %124, %123 : vector<16x128xf32>
      %126 = arith.addf %121, %125 : vector<16x128xf32>
      %c0_46 = arith.constant 0 : index
      %c14 = arith.constant 14 : index
      %127 = memref.load %arg5[%c0_46, %c14] : memref<2x49xf32, #tpu.memory_space<smem>>
      %128 = vector.extract_strided_slice %78 {offsets = [2, 0], sizes = [16, 128], strides = [1, 1]} : vector<22x128xf32> to vector<16x128xf32>
      %129 = vector.broadcast %127 : f32 to vector<16x128xf32>
      %130 = arith.mulf %129, %128 : vector<16x128xf32>
      %131 = arith.addf %126, %130 : vector<16x128xf32>
      %c0_47 = arith.constant 0 : index
      %c21 = arith.constant 21 : index
      %132 = memref.load %arg5[%c0_47, %c21] : memref<2x49xf32, #tpu.memory_space<smem>>
      %133 = vector.extract_strided_slice %78 {offsets = [3, 0], sizes = [16, 128], strides = [1, 1]} : vector<22x128xf32> to vector<16x128xf32>
      %134 = vector.broadcast %132 : f32 to vector<16x128xf32>
      %135 = arith.mulf %134, %133 : vector<16x128xf32>
      %136 = arith.addf %131, %135 : vector<16x128xf32>
      %c0_48 = arith.constant 0 : index
      %c28 = arith.constant 28 : index
      %137 = memref.load %arg5[%c0_48, %c28] : memref<2x49xf32, #tpu.memory_space<smem>>
      %138 = vector.extract_strided_slice %78 {offsets = [4, 0], sizes = [16, 128], strides = [1, 1]} : vector<22x128xf32> to vector<16x128xf32>
      %139 = vector.broadcast %137 : f32 to vector<16x128xf32>
      %140 = arith.mulf %139, %138 : vector<16x128xf32>
      %141 = arith.addf %136, %140 : vector<16x128xf32>
      %c0_49 = arith.constant 0 : index
      %c35 = arith.constant 35 : index
      %142 = memref.load %arg5[%c0_49, %c35] : memref<2x49xf32, #tpu.memory_space<smem>>
      %143 = vector.extract_strided_slice %78 {offsets = [5, 0], sizes = [16, 128], strides = [1, 1]} : vector<22x128xf32> to vector<16x128xf32>
      %144 = vector.broadcast %142 : f32 to vector<16x128xf32>
      %145 = arith.mulf %144, %143 : vector<16x128xf32>
      %146 = arith.addf %141, %145 : vector<16x128xf32>
      %c0_50 = arith.constant 0 : index
      %c42 = arith.constant 42 : index
      %147 = memref.load %arg5[%c0_50, %c42] : memref<2x49xf32, #tpu.memory_space<smem>>
      %148 = vector.extract_strided_slice %78 {offsets = [6, 0], sizes = [16, 128], strides = [1, 1]} : vector<22x128xf32> to vector<16x128xf32>
      %149 = vector.broadcast %147 : f32 to vector<16x128xf32>
      %150 = arith.mulf %149, %148 : vector<16x128xf32>
      %151 = arith.addf %146, %150 : vector<16x128xf32>
      %c127_i32_51 = arith.constant 127 : i32
      %152 = tpu.dynamic_rotate %78 by %c127_i32_51 dim 1 : vector<22x128xf32>, i32 -> vector<22x128xf32>
      %c0_52 = arith.constant 0 : index
      %c1_53 = arith.constant 1 : index
      %153 = memref.load %arg5[%c0_52, %c1_53] : memref<2x49xf32, #tpu.memory_space<smem>>
      %154 = vector.extract_strided_slice %152 {offsets = [0, 0], sizes = [16, 128], strides = [1, 1]} : vector<22x128xf32> to vector<16x128xf32>
      %155 = vector.broadcast %153 : f32 to vector<16x128xf32>
      %156 = arith.mulf %155, %154 : vector<16x128xf32>
      %157 = arith.addf %151, %156 : vector<16x128xf32>
      %c0_54 = arith.constant 0 : index
      %c8 = arith.constant 8 : index
      %158 = memref.load %arg5[%c0_54, %c8] : memref<2x49xf32, #tpu.memory_space<smem>>
      %159 = vector.extract_strided_slice %152 {offsets = [1, 0], sizes = [16, 128], strides = [1, 1]} : vector<22x128xf32> to vector<16x128xf32>
      %160 = vector.broadcast %158 : f32 to vector<16x128xf32>
      %161 = arith.mulf %160, %159 : vector<16x128xf32>
      %162 = arith.addf %157, %161 : vector<16x128xf32>
      %c0_55 = arith.constant 0 : index
      %c15 = arith.constant 15 : index
      %163 = memref.load %arg5[%c0_55, %c15] : memref<2x49xf32, #tpu.memory_space<smem>>
      %164 = vector.extract_strided_slice %152 {offsets = [2, 0], sizes = [16, 128], strides = [1, 1]} : vector<22x128xf32> to vector<16x128xf32>
      %165 = vector.broadcast %163 : f32 to vector<16x128xf32>
      %166 = arith.mulf %165, %164 : vector<16x128xf32>
      %167 = arith.addf %162, %166 : vector<16x128xf32>
      %c0_56 = arith.constant 0 : index
      %c22 = arith.constant 22 : index
      %168 = memref.load %arg5[%c0_56, %c22] : memref<2x49xf32, #tpu.memory_space<smem>>
      %169 = vector.extract_strided_slice %152 {offsets = [3, 0], sizes = [16, 128], strides = [1, 1]} : vector<22x128xf32> to vector<16x128xf32>
      %170 = vector.broadcast %168 : f32 to vector<16x128xf32>
      %171 = arith.mulf %170, %169 : vector<16x128xf32>
      %172 = arith.addf %167, %171 : vector<16x128xf32>
      %c0_57 = arith.constant 0 : index
      %c29 = arith.constant 29 : index
      %173 = memref.load %arg5[%c0_57, %c29] : memref<2x49xf32, #tpu.memory_space<smem>>
      %174 = vector.extract_strided_slice %152 {offsets = [4, 0], sizes = [16, 128], strides = [1, 1]} : vector<22x128xf32> to vector<16x128xf32>
      %175 = vector.broadcast %173 : f32 to vector<16x128xf32>
      %176 = arith.mulf %175, %174 : vector<16x128xf32>
      %177 = arith.addf %172, %176 : vector<16x128xf32>
      %c0_58 = arith.constant 0 : index
      %c36 = arith.constant 36 : index
      %178 = memref.load %arg5[%c0_58, %c36] : memref<2x49xf32, #tpu.memory_space<smem>>
      %179 = vector.extract_strided_slice %152 {offsets = [5, 0], sizes = [16, 128], strides = [1, 1]} : vector<22x128xf32> to vector<16x128xf32>
      %180 = vector.broadcast %178 : f32 to vector<16x128xf32>
      %181 = arith.mulf %180, %179 : vector<16x128xf32>
      %182 = arith.addf %177, %181 : vector<16x128xf32>
      %c0_59 = arith.constant 0 : index
      %c43 = arith.constant 43 : index
      %183 = memref.load %arg5[%c0_59, %c43] : memref<2x49xf32, #tpu.memory_space<smem>>
      %184 = vector.extract_strided_slice %152 {offsets = [6, 0], sizes = [16, 128], strides = [1, 1]} : vector<22x128xf32> to vector<16x128xf32>
      %185 = vector.broadcast %183 : f32 to vector<16x128xf32>
      %186 = arith.mulf %185, %184 : vector<16x128xf32>
      %187 = arith.addf %182, %186 : vector<16x128xf32>
      %c126_i32 = arith.constant 126 : i32
      %188 = tpu.dynamic_rotate %78 by %c126_i32 dim 1 : vector<22x128xf32>, i32 -> vector<22x128xf32>
      %c0_60 = arith.constant 0 : index
      %c2 = arith.constant 2 : index
      %189 = memref.load %arg5[%c0_60, %c2] : memref<2x49xf32, #tpu.memory_space<smem>>
      %190 = vector.extract_strided_slice %188 {offsets = [0, 0], sizes = [16, 128], strides = [1, 1]} : vector<22x128xf32> to vector<16x128xf32>
      %191 = vector.broadcast %189 : f32 to vector<16x128xf32>
      %192 = arith.mulf %191, %190 : vector<16x128xf32>
      %193 = arith.addf %187, %192 : vector<16x128xf32>
      %c0_61 = arith.constant 0 : index
      %c9 = arith.constant 9 : index
      %194 = memref.load %arg5[%c0_61, %c9] : memref<2x49xf32, #tpu.memory_space<smem>>
      %195 = vector.extract_strided_slice %188 {offsets = [1, 0], sizes = [16, 128], strides = [1, 1]} : vector<22x128xf32> to vector<16x128xf32>
      %196 = vector.broadcast %194 : f32 to vector<16x128xf32>
      %197 = arith.mulf %196, %195 : vector<16x128xf32>
      %198 = arith.addf %193, %197 : vector<16x128xf32>
      %c0_62 = arith.constant 0 : index
      %c16 = arith.constant 16 : index
      %199 = memref.load %arg5[%c0_62, %c16] : memref<2x49xf32, #tpu.memory_space<smem>>
      %200 = vector.extract_strided_slice %188 {offsets = [2, 0], sizes = [16, 128], strides = [1, 1]} : vector<22x128xf32> to vector<16x128xf32>
      %201 = vector.broadcast %199 : f32 to vector<16x128xf32>
      %202 = arith.mulf %201, %200 : vector<16x128xf32>
      %203 = arith.addf %198, %202 : vector<16x128xf32>
      %c0_63 = arith.constant 0 : index
      %c23 = arith.constant 23 : index
      %204 = memref.load %arg5[%c0_63, %c23] : memref<2x49xf32, #tpu.memory_space<smem>>
      %205 = vector.extract_strided_slice %188 {offsets = [3, 0], sizes = [16, 128], strides = [1, 1]} : vector<22x128xf32> to vector<16x128xf32>
      %206 = vector.broadcast %204 : f32 to vector<16x128xf32>
      %207 = arith.mulf %206, %205 : vector<16x128xf32>
      %208 = arith.addf %203, %207 : vector<16x128xf32>
      %c0_64 = arith.constant 0 : index
      %c30 = arith.constant 30 : index
      %209 = memref.load %arg5[%c0_64, %c30] : memref<2x49xf32, #tpu.memory_space<smem>>
      %210 = vector.extract_strided_slice %188 {offsets = [4, 0], sizes = [16, 128], strides = [1, 1]} : vector<22x128xf32> to vector<16x128xf32>
      %211 = vector.broadcast %209 : f32 to vector<16x128xf32>
      %212 = arith.mulf %211, %210 : vector<16x128xf32>
      %213 = arith.addf %208, %212 : vector<16x128xf32>
      %c0_65 = arith.constant 0 : index
      %c37 = arith.constant 37 : index
      %214 = memref.load %arg5[%c0_65, %c37] : memref<2x49xf32, #tpu.memory_space<smem>>
      %215 = vector.extract_strided_slice %188 {offsets = [5, 0], sizes = [16, 128], strides = [1, 1]} : vector<22x128xf32> to vector<16x128xf32>
      %216 = vector.broadcast %214 : f32 to vector<16x128xf32>
      %217 = arith.mulf %216, %215 : vector<16x128xf32>
      %218 = arith.addf %213, %217 : vector<16x128xf32>
      %c0_66 = arith.constant 0 : index
      %c44 = arith.constant 44 : index
      %219 = memref.load %arg5[%c0_66, %c44] : memref<2x49xf32, #tpu.memory_space<smem>>
      %220 = vector.extract_strided_slice %188 {offsets = [6, 0], sizes = [16, 128], strides = [1, 1]} : vector<22x128xf32> to vector<16x128xf32>
      %221 = vector.broadcast %219 : f32 to vector<16x128xf32>
      %222 = arith.mulf %221, %220 : vector<16x128xf32>
      %223 = arith.addf %218, %222 : vector<16x128xf32>
      %c125_i32_67 = arith.constant 125 : i32
      %224 = tpu.dynamic_rotate %78 by %c125_i32_67 dim 1 : vector<22x128xf32>, i32 -> vector<22x128xf32>
      %c0_68 = arith.constant 0 : index
      %c3 = arith.constant 3 : index
      %225 = memref.load %arg5[%c0_68, %c3] : memref<2x49xf32, #tpu.memory_space<smem>>
      %226 = vector.extract_strided_slice %224 {offsets = [0, 0], sizes = [16, 128], strides = [1, 1]} : vector<22x128xf32> to vector<16x128xf32>
      %227 = vector.broadcast %225 : f32 to vector<16x128xf32>
      %228 = arith.mulf %227, %226 : vector<16x128xf32>
      %229 = arith.addf %223, %228 : vector<16x128xf32>
      %c0_69 = arith.constant 0 : index
      %c10 = arith.constant 10 : index
      %230 = memref.load %arg5[%c0_69, %c10] : memref<2x49xf32, #tpu.memory_space<smem>>
      %231 = vector.extract_strided_slice %224 {offsets = [1, 0], sizes = [16, 128], strides = [1, 1]} : vector<22x128xf32> to vector<16x128xf32>
      %232 = vector.broadcast %230 : f32 to vector<16x128xf32>
      %233 = arith.mulf %232, %231 : vector<16x128xf32>
      %234 = arith.addf %229, %233 : vector<16x128xf32>
      %c0_70 = arith.constant 0 : index
      %c17 = arith.constant 17 : index
      %235 = memref.load %arg5[%c0_70, %c17] : memref<2x49xf32, #tpu.memory_space<smem>>
      %236 = vector.extract_strided_slice %224 {offsets = [2, 0], sizes = [16, 128], strides = [1, 1]} : vector<22x128xf32> to vector<16x128xf32>
      %237 = vector.broadcast %235 : f32 to vector<16x128xf32>
      %238 = arith.mulf %237, %236 : vector<16x128xf32>
      %239 = arith.addf %234, %238 : vector<16x128xf32>
      %c0_71 = arith.constant 0 : index
      %c24 = arith.constant 24 : index
      %240 = memref.load %arg5[%c0_71, %c24] : memref<2x49xf32, #tpu.memory_space<smem>>
      %241 = vector.extract_strided_slice %224 {offsets = [3, 0], sizes = [16, 128], strides = [1, 1]} : vector<22x128xf32> to vector<16x128xf32>
      %242 = vector.broadcast %240 : f32 to vector<16x128xf32>
      %243 = arith.mulf %242, %241 : vector<16x128xf32>
      %244 = arith.addf %239, %243 : vector<16x128xf32>
      %c0_72 = arith.constant 0 : index
      %c31 = arith.constant 31 : index
      %245 = memref.load %arg5[%c0_72, %c31] : memref<2x49xf32, #tpu.memory_space<smem>>
      %246 = vector.extract_strided_slice %224 {offsets = [4, 0], sizes = [16, 128], strides = [1, 1]} : vector<22x128xf32> to vector<16x128xf32>
      %247 = vector.broadcast %245 : f32 to vector<16x128xf32>
      %248 = arith.mulf %247, %246 : vector<16x128xf32>
      %249 = arith.addf %244, %248 : vector<16x128xf32>
      %c0_73 = arith.constant 0 : index
      %c38 = arith.constant 38 : index
      %250 = memref.load %arg5[%c0_73, %c38] : memref<2x49xf32, #tpu.memory_space<smem>>
      %251 = vector.extract_strided_slice %224 {offsets = [5, 0], sizes = [16, 128], strides = [1, 1]} : vector<22x128xf32> to vector<16x128xf32>
      %252 = vector.broadcast %250 : f32 to vector<16x128xf32>
      %253 = arith.mulf %252, %251 : vector<16x128xf32>
      %254 = arith.addf %249, %253 : vector<16x128xf32>
      %c0_74 = arith.constant 0 : index
      %c45 = arith.constant 45 : index
      %255 = memref.load %arg5[%c0_74, %c45] : memref<2x49xf32, #tpu.memory_space<smem>>
      %256 = vector.extract_strided_slice %224 {offsets = [6, 0], sizes = [16, 128], strides = [1, 1]} : vector<22x128xf32> to vector<16x128xf32>
      %257 = vector.broadcast %255 : f32 to vector<16x128xf32>
      %258 = arith.mulf %257, %256 : vector<16x128xf32>
      %259 = arith.addf %254, %258 : vector<16x128xf32>
      %c124_i32 = arith.constant 124 : i32
      %260 = tpu.dynamic_rotate %78 by %c124_i32 dim 1 : vector<22x128xf32>, i32 -> vector<22x128xf32>
      %c0_75 = arith.constant 0 : index
      %c4 = arith.constant 4 : index
      %261 = memref.load %arg5[%c0_75, %c4] : memref<2x49xf32, #tpu.memory_space<smem>>
      %262 = vector.extract_strided_slice %260 {offsets = [0, 0], sizes = [16, 128], strides = [1, 1]} : vector<22x128xf32> to vector<16x128xf32>
      %263 = vector.broadcast %261 : f32 to vector<16x128xf32>
      %264 = arith.mulf %263, %262 : vector<16x128xf32>
      %265 = arith.addf %259, %264 : vector<16x128xf32>
      %c0_76 = arith.constant 0 : index
      %c11 = arith.constant 11 : index
      %266 = memref.load %arg5[%c0_76, %c11] : memref<2x49xf32, #tpu.memory_space<smem>>
      %267 = vector.extract_strided_slice %260 {offsets = [1, 0], sizes = [16, 128], strides = [1, 1]} : vector<22x128xf32> to vector<16x128xf32>
      %268 = vector.broadcast %266 : f32 to vector<16x128xf32>
      %269 = arith.mulf %268, %267 : vector<16x128xf32>
      %270 = arith.addf %265, %269 : vector<16x128xf32>
      %c0_77 = arith.constant 0 : index
      %c18 = arith.constant 18 : index
      %271 = memref.load %arg5[%c0_77, %c18] : memref<2x49xf32, #tpu.memory_space<smem>>
      %272 = vector.extract_strided_slice %260 {offsets = [2, 0], sizes = [16, 128], strides = [1, 1]} : vector<22x128xf32> to vector<16x128xf32>
      %273 = vector.broadcast %271 : f32 to vector<16x128xf32>
      %274 = arith.mulf %273, %272 : vector<16x128xf32>
      %275 = arith.addf %270, %274 : vector<16x128xf32>
      %c0_78 = arith.constant 0 : index
      %c25 = arith.constant 25 : index
      %276 = memref.load %arg5[%c0_78, %c25] : memref<2x49xf32, #tpu.memory_space<smem>>
      %277 = vector.extract_strided_slice %260 {offsets = [3, 0], sizes = [16, 128], strides = [1, 1]} : vector<22x128xf32> to vector<16x128xf32>
      %278 = vector.broadcast %276 : f32 to vector<16x128xf32>
      %279 = arith.mulf %278, %277 : vector<16x128xf32>
      %280 = arith.addf %275, %279 : vector<16x128xf32>
      %c0_79 = arith.constant 0 : index
      %c32 = arith.constant 32 : index
      %281 = memref.load %arg5[%c0_79, %c32] : memref<2x49xf32, #tpu.memory_space<smem>>
      %282 = vector.extract_strided_slice %260 {offsets = [4, 0], sizes = [16, 128], strides = [1, 1]} : vector<22x128xf32> to vector<16x128xf32>
      %283 = vector.broadcast %281 : f32 to vector<16x128xf32>
      %284 = arith.mulf %283, %282 : vector<16x128xf32>
      %285 = arith.addf %280, %284 : vector<16x128xf32>
      %c0_80 = arith.constant 0 : index
      %c39 = arith.constant 39 : index
      %286 = memref.load %arg5[%c0_80, %c39] : memref<2x49xf32, #tpu.memory_space<smem>>
      %287 = vector.extract_strided_slice %260 {offsets = [5, 0], sizes = [16, 128], strides = [1, 1]} : vector<22x128xf32> to vector<16x128xf32>
      %288 = vector.broadcast %286 : f32 to vector<16x128xf32>
      %289 = arith.mulf %288, %287 : vector<16x128xf32>
      %290 = arith.addf %285, %289 : vector<16x128xf32>
      %c0_81 = arith.constant 0 : index
      %c46 = arith.constant 46 : index
      %291 = memref.load %arg5[%c0_81, %c46] : memref<2x49xf32, #tpu.memory_space<smem>>
      %292 = vector.extract_strided_slice %260 {offsets = [6, 0], sizes = [16, 128], strides = [1, 1]} : vector<22x128xf32> to vector<16x128xf32>
      %293 = vector.broadcast %291 : f32 to vector<16x128xf32>
      %294 = arith.mulf %293, %292 : vector<16x128xf32>
      %295 = arith.addf %290, %294 : vector<16x128xf32>
      %c123_i32 = arith.constant 123 : i32
      %296 = tpu.dynamic_rotate %78 by %c123_i32 dim 1 : vector<22x128xf32>, i32 -> vector<22x128xf32>
      %c0_82 = arith.constant 0 : index
      %c5 = arith.constant 5 : index
      %297 = memref.load %arg5[%c0_82, %c5] : memref<2x49xf32, #tpu.memory_space<smem>>
      %298 = vector.extract_strided_slice %296 {offsets = [0, 0], sizes = [16, 128], strides = [1, 1]} : vector<22x128xf32> to vector<16x128xf32>
      %299 = vector.broadcast %297 : f32 to vector<16x128xf32>
      %300 = arith.mulf %299, %298 : vector<16x128xf32>
      %301 = arith.addf %295, %300 : vector<16x128xf32>
      %c0_83 = arith.constant 0 : index
      %c12 = arith.constant 12 : index
      %302 = memref.load %arg5[%c0_83, %c12] : memref<2x49xf32, #tpu.memory_space<smem>>
      %303 = vector.extract_strided_slice %296 {offsets = [1, 0], sizes = [16, 128], strides = [1, 1]} : vector<22x128xf32> to vector<16x128xf32>
      %304 = vector.broadcast %302 : f32 to vector<16x128xf32>
      %305 = arith.mulf %304, %303 : vector<16x128xf32>
      %306 = arith.addf %301, %305 : vector<16x128xf32>
      %c0_84 = arith.constant 0 : index
      %c19 = arith.constant 19 : index
      %307 = memref.load %arg5[%c0_84, %c19] : memref<2x49xf32, #tpu.memory_space<smem>>
      %308 = vector.extract_strided_slice %296 {offsets = [2, 0], sizes = [16, 128], strides = [1, 1]} : vector<22x128xf32> to vector<16x128xf32>
      %309 = vector.broadcast %307 : f32 to vector<16x128xf32>
      %310 = arith.mulf %309, %308 : vector<16x128xf32>
      %311 = arith.addf %306, %310 : vector<16x128xf32>
      %c0_85 = arith.constant 0 : index
      %c26 = arith.constant 26 : index
      %312 = memref.load %arg5[%c0_85, %c26] : memref<2x49xf32, #tpu.memory_space<smem>>
      %313 = vector.extract_strided_slice %296 {offsets = [3, 0], sizes = [16, 128], strides = [1, 1]} : vector<22x128xf32> to vector<16x128xf32>
      %314 = vector.broadcast %312 : f32 to vector<16x128xf32>
      %315 = arith.mulf %314, %313 : vector<16x128xf32>
      %316 = arith.addf %311, %315 : vector<16x128xf32>
      %c0_86 = arith.constant 0 : index
      %c33 = arith.constant 33 : index
      %317 = memref.load %arg5[%c0_86, %c33] : memref<2x49xf32, #tpu.memory_space<smem>>
      %318 = vector.extract_strided_slice %296 {offsets = [4, 0], sizes = [16, 128], strides = [1, 1]} : vector<22x128xf32> to vector<16x128xf32>
      %319 = vector.broadcast %317 : f32 to vector<16x128xf32>
      %320 = arith.mulf %319, %318 : vector<16x128xf32>
      %321 = arith.addf %316, %320 : vector<16x128xf32>
      %c0_87 = arith.constant 0 : index
      %c40 = arith.constant 40 : index
      %322 = memref.load %arg5[%c0_87, %c40] : memref<2x49xf32, #tpu.memory_space<smem>>
      %323 = vector.extract_strided_slice %296 {offsets = [5, 0], sizes = [16, 128], strides = [1, 1]} : vector<22x128xf32> to vector<16x128xf32>
      %324 = vector.broadcast %322 : f32 to vector<16x128xf32>
      %325 = arith.mulf %324, %323 : vector<16x128xf32>
      %326 = arith.addf %321, %325 : vector<16x128xf32>
      %c0_88 = arith.constant 0 : index
      %c47 = arith.constant 47 : index
      %327 = memref.load %arg5[%c0_88, %c47] : memref<2x49xf32, #tpu.memory_space<smem>>
      %328 = vector.extract_strided_slice %296 {offsets = [6, 0], sizes = [16, 128], strides = [1, 1]} : vector<22x128xf32> to vector<16x128xf32>
      %329 = vector.broadcast %327 : f32 to vector<16x128xf32>
      %330 = arith.mulf %329, %328 : vector<16x128xf32>
      %331 = arith.addf %326, %330 : vector<16x128xf32>
      %c122_i32 = arith.constant 122 : i32
      %332 = tpu.dynamic_rotate %78 by %c122_i32 dim 1 : vector<22x128xf32>, i32 -> vector<22x128xf32>
      %c0_89 = arith.constant 0 : index
      %c6 = arith.constant 6 : index
      %333 = memref.load %arg5[%c0_89, %c6] : memref<2x49xf32, #tpu.memory_space<smem>>
      %334 = vector.extract_strided_slice %332 {offsets = [0, 0], sizes = [16, 128], strides = [1, 1]} : vector<22x128xf32> to vector<16x128xf32>
      %335 = vector.broadcast %333 : f32 to vector<16x128xf32>
      %336 = arith.mulf %335, %334 : vector<16x128xf32>
      %337 = arith.addf %331, %336 : vector<16x128xf32>
      %c0_90 = arith.constant 0 : index
      %c13 = arith.constant 13 : index
      %338 = memref.load %arg5[%c0_90, %c13] : memref<2x49xf32, #tpu.memory_space<smem>>
      %339 = vector.extract_strided_slice %332 {offsets = [1, 0], sizes = [16, 128], strides = [1, 1]} : vector<22x128xf32> to vector<16x128xf32>
      %340 = vector.broadcast %338 : f32 to vector<16x128xf32>
      %341 = arith.mulf %340, %339 : vector<16x128xf32>
      %342 = arith.addf %337, %341 : vector<16x128xf32>
      %c0_91 = arith.constant 0 : index
      %c20 = arith.constant 20 : index
      %343 = memref.load %arg5[%c0_91, %c20] : memref<2x49xf32, #tpu.memory_space<smem>>
      %344 = vector.extract_strided_slice %332 {offsets = [2, 0], sizes = [16, 128], strides = [1, 1]} : vector<22x128xf32> to vector<16x128xf32>
      %345 = vector.broadcast %343 : f32 to vector<16x128xf32>
      %346 = arith.mulf %345, %344 : vector<16x128xf32>
      %347 = arith.addf %342, %346 : vector<16x128xf32>
      %c0_92 = arith.constant 0 : index
      %c27 = arith.constant 27 : index
      %348 = memref.load %arg5[%c0_92, %c27] : memref<2x49xf32, #tpu.memory_space<smem>>
      %349 = vector.extract_strided_slice %332 {offsets = [3, 0], sizes = [16, 128], strides = [1, 1]} : vector<22x128xf32> to vector<16x128xf32>
      %350 = vector.broadcast %348 : f32 to vector<16x128xf32>
      %351 = arith.mulf %350, %349 : vector<16x128xf32>
      %352 = arith.addf %347, %351 : vector<16x128xf32>
      %c0_93 = arith.constant 0 : index
      %c34 = arith.constant 34 : index
      %353 = memref.load %arg5[%c0_93, %c34] : memref<2x49xf32, #tpu.memory_space<smem>>
      %354 = vector.extract_strided_slice %332 {offsets = [4, 0], sizes = [16, 128], strides = [1, 1]} : vector<22x128xf32> to vector<16x128xf32>
      %355 = vector.broadcast %353 : f32 to vector<16x128xf32>
      %356 = arith.mulf %355, %354 : vector<16x128xf32>
      %357 = arith.addf %352, %356 : vector<16x128xf32>
      %c0_94 = arith.constant 0 : index
      %c41 = arith.constant 41 : index
      %358 = memref.load %arg5[%c0_94, %c41] : memref<2x49xf32, #tpu.memory_space<smem>>
      %359 = vector.extract_strided_slice %332 {offsets = [5, 0], sizes = [16, 128], strides = [1, 1]} : vector<22x128xf32> to vector<16x128xf32>
      %360 = vector.broadcast %358 : f32 to vector<16x128xf32>
      %361 = arith.mulf %360, %359 : vector<16x128xf32>
      %362 = arith.addf %357, %361 : vector<16x128xf32>
      %c0_95 = arith.constant 0 : index
      %c48 = arith.constant 48 : index
      %363 = memref.load %arg5[%c0_95, %c48] : memref<2x49xf32, #tpu.memory_space<smem>>
      %364 = vector.extract_strided_slice %332 {offsets = [6, 0], sizes = [16, 128], strides = [1, 1]} : vector<22x128xf32> to vector<16x128xf32>
      %365 = vector.broadcast %363 : f32 to vector<16x128xf32>
      %366 = arith.mulf %365, %364 : vector<16x128xf32>
      %367 = arith.addf %362, %366 : vector<16x128xf32>
      %c1_96 = arith.constant 1 : index
      %c0_97 = arith.constant 0 : index
      %368 = memref.load %arg5[%c1_96, %c0_97] : memref<2x49xf32, #tpu.memory_space<smem>>
      %369 = vector.extract_strided_slice %112 {offsets = [0, 0], sizes = [16, 128], strides = [1, 1]} : vector<22x128xf32> to vector<16x128xf32>
      %370 = vector.broadcast %368 : f32 to vector<16x128xf32>
      %371 = arith.mulf %370, %369 : vector<16x128xf32>
      %372 = arith.addf %367, %371 : vector<16x128xf32>
      %c1_98 = arith.constant 1 : index
      %c7_99 = arith.constant 7 : index
      %373 = memref.load %arg5[%c1_98, %c7_99] : memref<2x49xf32, #tpu.memory_space<smem>>
      %374 = vector.extract_strided_slice %112 {offsets = [1, 0], sizes = [16, 128], strides = [1, 1]} : vector<22x128xf32> to vector<16x128xf32>
      %375 = vector.broadcast %373 : f32 to vector<16x128xf32>
      %376 = arith.mulf %375, %374 : vector<16x128xf32>
      %377 = arith.addf %372, %376 : vector<16x128xf32>
      %c1_100 = arith.constant 1 : index
      %c14_101 = arith.constant 14 : index
      %378 = memref.load %arg5[%c1_100, %c14_101] : memref<2x49xf32, #tpu.memory_space<smem>>
      %379 = vector.extract_strided_slice %112 {offsets = [2, 0], sizes = [16, 128], strides = [1, 1]} : vector<22x128xf32> to vector<16x128xf32>
      %380 = vector.broadcast %378 : f32 to vector<16x128xf32>
      %381 = arith.mulf %380, %379 : vector<16x128xf32>
      %382 = arith.addf %377, %381 : vector<16x128xf32>
      %c1_102 = arith.constant 1 : index
      %c21_103 = arith.constant 21 : index
      %383 = memref.load %arg5[%c1_102, %c21_103] : memref<2x49xf32, #tpu.memory_space<smem>>
      %384 = vector.extract_strided_slice %112 {offsets = [3, 0], sizes = [16, 128], strides = [1, 1]} : vector<22x128xf32> to vector<16x128xf32>
      %385 = vector.broadcast %383 : f32 to vector<16x128xf32>
      %386 = arith.mulf %385, %384 : vector<16x128xf32>
      %387 = arith.addf %382, %386 : vector<16x128xf32>
      %c1_104 = arith.constant 1 : index
      %c28_105 = arith.constant 28 : index
      %388 = memref.load %arg5[%c1_104, %c28_105] : memref<2x49xf32, #tpu.memory_space<smem>>
      %389 = vector.extract_strided_slice %112 {offsets = [4, 0], sizes = [16, 128], strides = [1, 1]} : vector<22x128xf32> to vector<16x128xf32>
      %390 = vector.broadcast %388 : f32 to vector<16x128xf32>
      %391 = arith.mulf %390, %389 : vector<16x128xf32>
      %392 = arith.addf %387, %391 : vector<16x128xf32>
      %c1_106 = arith.constant 1 : index
      %c35_107 = arith.constant 35 : index
      %393 = memref.load %arg5[%c1_106, %c35_107] : memref<2x49xf32, #tpu.memory_space<smem>>
      %394 = vector.extract_strided_slice %112 {offsets = [5, 0], sizes = [16, 128], strides = [1, 1]} : vector<22x128xf32> to vector<16x128xf32>
      %395 = vector.broadcast %393 : f32 to vector<16x128xf32>
      %396 = arith.mulf %395, %394 : vector<16x128xf32>
      %397 = arith.addf %392, %396 : vector<16x128xf32>
      %c1_108 = arith.constant 1 : index
      %c42_109 = arith.constant 42 : index
      %398 = memref.load %arg5[%c1_108, %c42_109] : memref<2x49xf32, #tpu.memory_space<smem>>
      %399 = vector.extract_strided_slice %112 {offsets = [6, 0], sizes = [16, 128], strides = [1, 1]} : vector<22x128xf32> to vector<16x128xf32>
      %400 = vector.broadcast %398 : f32 to vector<16x128xf32>
      %401 = arith.mulf %400, %399 : vector<16x128xf32>
      %402 = arith.addf %397, %401 : vector<16x128xf32>
      %c127_i32_110 = arith.constant 127 : i32
      %403 = tpu.dynamic_rotate %112 by %c127_i32_110 dim 1 : vector<22x128xf32>, i32 -> vector<22x128xf32>
      %c1_111 = arith.constant 1 : index
      %c1_112 = arith.constant 1 : index
      %404 = memref.load %arg5[%c1_111, %c1_112] : memref<2x49xf32, #tpu.memory_space<smem>>
      %405 = vector.extract_strided_slice %403 {offsets = [0, 0], sizes = [16, 128], strides = [1, 1]} : vector<22x128xf32> to vector<16x128xf32>
      %406 = vector.broadcast %404 : f32 to vector<16x128xf32>
      %407 = arith.mulf %406, %405 : vector<16x128xf32>
      %408 = arith.addf %402, %407 : vector<16x128xf32>
      %c1_113 = arith.constant 1 : index
      %c8_114 = arith.constant 8 : index
      %409 = memref.load %arg5[%c1_113, %c8_114] : memref<2x49xf32, #tpu.memory_space<smem>>
      %410 = vector.extract_strided_slice %403 {offsets = [1, 0], sizes = [16, 128], strides = [1, 1]} : vector<22x128xf32> to vector<16x128xf32>
      %411 = vector.broadcast %409 : f32 to vector<16x128xf32>
      %412 = arith.mulf %411, %410 : vector<16x128xf32>
      %413 = arith.addf %408, %412 : vector<16x128xf32>
      %c1_115 = arith.constant 1 : index
      %c15_116 = arith.constant 15 : index
      %414 = memref.load %arg5[%c1_115, %c15_116] : memref<2x49xf32, #tpu.memory_space<smem>>
      %415 = vector.extract_strided_slice %403 {offsets = [2, 0], sizes = [16, 128], strides = [1, 1]} : vector<22x128xf32> to vector<16x128xf32>
      %416 = vector.broadcast %414 : f32 to vector<16x128xf32>
      %417 = arith.mulf %416, %415 : vector<16x128xf32>
      %418 = arith.addf %413, %417 : vector<16x128xf32>
      %c1_117 = arith.constant 1 : index
      %c22_118 = arith.constant 22 : index
      %419 = memref.load %arg5[%c1_117, %c22_118] : memref<2x49xf32, #tpu.memory_space<smem>>
      %420 = vector.extract_strided_slice %403 {offsets = [3, 0], sizes = [16, 128], strides = [1, 1]} : vector<22x128xf32> to vector<16x128xf32>
      %421 = vector.broadcast %419 : f32 to vector<16x128xf32>
      %422 = arith.mulf %421, %420 : vector<16x128xf32>
      %423 = arith.addf %418, %422 : vector<16x128xf32>
      %c1_119 = arith.constant 1 : index
      %c29_120 = arith.constant 29 : index
      %424 = memref.load %arg5[%c1_119, %c29_120] : memref<2x49xf32, #tpu.memory_space<smem>>
      %425 = vector.extract_strided_slice %403 {offsets = [4, 0], sizes = [16, 128], strides = [1, 1]} : vector<22x128xf32> to vector<16x128xf32>
      %426 = vector.broadcast %424 : f32 to vector<16x128xf32>
      %427 = arith.mulf %426, %425 : vector<16x128xf32>
      %428 = arith.addf %423, %427 : vector<16x128xf32>
      %c1_121 = arith.constant 1 : index
      %c36_122 = arith.constant 36 : index
      %429 = memref.load %arg5[%c1_121, %c36_122] : memref<2x49xf32, #tpu.memory_space<smem>>
      %430 = vector.extract_strided_slice %403 {offsets = [5, 0], sizes = [16, 128], strides = [1, 1]} : vector<22x128xf32> to vector<16x128xf32>
      %431 = vector.broadcast %429 : f32 to vector<16x128xf32>
      %432 = arith.mulf %431, %430 : vector<16x128xf32>
      %433 = arith.addf %428, %432 : vector<16x128xf32>
      %c1_123 = arith.constant 1 : index
      %c43_124 = arith.constant 43 : index
      %434 = memref.load %arg5[%c1_123, %c43_124] : memref<2x49xf32, #tpu.memory_space<smem>>
      %435 = vector.extract_strided_slice %403 {offsets = [6, 0], sizes = [16, 128], strides = [1, 1]} : vector<22x128xf32> to vector<16x128xf32>
      %436 = vector.broadcast %434 : f32 to vector<16x128xf32>
      %437 = arith.mulf %436, %435 : vector<16x128xf32>
      %438 = arith.addf %433, %437 : vector<16x128xf32>
      %c126_i32_125 = arith.constant 126 : i32
      %439 = tpu.dynamic_rotate %112 by %c126_i32_125 dim 1 : vector<22x128xf32>, i32 -> vector<22x128xf32>
      %c1_126 = arith.constant 1 : index
      %c2_127 = arith.constant 2 : index
      %440 = memref.load %arg5[%c1_126, %c2_127] : memref<2x49xf32, #tpu.memory_space<smem>>
      %441 = vector.extract_strided_slice %439 {offsets = [0, 0], sizes = [16, 128], strides = [1, 1]} : vector<22x128xf32> to vector<16x128xf32>
      %442 = vector.broadcast %440 : f32 to vector<16x128xf32>
      %443 = arith.mulf %442, %441 : vector<16x128xf32>
      %444 = arith.addf %438, %443 : vector<16x128xf32>
      %c1_128 = arith.constant 1 : index
      %c9_129 = arith.constant 9 : index
      %445 = memref.load %arg5[%c1_128, %c9_129] : memref<2x49xf32, #tpu.memory_space<smem>>
      %446 = vector.extract_strided_slice %439 {offsets = [1, 0], sizes = [16, 128], strides = [1, 1]} : vector<22x128xf32> to vector<16x128xf32>
      %447 = vector.broadcast %445 : f32 to vector<16x128xf32>
      %448 = arith.mulf %447, %446 : vector<16x128xf32>
      %449 = arith.addf %444, %448 : vector<16x128xf32>
      %c1_130 = arith.constant 1 : index
      %c16_131 = arith.constant 16 : index
      %450 = memref.load %arg5[%c1_130, %c16_131] : memref<2x49xf32, #tpu.memory_space<smem>>
      %451 = vector.extract_strided_slice %439 {offsets = [2, 0], sizes = [16, 128], strides = [1, 1]} : vector<22x128xf32> to vector<16x128xf32>
      %452 = vector.broadcast %450 : f32 to vector<16x128xf32>
      %453 = arith.mulf %452, %451 : vector<16x128xf32>
      %454 = arith.addf %449, %453 : vector<16x128xf32>
      %c1_132 = arith.constant 1 : index
      %c23_133 = arith.constant 23 : index
      %455 = memref.load %arg5[%c1_132, %c23_133] : memref<2x49xf32, #tpu.memory_space<smem>>
      %456 = vector.extract_strided_slice %439 {offsets = [3, 0], sizes = [16, 128], strides = [1, 1]} : vector<22x128xf32> to vector<16x128xf32>
      %457 = vector.broadcast %455 : f32 to vector<16x128xf32>
      %458 = arith.mulf %457, %456 : vector<16x128xf32>
      %459 = arith.addf %454, %458 : vector<16x128xf32>
      %c1_134 = arith.constant 1 : index
      %c30_135 = arith.constant 30 : index
      %460 = memref.load %arg5[%c1_134, %c30_135] : memref<2x49xf32, #tpu.memory_space<smem>>
      %461 = vector.extract_strided_slice %439 {offsets = [4, 0], sizes = [16, 128], strides = [1, 1]} : vector<22x128xf32> to vector<16x128xf32>
      %462 = vector.broadcast %460 : f32 to vector<16x128xf32>
      %463 = arith.mulf %462, %461 : vector<16x128xf32>
      %464 = arith.addf %459, %463 : vector<16x128xf32>
      %c1_136 = arith.constant 1 : index
      %c37_137 = arith.constant 37 : index
      %465 = memref.load %arg5[%c1_136, %c37_137] : memref<2x49xf32, #tpu.memory_space<smem>>
      %466 = vector.extract_strided_slice %439 {offsets = [5, 0], sizes = [16, 128], strides = [1, 1]} : vector<22x128xf32> to vector<16x128xf32>
      %467 = vector.broadcast %465 : f32 to vector<16x128xf32>
      %468 = arith.mulf %467, %466 : vector<16x128xf32>
      %469 = arith.addf %464, %468 : vector<16x128xf32>
      %c1_138 = arith.constant 1 : index
      %c44_139 = arith.constant 44 : index
      %470 = memref.load %arg5[%c1_138, %c44_139] : memref<2x49xf32, #tpu.memory_space<smem>>
      %471 = vector.extract_strided_slice %439 {offsets = [6, 0], sizes = [16, 128], strides = [1, 1]} : vector<22x128xf32> to vector<16x128xf32>
      %472 = vector.broadcast %470 : f32 to vector<16x128xf32>
      %473 = arith.mulf %472, %471 : vector<16x128xf32>
      %474 = arith.addf %469, %473 : vector<16x128xf32>
      %c125_i32_140 = arith.constant 125 : i32
      %475 = tpu.dynamic_rotate %112 by %c125_i32_140 dim 1 : vector<22x128xf32>, i32 -> vector<22x128xf32>
      %c1_141 = arith.constant 1 : index
      %c3_142 = arith.constant 3 : index
      %476 = memref.load %arg5[%c1_141, %c3_142] : memref<2x49xf32, #tpu.memory_space<smem>>
      %477 = vector.extract_strided_slice %475 {offsets = [0, 0], sizes = [16, 128], strides = [1, 1]} : vector<22x128xf32> to vector<16x128xf32>
      %478 = vector.broadcast %476 : f32 to vector<16x128xf32>
      %479 = arith.mulf %478, %477 : vector<16x128xf32>
      %480 = arith.addf %474, %479 : vector<16x128xf32>
      %c1_143 = arith.constant 1 : index
      %c10_144 = arith.constant 10 : index
      %481 = memref.load %arg5[%c1_143, %c10_144] : memref<2x49xf32, #tpu.memory_space<smem>>
      %482 = vector.extract_strided_slice %475 {offsets = [1, 0], sizes = [16, 128], strides = [1, 1]} : vector<22x128xf32> to vector<16x128xf32>
      %483 = vector.broadcast %481 : f32 to vector<16x128xf32>
      %484 = arith.mulf %483, %482 : vector<16x128xf32>
      %485 = arith.addf %480, %484 : vector<16x128xf32>
      %c1_145 = arith.constant 1 : index
      %c17_146 = arith.constant 17 : index
      %486 = memref.load %arg5[%c1_145, %c17_146] : memref<2x49xf32, #tpu.memory_space<smem>>
      %487 = vector.extract_strided_slice %475 {offsets = [2, 0], sizes = [16, 128], strides = [1, 1]} : vector<22x128xf32> to vector<16x128xf32>
      %488 = vector.broadcast %486 : f32 to vector<16x128xf32>
      %489 = arith.mulf %488, %487 : vector<16x128xf32>
      %490 = arith.addf %485, %489 : vector<16x128xf32>
      %c1_147 = arith.constant 1 : index
      %c24_148 = arith.constant 24 : index
      %491 = memref.load %arg5[%c1_147, %c24_148] : memref<2x49xf32, #tpu.memory_space<smem>>
      %492 = vector.extract_strided_slice %475 {offsets = [3, 0], sizes = [16, 128], strides = [1, 1]} : vector<22x128xf32> to vector<16x128xf32>
      %493 = vector.broadcast %491 : f32 to vector<16x128xf32>
      %494 = arith.mulf %493, %492 : vector<16x128xf32>
      %495 = arith.addf %490, %494 : vector<16x128xf32>
      %c1_149 = arith.constant 1 : index
      %c31_150 = arith.constant 31 : index
      %496 = memref.load %arg5[%c1_149, %c31_150] : memref<2x49xf32, #tpu.memory_space<smem>>
      %497 = vector.extract_strided_slice %475 {offsets = [4, 0], sizes = [16, 128], strides = [1, 1]} : vector<22x128xf32> to vector<16x128xf32>
      %498 = vector.broadcast %496 : f32 to vector<16x128xf32>
      %499 = arith.mulf %498, %497 : vector<16x128xf32>
      %500 = arith.addf %495, %499 : vector<16x128xf32>
      %c1_151 = arith.constant 1 : index
      %c38_152 = arith.constant 38 : index
      %501 = memref.load %arg5[%c1_151, %c38_152] : memref<2x49xf32, #tpu.memory_space<smem>>
      %502 = vector.extract_strided_slice %475 {offsets = [5, 0], sizes = [16, 128], strides = [1, 1]} : vector<22x128xf32> to vector<16x128xf32>
      %503 = vector.broadcast %501 : f32 to vector<16x128xf32>
      %504 = arith.mulf %503, %502 : vector<16x128xf32>
      %505 = arith.addf %500, %504 : vector<16x128xf32>
      %c1_153 = arith.constant 1 : index
      %c45_154 = arith.constant 45 : index
      %506 = memref.load %arg5[%c1_153, %c45_154] : memref<2x49xf32, #tpu.memory_space<smem>>
      %507 = vector.extract_strided_slice %475 {offsets = [6, 0], sizes = [16, 128], strides = [1, 1]} : vector<22x128xf32> to vector<16x128xf32>
      %508 = vector.broadcast %506 : f32 to vector<16x128xf32>
      %509 = arith.mulf %508, %507 : vector<16x128xf32>
      %510 = arith.addf %505, %509 : vector<16x128xf32>
      %c124_i32_155 = arith.constant 124 : i32
      %511 = tpu.dynamic_rotate %112 by %c124_i32_155 dim 1 : vector<22x128xf32>, i32 -> vector<22x128xf32>
      %c1_156 = arith.constant 1 : index
      %c4_157 = arith.constant 4 : index
      %512 = memref.load %arg5[%c1_156, %c4_157] : memref<2x49xf32, #tpu.memory_space<smem>>
      %513 = vector.extract_strided_slice %511 {offsets = [0, 0], sizes = [16, 128], strides = [1, 1]} : vector<22x128xf32> to vector<16x128xf32>
      %514 = vector.broadcast %512 : f32 to vector<16x128xf32>
      %515 = arith.mulf %514, %513 : vector<16x128xf32>
      %516 = arith.addf %510, %515 : vector<16x128xf32>
      %c1_158 = arith.constant 1 : index
      %c11_159 = arith.constant 11 : index
      %517 = memref.load %arg5[%c1_158, %c11_159] : memref<2x49xf32, #tpu.memory_space<smem>>
      %518 = vector.extract_strided_slice %511 {offsets = [1, 0], sizes = [16, 128], strides = [1, 1]} : vector<22x128xf32> to vector<16x128xf32>
      %519 = vector.broadcast %517 : f32 to vector<16x128xf32>
      %520 = arith.mulf %519, %518 : vector<16x128xf32>
      %521 = arith.addf %516, %520 : vector<16x128xf32>
      %c1_160 = arith.constant 1 : index
      %c18_161 = arith.constant 18 : index
      %522 = memref.load %arg5[%c1_160, %c18_161] : memref<2x49xf32, #tpu.memory_space<smem>>
      %523 = vector.extract_strided_slice %511 {offsets = [2, 0], sizes = [16, 128], strides = [1, 1]} : vector<22x128xf32> to vector<16x128xf32>
      %524 = vector.broadcast %522 : f32 to vector<16x128xf32>
      %525 = arith.mulf %524, %523 : vector<16x128xf32>
      %526 = arith.addf %521, %525 : vector<16x128xf32>
      %c1_162 = arith.constant 1 : index
      %c25_163 = arith.constant 25 : index
      %527 = memref.load %arg5[%c1_162, %c25_163] : memref<2x49xf32, #tpu.memory_space<smem>>
      %528 = vector.extract_strided_slice %511 {offsets = [3, 0], sizes = [16, 128], strides = [1, 1]} : vector<22x128xf32> to vector<16x128xf32>
      %529 = vector.broadcast %527 : f32 to vector<16x128xf32>
      %530 = arith.mulf %529, %528 : vector<16x128xf32>
      %531 = arith.addf %526, %530 : vector<16x128xf32>
      %c1_164 = arith.constant 1 : index
      %c32_165 = arith.constant 32 : index
      %532 = memref.load %arg5[%c1_164, %c32_165] : memref<2x49xf32, #tpu.memory_space<smem>>
      %533 = vector.extract_strided_slice %511 {offsets = [4, 0], sizes = [16, 128], strides = [1, 1]} : vector<22x128xf32> to vector<16x128xf32>
      %534 = vector.broadcast %532 : f32 to vector<16x128xf32>
      %535 = arith.mulf %534, %533 : vector<16x128xf32>
      %536 = arith.addf %531, %535 : vector<16x128xf32>
      %c1_166 = arith.constant 1 : index
      %c39_167 = arith.constant 39 : index
      %537 = memref.load %arg5[%c1_166, %c39_167] : memref<2x49xf32, #tpu.memory_space<smem>>
      %538 = vector.extract_strided_slice %511 {offsets = [5, 0], sizes = [16, 128], strides = [1, 1]} : vector<22x128xf32> to vector<16x128xf32>
      %539 = vector.broadcast %537 : f32 to vector<16x128xf32>
      %540 = arith.mulf %539, %538 : vector<16x128xf32>
      %541 = arith.addf %536, %540 : vector<16x128xf32>
      %c1_168 = arith.constant 1 : index
      %c46_169 = arith.constant 46 : index
      %542 = memref.load %arg5[%c1_168, %c46_169] : memref<2x49xf32, #tpu.memory_space<smem>>
      %543 = vector.extract_strided_slice %511 {offsets = [6, 0], sizes = [16, 128], strides = [1, 1]} : vector<22x128xf32> to vector<16x128xf32>
      %544 = vector.broadcast %542 : f32 to vector<16x128xf32>
      %545 = arith.mulf %544, %543 : vector<16x128xf32>
      %546 = arith.addf %541, %545 : vector<16x128xf32>
      %c123_i32_170 = arith.constant 123 : i32
      %547 = tpu.dynamic_rotate %112 by %c123_i32_170 dim 1 : vector<22x128xf32>, i32 -> vector<22x128xf32>
      %c1_171 = arith.constant 1 : index
      %c5_172 = arith.constant 5 : index
      %548 = memref.load %arg5[%c1_171, %c5_172] : memref<2x49xf32, #tpu.memory_space<smem>>
      %549 = vector.extract_strided_slice %547 {offsets = [0, 0], sizes = [16, 128], strides = [1, 1]} : vector<22x128xf32> to vector<16x128xf32>
      %550 = vector.broadcast %548 : f32 to vector<16x128xf32>
      %551 = arith.mulf %550, %549 : vector<16x128xf32>
      %552 = arith.addf %546, %551 : vector<16x128xf32>
      %c1_173 = arith.constant 1 : index
      %c12_174 = arith.constant 12 : index
      %553 = memref.load %arg5[%c1_173, %c12_174] : memref<2x49xf32, #tpu.memory_space<smem>>
      %554 = vector.extract_strided_slice %547 {offsets = [1, 0], sizes = [16, 128], strides = [1, 1]} : vector<22x128xf32> to vector<16x128xf32>
      %555 = vector.broadcast %553 : f32 to vector<16x128xf32>
      %556 = arith.mulf %555, %554 : vector<16x128xf32>
      %557 = arith.addf %552, %556 : vector<16x128xf32>
      %c1_175 = arith.constant 1 : index
      %c19_176 = arith.constant 19 : index
      %558 = memref.load %arg5[%c1_175, %c19_176] : memref<2x49xf32, #tpu.memory_space<smem>>
      %559 = vector.extract_strided_slice %547 {offsets = [2, 0], sizes = [16, 128], strides = [1, 1]} : vector<22x128xf32> to vector<16x128xf32>
      %560 = vector.broadcast %558 : f32 to vector<16x128xf32>
      %561 = arith.mulf %560, %559 : vector<16x128xf32>
      %562 = arith.addf %557, %561 : vector<16x128xf32>
      %c1_177 = arith.constant 1 : index
      %c26_178 = arith.constant 26 : index
      %563 = memref.load %arg5[%c1_177, %c26_178] : memref<2x49xf32, #tpu.memory_space<smem>>
      %564 = vector.extract_strided_slice %547 {offsets = [3, 0], sizes = [16, 128], strides = [1, 1]} : vector<22x128xf32> to vector<16x128xf32>
      %565 = vector.broadcast %563 : f32 to vector<16x128xf32>
      %566 = arith.mulf %565, %564 : vector<16x128xf32>
      %567 = arith.addf %562, %566 : vector<16x128xf32>
      %c1_179 = arith.constant 1 : index
      %c33_180 = arith.constant 33 : index
      %568 = memref.load %arg5[%c1_179, %c33_180] : memref<2x49xf32, #tpu.memory_space<smem>>
      %569 = vector.extract_strided_slice %547 {offsets = [4, 0], sizes = [16, 128], strides = [1, 1]} : vector<22x128xf32> to vector<16x128xf32>
      %570 = vector.broadcast %568 : f32 to vector<16x128xf32>
      %571 = arith.mulf %570, %569 : vector<16x128xf32>
      %572 = arith.addf %567, %571 : vector<16x128xf32>
      %c1_181 = arith.constant 1 : index
      %c40_182 = arith.constant 40 : index
      %573 = memref.load %arg5[%c1_181, %c40_182] : memref<2x49xf32, #tpu.memory_space<smem>>
      %574 = vector.extract_strided_slice %547 {offsets = [5, 0], sizes = [16, 128], strides = [1, 1]} : vector<22x128xf32> to vector<16x128xf32>
      %575 = vector.broadcast %573 : f32 to vector<16x128xf32>
      %576 = arith.mulf %575, %574 : vector<16x128xf32>
      %577 = arith.addf %572, %576 : vector<16x128xf32>
      %c1_183 = arith.constant 1 : index
      %c47_184 = arith.constant 47 : index
      %578 = memref.load %arg5[%c1_183, %c47_184] : memref<2x49xf32, #tpu.memory_space<smem>>
      %579 = vector.extract_strided_slice %547 {offsets = [6, 0], sizes = [16, 128], strides = [1, 1]} : vector<22x128xf32> to vector<16x128xf32>
      %580 = vector.broadcast %578 : f32 to vector<16x128xf32>
      %581 = arith.mulf %580, %579 : vector<16x128xf32>
      %582 = arith.addf %577, %581 : vector<16x128xf32>
      %c122_i32_185 = arith.constant 122 : i32
      %583 = tpu.dynamic_rotate %112 by %c122_i32_185 dim 1 : vector<22x128xf32>, i32 -> vector<22x128xf32>
      %c1_186 = arith.constant 1 : index
      %c6_187 = arith.constant 6 : index
      %584 = memref.load %arg5[%c1_186, %c6_187] : memref<2x49xf32, #tpu.memory_space<smem>>
      %585 = vector.extract_strided_slice %583 {offsets = [0, 0], sizes = [16, 128], strides = [1, 1]} : vector<22x128xf32> to vector<16x128xf32>
      %586 = vector.broadcast %584 : f32 to vector<16x128xf32>
      %587 = arith.mulf %586, %585 : vector<16x128xf32>
      %588 = arith.addf %582, %587 : vector<16x128xf32>
      %c1_188 = arith.constant 1 : index
      %c13_189 = arith.constant 13 : index
      %589 = memref.load %arg5[%c1_188, %c13_189] : memref<2x49xf32, #tpu.memory_space<smem>>
      %590 = vector.extract_strided_slice %583 {offsets = [1, 0], sizes = [16, 128], strides = [1, 1]} : vector<22x128xf32> to vector<16x128xf32>
      %591 = vector.broadcast %589 : f32 to vector<16x128xf32>
      %592 = arith.mulf %591, %590 : vector<16x128xf32>
      %593 = arith.addf %588, %592 : vector<16x128xf32>
      %c1_190 = arith.constant 1 : index
      %c20_191 = arith.constant 20 : index
      %594 = memref.load %arg5[%c1_190, %c20_191] : memref<2x49xf32, #tpu.memory_space<smem>>
      %595 = vector.extract_strided_slice %583 {offsets = [2, 0], sizes = [16, 128], strides = [1, 1]} : vector<22x128xf32> to vector<16x128xf32>
      %596 = vector.broadcast %594 : f32 to vector<16x128xf32>
      %597 = arith.mulf %596, %595 : vector<16x128xf32>
      %598 = arith.addf %593, %597 : vector<16x128xf32>
      %c1_192 = arith.constant 1 : index
      %c27_193 = arith.constant 27 : index
      %599 = memref.load %arg5[%c1_192, %c27_193] : memref<2x49xf32, #tpu.memory_space<smem>>
      %600 = vector.extract_strided_slice %583 {offsets = [3, 0], sizes = [16, 128], strides = [1, 1]} : vector<22x128xf32> to vector<16x128xf32>
      %601 = vector.broadcast %599 : f32 to vector<16x128xf32>
      %602 = arith.mulf %601, %600 : vector<16x128xf32>
      %603 = arith.addf %598, %602 : vector<16x128xf32>
      %c1_194 = arith.constant 1 : index
      %c34_195 = arith.constant 34 : index
      %604 = memref.load %arg5[%c1_194, %c34_195] : memref<2x49xf32, #tpu.memory_space<smem>>
      %605 = vector.extract_strided_slice %583 {offsets = [4, 0], sizes = [16, 128], strides = [1, 1]} : vector<22x128xf32> to vector<16x128xf32>
      %606 = vector.broadcast %604 : f32 to vector<16x128xf32>
      %607 = arith.mulf %606, %605 : vector<16x128xf32>
      %608 = arith.addf %603, %607 : vector<16x128xf32>
      %c1_196 = arith.constant 1 : index
      %c41_197 = arith.constant 41 : index
      %609 = memref.load %arg5[%c1_196, %c41_197] : memref<2x49xf32, #tpu.memory_space<smem>>
      %610 = vector.extract_strided_slice %583 {offsets = [5, 0], sizes = [16, 128], strides = [1, 1]} : vector<22x128xf32> to vector<16x128xf32>
      %611 = vector.broadcast %609 : f32 to vector<16x128xf32>
      %612 = arith.mulf %611, %610 : vector<16x128xf32>
      %613 = arith.addf %608, %612 : vector<16x128xf32>
      %c1_198 = arith.constant 1 : index
      %c48_199 = arith.constant 48 : index
      %614 = memref.load %arg5[%c1_198, %c48_199] : memref<2x49xf32, #tpu.memory_space<smem>>
      %615 = vector.extract_strided_slice %583 {offsets = [6, 0], sizes = [16, 128], strides = [1, 1]} : vector<22x128xf32> to vector<16x128xf32>
      %616 = vector.broadcast %614 : f32 to vector<16x128xf32>
      %617 = arith.mulf %616, %615 : vector<16x128xf32>
      %618 = arith.addf %613, %617 : vector<16x128xf32>
      %c0_200 = arith.constant 0 : index
      %c0_201 = arith.constant 0 : index
      %c0_202 = arith.constant 0 : index
      %c0_203 = arith.constant 0 : index
      %619 = vector.load %arg7[%c0_200, %c0_201, %c0_202, %c0_203] : memref<1x1x16x128xf32, #tpu.memory_space<vmem>>, vector<1x1x16x128xf32>
      %620 = vector.shape_cast %619 : vector<1x1x16x128xf32> to vector<16x128xf32>
      %621 = vector.shape_cast %618 : vector<16x128xf32> to vector<1x1x16x128xf32>
      tpu.vector_store %arg7[%c0_200, %c0_201, %c0_202, %c0_203], %621 {strides = array<i32>} : memref<1x1x16x128xf32, #tpu.memory_space<vmem>>, vector<1x1x16x128xf32>,
    } else {
    }
    return
  }
  func.func @transform_0(%arg0: i32, %arg1: i32) -> (i32, i32, i32, i32) {
    %c0_i32 = arith.constant 0 : i32
    %c0_i32_0 = arith.constant 0 : i32
    %c0_i32_1 = arith.constant 0 : i32
    return %arg0, %arg1, %c0_i32, %c0_i32_0 : i32, i32, i32, i32
  }
  func.func @transform_1(%arg0: i32, %arg1: i32) -> (i32, i32) {
    %c0_i32 = arith.constant 0 : i32
    %c0_i32_0 = arith.constant 0 : i32
    %c0_i32_1 = arith.constant 0 : i32
    return %c0_i32, %c0_i32_0 : i32, i32
  }
  func.func @transform_2(%arg0: i32, %arg1: i32) -> i32 {
    %c0_i32 = arith.constant 0 : i32
    %c0_i32_0 = arith.constant 0 : i32
    return %c0_i32 : i32
  }
  func.func @transform_3(%arg0: i32, %arg1: i32) -> (i32, i32) {
    %c0_i32 = arith.constant 0 : i32
    %c0_i32_0 = arith.constant 0 : i32
    %c0_i32_1 = arith.constant 0 : i32
    return %c0_i32, %c0_i32_0 : i32, i32
  }
  func.func @transform_4(%arg0: i32, %arg1: i32) -> i32 {
    %c0_i32 = arith.constant 0 : i32
    %c0_i32_0 = arith.constant 0 : i32
    return %c0_i32 : i32
  }
  func.func @transform_5(%arg0: i32, %arg1: i32) -> (i32, i32, i32, i32) {
    %c0_i32 = arith.constant 0 : i32
    %c0_i32_0 = arith.constant 0 : i32
    %c0_i32_1 = arith.constant 0 : i32
    %c0_i32_2 = arith.constant 0 : i32
    return %arg0, %c0_i32, %c0_i32_0, %c0_i32_1 : i32, i32, i32, i32
  }
}

</mosaic_0001>

<bundles_post_ra>
// kernel: tpu_custom_call.1
= control target key start
LH: loop header
LB: loop body
LE: loop exit
PB: predicated region body
PF: predicated region fallthrough
CT: control target
= control target key end

     0   :  { %s4263_s0 = inlined_call_operand.hbm [shape: f32[2,4,16,16], index: 0, kind: input, shape index: {}]   ;;  %s4264_s1 = inlined_call_operand.vmem [shape: f32[2,2], index: 1, kind: input, shape index: {}]   ;;  %s4265_s2 = inlined_call_operand.vmem [shape: f32[2], index: 2, kind: input, shape index: {}]   ;;  %s4266_s3 = inlined_call_operand.vmem [shape: f32[2,49], index: 3, kind: input, shape index: {}]   ;;  %s4267_s4 = inlined_call_operand.<no memory space> [shape: f32[1], index: 4, kind: input, shape index: {}]   ;;  %s4268_s5 = inlined_call_operand.hbm [shape: f32[2,1,16,128], index: 5, kind: output, shape index: {}]  }
   0x1   :  { %4326 = sst [smem:[#allocation62_spill]] %s4263_s0 }
   0x2   :  { %4327 = sst [smem:[#allocation63_spill]] %s4264_s1 }
   0x3   :  { %4328 = sst [smem:[#allocation64_spill]] %s4265_s2 }
   0x4   :  { %4329 = sst [smem:[#allocation65_spill]] %s4266_s3 }
   0x5   :  { %4330 = sst [smem:[#allocation66_spill]] %s4268_s5 }
   0x6   :  { %10 = sst [smem:[#allocation4]] %s4267_s4 }
   0x7   :  { %11 = vsyncpa [#allocation6], 0 }
   0x8   :  { %13 = vsyncpa [#allocation6 + $0x1], 0 }
   0x9   :  { %14 = vsyncpa [#allocation8], 0 }
   0xa   :  { %15 = vsyncpa [#allocation11], 0 }
   0xb   :  { %16 = vsyncpa [#allocation7], 0 }
   0xc   :  { %18 = vsyncpa [#allocation7 + $0x1], 0  ;;  %s2726_s20 = smov 0   ;;  %s2728_s21 = smov 0  }
   0xd   :  { %s2730_s22 = smov 0   ;;  %s2732_s23 = smov 0  }
   0xe   :  { %s2734_s24 = smov 0   ;;  %s2736_s25 = smov 0  }
   0xf LB: > { %4331 = sst [smem:[#allocation18_spill]] %s2651_s20  ;;  %s2278_s4 = sadd.s32 4294967295, %s2671_s25   ;;  %s2671_s25 = sphi %s2736_s25, %s24_s25   ;;  %s2667_s24 = sphi %s2734_s24, %s4458_s24   ;;  %s2663_s23 = sphi %s2732_s23, %s4457_s23   ;;  %s2659_s22 = sphi %s2730_s22, %s4456_s22   ;;  %s2655_s21 = sphi %s2728_s21, %s4455_s21   ;;  %s2651_s20 = sphi %s2726_s20, %s4454_s20  }
  0x10   : > { %4332 = sst [smem:[#allocation19_spill]] %s2655_s21  ;;  %s2279_s26 = sadd.s32 4294967294, %s2671_s25  }
  0x11   : > { %4333 = sst [smem:[#allocation20_spill]] %s2659_s22  ;;  %p58_p0 = scmp.ne.s32.totalorder %s2655_s21, %s2651_s20 }
  0x12   : > { %4334 = sst [smem:[#allocation21_spill]] %s2663_s23  ;;  %p2760_p1 = scmp.eq.s32.totalorder %s2278_s4, 0 }
  0x13   : > { %4335 = sst [smem:[#allocation22_spill]] %s2667_s24  ;;  %p2764_p2 = scmp.eq.s32.totalorder %s2278_s4, 1 }
  0x14   : > { %4336 = sst [smem:[#allocation23_spill]] %s2671_s25  ;;  %p172_p3 = scmp.eq.s32.totalorder %s2279_s26, 1 }
  0x15   : > { %s4337_s27 = scalar_select %p2760_p1, 1, 0 }
  0x16   : > { %s4338_s28 = scalar_select %p2764_p2, 1, 0 }
  0x17   : > { %p2770_p4 = por %p2760_p1, %p58_p0  ;;  %p2280_p5 = scmp.ge.s32.totalorder %s2671_s25, 1 }
  0x18   : > { %p2775_p6 = por %p172_p3, %p58_p0  ;;  %p179_p7 = scmp.lt.s32.totalorder %s2671_s25, 3 }
  0x19   : > { %s4339_s29 = scalar_select %p2770_p4, 1, 0 }
  0x1a   : > { %s4340_s30 = scalar_select %p2775_p6, 1, 0 }
  0x1b   : > { %s4342_s2 = sld [smem:[#allocation64_spill]]  ;;  %p2783_p8 = pnand %p2280_p5, %p179_p7 }
  0x1c   : > { %4341 = sst [smem:[#allocation24_spill]] %s4340_s30 }
  0x1d   : > { %s4343_s9 = scalar_select %p2783_p8, 1, 0 }
  0x1e   : > { %p2418_p10 = pneg %p2783_p8  ;;  %s4344_s1 = sld [smem:[#allocation63_spill]] }
  0x1f   : > { %s4346_s3 = sld [smem:[#allocation65_spill]] }
  0x20   : > { %p2795_p11 = pnand %p2418_p10, %p2760_p1 }
  0x21   : > { %s203_s8 = sshll.u32 %s4342_s2, 4  ;;  %s204_s8 = int_to_ptr.vmem [resolvable:$true] %s203_s8 }
  0x22   : > { %s2510_s17 = scalar_lea.vmem %s204_s8, 16  ;;  %p2512_p13 = pneg %p2795_p11 }
  0x23   : > { %p2511_p12 = scmp.ne.s32.totalorder %s204_s8, %s2510_s17  ;;  %p2518_p5 = scmp.lt.s32.totalorder %s204_s8, %s204_s8 }
  0x24   : > { %s192_s12 = sshll.u32 %s4344_s1, 4  ;;  %p2519_p7 = scmp.lt.s32.totalorder %s2510_s17, %s2510_s17  ;;  %s193_s12 = int_to_ptr.vmem [resolvable:$true] %s192_s12 }
  0x25   : > { %s214_s16 = sshll.u32 %s4346_s3, 4  ;;  %p2513_p0 = pnand %p2512_p13, %p2511_p12  ;;  %s2802_s16 = int_to_ptr.vmem [resolvable:$true] %s214_s16 }
  0x26   : > { %p2520_p10 = por %p2519_p7, %p2518_p5 }
  0x27   : > { %p2514_p3 = pneg %p2513_p0 }
  0x29   : > { %p2521_p9 = pnand %p2520_p10, %p2514_p3 }
  0x2b   : > { %2524 = shalt.err (!%p2521_p9)
}
  0x2c   : > { %s2673_s18 = smov [#allocation10]   ;;  %s2525_s19 = scalar_lea.vmem %s193_s12, 32 }
  0x2d   : > { %2424 = dma.vmem_to_smem (!%p2795_p11), %s204_s8, 16, %s2673_s18, [#allocation11]  }
  0x2e   : > { %p2526_p6 = scmp.ne.s32.totalorder %s193_s12, %s2525_s19  ;;  %p2533_p8 = scmp.lt.s32.totalorder %s193_s12, %s193_s12 }
  0x2f   : > { %p2534_p2 = scmp.lt.s32.totalorder %s2525_s19, %s2525_s19 }
  0x30   : > { %p2528_p1 = pnand %p2526_p6, %p2512_p13 }
  0x31   : > { %p2535_p12 = por %p2534_p2, %p2533_p8 }
  0x32   : > { %p2529_p4 = pneg %p2528_p1 }
  0x34   : > { %p2536_p0 = pnand %p2535_p12, %p2529_p4 }
  0x36   : > { %2539 = shalt.err (!%p2536_p0)
}
  0x37   : > { %s2674_s4 = smov [#allocation9]   ;;  %s2540_s26 = scalar_lea.vmem %s2802_s16, 32 }
  0x38   : > { %2421 = dma.vmem_to_smem (!%p2795_p11), %s193_s12, 32, %s2674_s4, [#allocation8]  }
  0x39   : > { %p2541_p9 = scmp.ne.s32.totalorder %s2802_s16, %s2540_s26  ;;  %p2548_p1 = scmp.lt.s32.totalorder %s2802_s16, %s2802_s16 }
  0x3a   : > { %p2549_p5 = scmp.lt.s32.totalorder %s2540_s26, %s2540_s26 }
  0x3b   : > { %p2543_p3 = pnand %p2541_p9, %p2512_p13 }
  0x3c   : > { %p2550_p2 = por %p2549_p5, %p2548_p1 }
  0x3d   : > { %p2544_p6 = pneg %p2543_p3 }
  0x3f   : > { %p2551_p4 = pnand %p2550_p2, %p2544_p6 }
  0x41   : > { %2554 = shalt.err (!%p2551_p4)
}
  0x42   : > { %s2675_s6 = smov [#allocation12]   ;;  %s45_s7 = sadd.s32 1, %s2659_s22 }
  0x43   : > { %2427 = dma.vmem_to_smem (!%p2795_p11), %s2802_s16, 32, %s2675_s6, [#allocation11]  }
  0x44   : > { %s36_s8 = sadd.s32 1, %s2667_s24  ;;  %p52_p8 = scmp.ne.s32.totalorder %s2659_s22, %s2655_s21 }
  0x45   : > { %p38_p13 = scmp.ge.s32.totalorder %s36_s8, 2  ;;  %p53_p7 = scmp.eq.s32.totalorder %s2671_s25, 0 }
  0x46   : > { %p4347_p10 = scmp.ne.s32.totalorder %s4338_s28, 0  ;;  %p2439_p0 = scmp.lt.s32.totalorder %s2671_s25, 2 }
  0x47   : > { %s4460_s8 = smov (%p38_p13, %s36_s8), 0  ;;  %p54_p9 = por %p53_p7, %p52_p8 }
  0x48   : > { %p2833_p12 = por %p4347_p10, %p52_p8  ;;  %4350 = sst [smem:[#allocation26_spill]] %s4460_s8 }
  0x49   : > { %s228_s11 = sand.u32 1, %s2659_s22   ;;  %s40_s12 = ssub.s32 %s2667_s24, %s4460_s8 }
  0x4a   : > { %s4348_s10 = scalar_select %p2833_p12, 1, 0 }
  0x4b   : > { %p43_p3 = scmp.eq.s32.totalorder %s40_s12, 0  ;;  %s2285_s13 = sshll.u32 %s228_s11, 6 }
  0x4c   : > { %4349 = sst [smem:[#allocation25_spill]] %s4348_s10  ;;  %s2400_s14 = sshll.u32 %s2667_s24, 10 }
  0x4d   : > { %s2845_s15 = scalar_select %p43_p3, %s2659_s22, %s45_s7  }
  0x4e   : > { %s4352_s0 = sld [smem:[#allocation62_spill]]  ;;  %s232_s18 = scalar_lea.vmem [#allocation5], %s2285_s13 }
  0x4f   : > { %4351 = sst [smem:[#allocation27_spill]] %s2845_s15  ;;  %s242_s19 = sshll.u32 %s232_s18, 4  ;;  %s243_s19 = int_to_ptr.vmem [resolvable:$true] %s242_s19 }
  0x50   : > { %p2852_p11 = pnand %p2439_p0, %p54_p9  ;;  %s229_s26 = scalar_lea.sflag [#allocation6], %s228_s11 }
  0x51   : > { %s2568_s6 = scalar_lea.vmem %s243_s19, 1024  ;;  %s2676_s7 = smov [#allocation5]  }
  0x52   : > { %p2557_p6 = pneg %p2852_p11  ;;  %p2569_p1 = scmp.ne.s32.totalorder %s243_s19, %s2568_s6 }
  0x53   : > { %s2573_s12 = sshll.u32 %s2676_s7, 4  ;;  %s2574_s12 = int_to_ptr.vmem [resolvable:$false] %s2573_s12 }
  0x54   : > { %s241_s28 = scalar_lea.hbm %s4352_s0, %s2400_s14  ;;  %p2571_p5 = pnand %p2569_p1, %p2557_p6 }
  0x55   : > { %s2575_s14 = scalar_lea.vmem %s2574_s12, 2048  ;;  %p2576_p4 = scmp.lt.s32.totalorder %s243_s19, %s2574_s12 }
  0x56   : > { %p2572_p2 = pneg %p2571_p5  ;;  %p2577_p8 = scmp.lt.s32.totalorder %s2575_s14, %s2568_s6 }
  0x58   : > { %p2578_p13 = por %p2577_p8, %p2576_p4 }
  0x5a   : > { %p2579_p7 = pnand %p2578_p13, %p2572_p2 }
  0x5c   : > { %2582 = shalt.err (!%p2579_p7)
}
  0x5d   : > { %s2677_s13 = smov 128   ;;  %s2678_s16 = smov 8  }
  0x5e   : > { %2431 = dma.hbm_to_vmem [thread:$0]  (!%p2852_p11), %s241_s28, 1024, %s243_s19, %s229_s26, %s2677_s13, %s2677_s13, %s2678_s16  }
  0x5f   : > { %p4354_p10 = scmp.ne.s32.totalorder %s4343_s9, 0 }
  0x61   : > { %254 = sbr.rel (%p4354_p10) target bundleno = 689 (0x2b1), region = 40 }
  0x66   : > { %s2863_s11 = sand.u32 1, %s2655_s21   ;;  %p4356_p0 = scmp.ne.s32.totalorder %s4339_s29, 0 }
  0x67   : > { %4355 = sst [smem:[#allocation28_spill]] %s2863_s11  ;;  %s2289_s17 = sshll.u32 %s2863_s11, 6 }
  0x68   : > { %s257_s18 = scalar_lea.sflag [#allocation6], %s2863_s11  ;;  %s260_s6 = scalar_lea.vmem [#allocation5], %s2289_s17 }
  0x69   : > { %2634 = dma.done.wait (%p4356_p0), %s257_s18, 1024  }
  0x6a   : > { %2636 = vsyncadd (%p4356_p0), %s257_s18, 4294966272  ;;  %p4357_p9 = scmp.ne.s32.totalorder %s4337_s27, 0 }
  0x6c   : > { %2638 = dma.done.wait (%p4357_p9), [#allocation8], 32  }
  0x6d   : > { %2640 = vsyncadd (%p4357_p9), [#allocation8], 4294967264 }
  0x6e   : > { %2642 = dma.done.wait (%p4357_p9), [#allocation11], 48  }
  0x6f   : > { %2644 = vsyncadd (%p4357_p9), [#allocation11], 4294967248 }
  0x70   : > { %277 = sfence }
  0x71   : > { %v302_v0 = vld [vmem:[%s260_s6 + $0x8] sm:$0xff]  ;;  %v304_v1 = vld [vmem:[%s260_s6 + $0x18] sm:$0xff]  ;;  %vm309_vm0 = vcmask 130048   ;;  %v301_v14 = vld [vmem:[%s260_s6] sm:$0xff]  ;;  %s2891_s27 = sld [smem:[#allocation9 + $0x1]]  ;;  %s4285_s28 = smov 127  }
  0x72   : > { %v306_v2 = vld [vmem:[%s260_s6 + $0x28] sm:$0xff]  ;;  %v308_v3 = vld [vmem:[%s260_s6 + $0x38] sm:$0xff]  ;;  %v317_v4 = vsel %vm309_vm0, %v302_v0, 0.0  ;;  %v318_v5 = vsel %vm309_vm0, %v304_v1, 0.0  ;;  %v331_v7 = vsel %vm309_vm0, %v302_v0, -inf  ;;  %v332_v9 = vsel %vm309_vm0, %v304_v1, -inf }
  0x73   : > { %v320_v6 = vsel %vm309_vm0, %v306_v2, 0.0  ;;  %v319_v8 = vadd.f32 %v318_v5, %v317_v4  ;;  %v333_v10 = vsel %vm309_vm0, %v306_v2, -inf  ;;  %v322_v11 = vsel %vm309_vm0, %v308_v3, 0.0  ;;  %v303_v15 = vld [vmem:[%s260_s6 + $0x10] sm:$0xff]  ;;  %v305_v18 = vld [vmem:[%s260_s6 + $0x20] sm:$0xff]  ;;  %s375_s29 = sld [smem:[#allocation9]] }
  0x74   : > { %v334_v12 = vmax.f32 %v331_v7, %v333_v10  ;;  %v335_v13 = vsel %vm309_vm0, %v308_v3, -inf  ;;  %v307_v19 = vld [vmem:[%s260_s6 + $0x30] sm:$0xff]  ;;  %v310_v20 = vsel %vm309_vm0, %v301_v14, 0.0  ;;  %v311_v21 = vsel %vm309_vm0, %v303_v15, 0.0  ;;  %s385_s9 = sld [smem:[#allocation10]]  ;;  %s2680_s19 = smov 3  }
  0x75   : > { %v321_v16 = vadd.f32 %v320_v6, %v319_v8  ;;  %v336_v17 = vmax.f32 %v332_v9, %v335_v13  ;;  %v312_v22 = vadd.f32 %v311_v21, %v310_v20  ;;  %v313_v23 = vsel %vm309_vm0, %v305_v18, 0.0  ;;  %s4279_s4 = smov 125   ;;  %s2682_s26 = smov 1  }
  0x76   : > { %v324_v24 = vsel %vm309_vm0, %v301_v14, -inf  ;;  %v315_v27 = vsel %vm309_vm0, %v307_v19, 0.0  ;;  %v325_v28 = vsel %vm309_vm0, %v303_v15, -inf  ;;  %v326_v30 = vsel %vm309_vm0, %v305_v18, -inf  ;;  %s2295_s7 = sld [smem:[#allocation9 + $0x80]]  ;;  %s2683_s14 = smov 5  }
  0x77   : > { %v323_v25 = vadd.f32 %v322_v11, %v321_v16  ;;  %v337_v26 = vmax.f32 %v334_v12, %v336_v17  ;;  %v314_v29 = vadd.f32 %v313_v23, %v312_v22  ;;  %v328_v31 = vsel %vm309_vm0, %v307_v19, -inf  ;;  %s2296_s12 = sld [smem:[#allocation9 + $0x81]]  ;;  %s2684_s13 = smov 7  }
  0x78   : > { %v327_v32 = vmax.f32 %v324_v24, %v326_v30  ;;  %v329_v33 = vmax.f32 %v325_v28, %v328_v31  ;;  %v380_v36 = vstv %s2891_s27  ;;  %s4273_s16 = smov 9   ;;  %v407_v5 = vlaneseq  ;;  %s2927_s17 = sld [smem:[#allocation12 + $0x7]] }
  0x79   : > { %343 = vst.msk [vmem:[#allocation2 + $0x8] sm:$0xff] %vm309_vm0, %v323_v25  ;;  %345 = vst.msk [vmem:[#allocation3 + $0x8] sm:$0xff] %vm309_vm0, %v337_v26  ;;  %v316_v34 = vadd.f32 %v315_v27, %v314_v29  ;;  %v376_v41 = vstv %s375_s29  ;;  %s2929_s18 = sld [smem:[#allocation10 + $0x1]]  ;;  %vm462_vm7 = vcmask 1040384   ;;  %vm464_vm8 = vcmask 1041408  }
  0x7a   : > { %v330_v35 = vmax.f32 %v327_v32, %v329_v33  ;;  %v386_v48 = vstv %s385_s9  ;;  %v2924_v8 = vand.u32 127, %v407_v5  ;;  %s2934_s6 = sld [smem:[#allocation4]]  ;;  %vm475_vm9 = vcmask 1042432  }
  0x7b   : > { %342 = vst.msk [vmem:[#allocation2] sm:$0xff] %vm309_vm0, %v316_v34  ;;  %s2937_s27 = sld [smem:[#allocation12]]  ;;  %vm573_vm10 = vcmask 1046528   ;;  %vm591_vm11 = vcmask 1045504   ;;  %vm609_vm12 = vcmask 1044480   ;;  %vm627_vm13 = vcmask 1043456  }
  0x7c   : > { %344 = vst.msk [vmem:[#allocation3] sm:$0xff] %vm309_vm0, %v330_v35  ;;  %v392_v59 = vstv %s2295_s7  ;;  %vm417_vm1 = vcmp.eq.s32.totalorder %v2924_v8, 0  ;;  %vm424_vm2 = vcmp.eq.s32.totalorder %v2924_v8, 1  ;;  %vm431_vm3 = vcmp.eq.s32.totalorder %v2924_v8, 2  ;;  %s2940_s29 = sld [smem:[#allocation12 + $0xe]] }
  0x7d   : > { %v396_v61 = vstv %s2296_s12  ;;  %vm438_vm4 = vcmp.eq.s32.totalorder %v2924_v8, 19  ;;  %vm445_vm5 = vcmp.eq.s32.totalorder %v2924_v8, 20  ;;  %s2945_s9 = sld [smem:[#allocation12 + $0x15]]  ;;  %vm452_vm6 = vcmp.eq.s32.totalorder %v2924_v8, 21 }
  0x7e   : > { %s2950_s7 = sld [smem:[#allocation12 + $0x1c]]  ;;  %v2971_v31 = vstv %s2927_s17  ;;  %s4283_s17 = smov 126  }
  0x7f   : > { %s2954_s12 = sld [smem:[#allocation12 + $0x23]]  ;;  %v402_v24 = vstv %s2929_s18 }
  0x80   : > { %v366_v37 = vld [vmem:[#allocation2 + $0x8] sm:$0xff]  ;;  %v370_v38 = vld [vmem:[#allocation3 + $0x8] sm:$0xff]  ;;  %v557_v30 = vstv %s2934_s6  ;;  %s3118_s18 = sld [smem:[#allocation12 + $0x1]] }
  0x81   : > { %v368_v39 = vmul.f32 0.25, %v366_v37  ;;  %v374_v40 = vsel %vm309_vm0, %v370_v38, 0.0  ;;  %s3124_s6 = sld [smem:[#allocation12 + $0x8]] }
  0x82   : > { %v382_v42 = vmul.f32 %v380_v36, %v374_v40  ;;  %v365_v44 = vld [vmem:[#allocation2] sm:$0xff]  ;;  %v398_v62 = vmul.f32 %v396_v61, %v374_v40  ;;  %v2978_v37 = vstv %s2940_s29  ;;  %s3128_s29 = sld [smem:[#allocation12 + $0x16]] }
  0x83   : > { %v372_v43 = vsel %vm309_vm0, %v368_v39, 0.0  ;;  %v367_v46 = vmul.f32 0.25, %v365_v44  ;;  %v369_v47 = vld [vmem:[#allocation3] sm:$0xff]  ;;  %s3150_s0 = sld [smem:[#allocation12 + $0xa]] }
  0x84   : > { %v378_v45 = vmul.f32 %v376_v41, %v372_v43  ;;  %v373_v49 = vsel %vm309_vm0, %v369_v47, 0.0  ;;  %v394_v60 = vmul.f32 %v392_v59, %v372_v43  ;;  %s3152_s1 = sld [smem:[#allocation12 + $0x11]] }
  0x85   : > { %v371_v51 = vsel %vm309_vm0, %v367_v46, 0.0  ;;  %v381_v52 = vmul.f32 %v380_v36, %v373_v49  ;;  %v397_v1 = vmul.f32 %v396_v61, %v373_v49  ;;  %v560_v36 = vstv %s2937_s27  ;;  %s3126_s27 = sld [smem:[#allocation12 + $0xf]] }
  0x86   : > { %v384_v50 = vadd.f32 %v382_v42, %v378_v45  ;;  %v377_v53 = vmul.f32 %v376_v41, %v371_v51  ;;  %v2916_v63 = vadd.f32 %v398_v62, %v394_v60  ;;  %v393_v0 = vmul.f32 %v392_v59, %v371_v51  ;;  %4360 = sst [smem:[#allocation30_spill]] %s3118_s18 }
  0x87   : > { %v2985_v41 = vstv %s2945_s9  ;;  %v2990_v45 = vstv %s2950_s7  ;;  %s3130_s9 = sld [smem:[#allocation12 + $0x1d]] }
  0x88   : > { %v388_v54 = vadd.f32 %v386_v48, %v384_v50  ;;  %v383_v55 = vadd.f32 %v381_v52, %v377_v53  ;;  %v2922_v2 = vadd.f32 %v397_v1, %v393_v0  ;;  %v404_v40 = vadd.f32 %v402_v24, %v2916_v63  ;;  %s3132_s7 = sld [smem:[#allocation12 + $0x24]] }
  0x89   : > { %v638_v52 = vstv %s2954_s12  ;;  %s3134_s12 = sld [smem:[#allocation12 + $0x2b]] }
  0x8a   : > { %v390_v56 = vmax.f32 %v388_v54, 0.0  ;;  %v387_v57 = vadd.f32 %v386_v48, %v383_v55  ;;  %v2996_v51 = vadd.f32 %v402_v24, %v2922_v2  ;;  %v3013_v59 = vmax.f32 %v404_v40, 0.0  ;;  %s3154_s2 = sld [smem:[#allocation12 + $0x18]] }
  0x8b   : > { %s3156_s3 = sld [smem:[#allocation12 + $0x1f]] }
  0x8c   : > { %422 = vrot.lane.b32.xlu1 %v390_v56, %s4285_s28  ;;  %411 = vrot.lane.b32.xlu0 %v390_v56, %s2680_s19  ;;  %v389_v58 = vmax.f32 %v387_v57, 0.0  ;;  %s3158_s8 = sld [smem:[#allocation12 + $0x26]] }
  0x8d   : > { %s3160_s24 = sld [smem:[#allocation12 + $0x2d]] }
  0x8e   : > { %s3162_s15 = sld [smem:[#allocation12 + $0x4]] }
  0x8f   : > { %s3164_s22 = sld [smem:[#allocation12 + $0xb]] }
  0x90   : > { %415 = vrot.lane.b32.xlu0 %v390_v56, %s4279_s4  ;;  %409 = vrot.lane.b32.xlu1 %v389_v58, %s2680_s19  ;;  %s3166_s21 = sld [smem:[#allocation12 + $0x12]] }
  0x91   : > { %s3168_s25 = sld [smem:[#allocation12 + $0x19]] }
  0x92   : > { %s3170_s30 = sld [smem:[#allocation12 + $0x20]] }
  0x93   : > { %s3172_s20 = sld [smem:[#allocation12 + $0x27]] }
  0x94   : > { %413 = vrot.lane.b32.xlu0 %v389_v58, %s4279_s4  ;;  %429 = vrot.lane.b32.xlu1 %v390_v56, %s2682_s26  ;;  %4362 = sst [smem:[#allocation32_spill]] %s3162_s15 }
  0x95   : > { %s3174_s5 = sld [smem:[#allocation12 + $0x2e]] }
  0x96   : > { %4363 = sst [smem:[#allocation33_spill]] %s3166_s21 }
  0x97   : > { %4364 = sst [smem:[#allocation34_spill]] %s3168_s25 }
  0x98   : > { %420 = vrot.lane.b32.xlu0 %v389_v58, %s4285_s28  ;;  %436 = vrot.lane.b32.xlu1 %v390_v56, %s2683_s14  ;;  %s3176_s10 = sld [smem:[#allocation12 + $0x5]] }
  0x99   : > { %4365 = sst [smem:[#allocation35_spill]] %s3172_s20 }
  0x9a   : > { %s3178_s23 = sld [smem:[#allocation12 + $0xc]] }
  0x9b   : > { %4366 = sst [smem:[#allocation36_spill]] %s3174_s5 }
  0x9c   : > { %427 = vrot.lane.b32.xlu0 %v389_v58, %s2682_s26  ;;  %443 = vrot.lane.b32.xlu1 %v390_v56, %s2684_s13  ;;  %s3180_s11 = sld [smem:[#allocation12 + $0x13]] }
  0x9d   : > { %s3182_s15 = sld [smem:[#allocation12 + $0x1a]] }
  0x9e   : > { %4367 = sst [smem:[#allocation37_spill]] %s3176_s10 }
  0x9f   : > { %s3184_s21 = sld [smem:[#allocation12 + $0x6]] }
  0xa0   : > { %434 = vrot.lane.b32.xlu0 %v389_v58, %s2683_s14  ;;  %450 = vrot.lane.b32.xlu1 %v390_v56, %s4273_s16  ;;  %4368 = sst [smem:[#allocation38_spill]] %s3178_s23 }
  0xa1   : > { %s3186_s25 = sld [smem:[#allocation12 + $0x21]] }
  0xa2   : > { %4369 = sst [smem:[#allocation39_spill]] %s3180_s11 }
  0xa3   : > { %4370 = sst [smem:[#allocation40_spill]] %s3182_s15 }
  0xa4   : > { %441 = vrot.lane.b32.xlu0 %v389_v58, %s2684_s13  ;;  %448 = vrot.lane.b32.xlu1 %v389_v58, %s4273_s16  ;;  %s2958_s16 = sld [smem:[#allocation12 + $0x2a]] }
  0xa5   : > { %4371 = sst [smem:[#allocation41_spill]] %s3184_s21 }
  0xa6   : > { %s3188_s20 = sld [smem:[#allocation12 + $0x28]] }
  0xa7   : > { %4372 = sst [smem:[#allocation42_spill]] %s3186_s25 }
  0xa8   : > { %s3190_s5 = sld [smem:[#allocation12 + $0x2f]] }
  0xa9   : > { %s3192_s10 = sld [smem:[#allocation12 + $0xd]] }
  0xaa   : > { %v655_v53 = vstv %s2958_s16  ;;  %s4358_s16 = smov 9   ;;  %s3194_s23 = sld [smem:[#allocation12 + $0x14]] }
  0xab   : > { %s3196_s11 = sld [smem:[#allocation12 + $0x1b]] }
  0xac   : > { %4373 = sst [smem:[#allocation43_spill]] %s3188_s20 }
  0xad   : > { %s3198_s15 = sld [smem:[#allocation12 + $0x22]] }
  0xae   : > { %4374 = sst [smem:[#allocation44_spill]] %s3190_s5 }
  0xaf   : > { %s3200_s21 = sld [smem:[#allocation12 + $0x29]] }
  0xb0   : > { %4375 = sst [smem:[#allocation45_spill]] %s3194_s23 }
  0xb1   : > { %s3202_s25 = sld [smem:[#allocation12 + $0x30]] }
  0xb2   : > { %s3204_s20 = sld [smem:[#allocation12 + $0x80]] }
  0xb3   : > { %s3206_s5 = sld [smem:[#allocation12 + $0x87]] }
  0xb4   : > { %s3209_s23 = sld [smem:[#allocation12 + $0x8e]] }
  0xb7   : > { %4376 = sst [smem:[#allocation46_spill]] %s3202_s25 }
  0xb8   : > { %s3221_s25 = sld [smem:[#allocation12 + $0x95]] }
  0xfe   : > { %v423_v3 = vpop.permute.xlu1 %422  ;;  %v412_v4 = vpop.permute.xlu0 %411 }
 0x102   : > { %v416_v6 = vpop.permute.xlu0 %415  ;;  %v410_v7 = vpop.permute.xlu1 %409 }
 0x103   : > { %v419_v13 = vsel %vm417_vm1, %v416_v6, %v412_v4 }
 0x104   : > { %v426_v16 = vsel %vm424_vm2, %v423_v3, %v419_v13 }
 0x106   : > { %v414_v9 = vpop.permute.xlu0 %413  ;;  %v430_v10 = vpop.permute.xlu1 %429 }
 0x107   : > { %v433_v17 = vsel %vm431_vm3, %v430_v10, %v426_v16  ;;  %v418_v22 = vsel %vm417_vm1, %v414_v9, %v410_v7 }
 0x10a   : > { %v421_v11 = vpop.permute.xlu0 %420  ;;  %v437_v12 = vpop.permute.xlu1 %436 }
 0x10b   : > { %v440_v18 = vsel %vm438_vm4, %v437_v12, %v433_v17  ;;  %v425_v25 = vsel %vm424_vm2, %v421_v11, %v418_v22 }
 0x10e   : > { %v428_v14 = vpop.permute.xlu0 %427  ;;  %v444_v15 = vpop.permute.xlu1 %443 }
 0x10f   : > { %v447_v19 = vsel %vm445_vm5, %v444_v15, %v440_v18  ;;  %v432_v29 = vsel %vm431_vm3, %v428_v14, %v425_v25 }
 0x112   : > { %v435_v20 = vpop.permute.xlu0 %434  ;;  %v451_v21 = vpop.permute.xlu1 %450 }
 0x113   : > { %v454_v23 = vsel %vm452_vm6, %v451_v21, %v447_v19  ;;  %v439_v32 = vsel %vm438_vm4, %v435_v20, %v432_v29 }
 0x114   : > { %v467_v26 = vrot.slane %v454_v23, 6  ;;  %v469_v27 = vrot.slane %v454_v23, 4  ;;  %v471_v28 = vrot.slane %v454_v23, 2  ;;  %v477_v42 = vrot.slane %v454_v23, 5 }
 0x116   : > { %v473_v33 = vsel %vm462_vm7, %v467_v26, %v469_v27  ;;  %v442_v34 = vpop.permute.xlu0 %441  ;;  %v449_v35 = vpop.permute.xlu1 %448 }
 0x117   : > { %v474_v38 = vsel %vm464_vm8, %v473_v33, %v471_v28  ;;  %v446_v39 = vsel %vm445_vm5, %v442_v34, %v439_v32 }
 0x118   : > { %v483_v43 = vrot.slane %v474_v38, 5  ;;  %v453_v44 = vsel %vm452_vm6, %v449_v35, %v446_v39 }
 0x119   : > { %v456_v46 = vrot.slane %v453_v44, 3  ;;  %v458_v47 = vrot.slane %v453_v44, 1  ;;  %v460_v48 = vrot.slane %v453_v44, 7  ;;  %v476_v49 = vrot.slane %v453_v44, 5 }
 0x11a   : > { %v2993_v50 = vsel %vm475_vm9, %v477_v42, %v483_v43 }
 0x11b   : > { %v463_v54 = vsel %vm462_vm7, %v456_v46, %v458_v47  ;;  %v3002_v55 = vsel %vm475_vm9, %v476_v49, %v477_v42  ;;  %v569_v56 = vmul.f32 %v2971_v31, %v2993_v50  ;;  %v587_v57 = vmul.f32 %v2978_v37, %v2993_v50 }
 0x11c   : > { %v465_v58 = vsel %vm464_vm8, %v463_v54, %v460_v48  ;;  %787 = vrot.lane.b32.xlu0 %v3002_v55, %s4283_s17  ;;  %673 = vrot.lane.b32.xlu1 %v3002_v55, %s4285_s28  ;;  %v605_v60 = vmul.f32 %v2985_v41, %v2993_v50  ;;  %v623_v61 = vmul.f32 %v2990_v45, %v2993_v50 }
 0x11d   : > { %v3020_v62 = vsel %vm475_vm9, %v465_v58, %v476_v49  ;;  %v577_v63 = vrot.slane %v569_v56, 1  ;;  %v595_v0 = vrot.slane %v587_v57, 2  ;;  %v641_v1 = vmul.f32 %v638_v52, %v2993_v50 }
 0x11e   : > { %v613_v2 = vrot.slane %v605_v60, 3  ;;  %v631_v3 = vrot.slane %v623_v61, 4  ;;  %v658_v4 = vmul.f32 %v655_v53, %v2993_v50  ;;  %v562_v5 = vmul.f32 %v560_v36, %v3002_v55 }
 0x11f   : > { %v648_v6 = vrot.slane %v641_v1, 5  ;;  %v568_v7 = vmul.f32 %v2971_v31, %v3002_v55  ;;  %v586_v9 = vmul.f32 %v2978_v37, %v3002_v55  ;;  %v604_v10 = vmul.f32 %v2985_v41, %v3002_v55 }
 0x120   : > { %785 = vrot.lane.b32.xlu1 %v3020_v62, %s4283_s17  ;;  %671 = vrot.lane.b32.xlu0 %v3020_v62, %s4285_s28  ;;  %v665_v11 = vrot.slane %v658_v4, 6  ;;  %v564_v12 = vadd.f32 %v562_v5, %v557_v30  ;;  %v622_v13 = vmul.f32 %v2990_v45, %v3002_v55  ;;  %v640_v14 = vmul.f32 %v638_v52, %v3002_v55 }
 0x121   : > { %v575_v15 = vrot.slane %v568_v7, 1  ;;  %v593_v16 = vrot.slane %v586_v9, 2  ;;  %v611_v17 = vrot.slane %v604_v10, 3  ;;  %v657_v18 = vmul.f32 %v655_v53, %v3002_v55 }
 0x122   : > { %v629_v19 = vrot.slane %v622_v13, 4  ;;  %v646_v20 = vrot.slane %v640_v14, 5  ;;  %v561_v21 = vmul.f32 %v560_v36, %v3020_v62  ;;  %v567_v22 = vmul.f32 %v2971_v31, %v3020_v62 }
 0x123   : > { %v578_v23 = vsel %vm573_vm10, %v575_v15, %v577_v63  ;;  %v596_v24 = vsel %vm591_vm11, %v593_v16, %v595_v0  ;;  %v614_v25 = vsel %vm609_vm12, %v611_v17, %v613_v2  ;;  %v663_v26 = vrot.slane %v657_v18, 6 }
 0x124   : > { %493 = vrot.lane.b32.xlu1 %v3013_v59, %s4279_s4  ;;  %675 = vrot.lane.b32.xlu0 %v2993_v50, %s4285_s28  ;;  %v582_v27 = vadd.f32 %v578_v23, %v564_v12  ;;  %v632_v28 = vsel %vm627_vm13, %v629_v19, %v631_v3  ;;  %v649_v29 = vsel %vm475_vm9, %v646_v20, %v648_v6  ;;  %v574_v32 = vrot.slane %v567_v22, 1 }
 0x125   : > { %v666_v31 = vsel %vm464_vm8, %v663_v26, %v665_v11  ;;  %v563_v33 = vadd.f32 %v561_v21, %v557_v30  ;;  %v585_v34 = vmul.f32 %v2978_v37, %v3020_v62  ;;  %v603_v35 = vmul.f32 %v2985_v41, %v3020_v62 }
 0x126   : > { %v600_v36 = vadd.f32 %v596_v24, %v582_v27  ;;  %v576_v38 = vsel %vm573_vm10, %v574_v32, %v575_v15  ;;  %v621_v39 = vmul.f32 %v2990_v45, %v3020_v62  ;;  %v639_v40 = vmul.f32 %v638_v52, %v3020_v62 }
 0x127   : > { %v581_v42 = vadd.f32 %v576_v38, %v563_v33  ;;  %v592_v43 = vrot.slane %v585_v34, 2  ;;  %v610_v44 = vrot.slane %v603_v35, 3  ;;  %v656_v46 = vmul.f32 %v655_v53, %v3020_v62 }
 0x128   : > { %899 = vrot.lane.b32.xlu1 %v3020_v62, %s4279_s4  ;;  %489 = vrot.lane.b32.xlu0 %v3013_v59, %s2680_s19  ;;  %v405_v30 = vmax.f32 %v2996_v51, 0.0  ;;  %v618_v37 = vadd.f32 %v614_v25, %v600_v36  ;;  %v628_v41 = vrot.slane %v621_v39, 4  ;;  %v645_v47 = vrot.slane %v639_v40, 5 }
 0x129   : > { %v594_v45 = vsel %vm591_vm11, %v592_v43, %v593_v16  ;;  %v612_v48 = vsel %vm609_vm12, %v610_v44, %v611_v17  ;;  %v662_v49 = vrot.slane %v656_v46, 6  ;;  %v3219_v1 = vstv %s3128_s29  ;;  %s4380_s29 = sld [smem:[#allocation34_spill]] }
 0x12a   : > { %v636_v52 = vadd.f32 %v632_v28, %v618_v37  ;;  %v599_v54 = vadd.f32 %v594_v45, %v581_v42  ;;  %v630_v53 = vsel %vm627_vm13, %v628_v41, %v629_v19  ;;  %v647_v56 = vsel %vm475_vm9, %v645_v47, %v646_v20 }
 0x12b   : > { %v664_v57 = vsel %vm464_vm8, %v662_v49, %v663_v26  ;;  %v3224_v2 = vstv %s3130_s9  ;;  %v3227_v3 = vstv %s3132_s7  ;;  %v3230_v4 = vstv %s3134_s12  ;;  %s4381_s9 = sld [smem:[#allocation35_spill]] }
 0x12c   : > { %491 = vrot.lane.b32.xlu1 %v405_v30, %s4279_s4  ;;  %499 = vrot.lane.b32.xlu0 %v3013_v59, %s4285_s28  ;;  %v653_v51 = vadd.f32 %v649_v29, %v636_v52  ;;  %v617_v58 = vadd.f32 %v612_v48, %v599_v54  ;;  %s3247_s7 = sld [smem:[#allocation12 + $0xa3]]  ;;  %v3256_v13 = vstv %s3150_s0  ;;  %v3259_v14 = vstv %s3152_s1 }
 0x12d   : > { %s4382_s12 = sld [smem:[#allocation36_spill]]  ;;  %v3264_v15 = vstv %s3154_s2  ;;  %v3267_v16 = vstv %s3156_s3  ;;  %v3270_v17 = vstv %s3158_s8  ;;  %v3273_v18 = vstv %s3160_s24  ;;  %s4422_s24 = smov 125  }
 0x12e   : > { %v3078_v60 = vadd.f32 %v666_v31, %v653_v51  ;;  %v635_v61 = vadd.f32 %v630_v53, %v617_v58  ;;  %s4391_s0 = sld [smem:[#allocation45_spill]]  ;;  %v3277_v20 = vstv %s3164_s22  ;;  %v3286_v23 = vstv %s3170_s30  ;;  %s4428_s30 = smov 123  }
 0x12f   : > { %v3283_v22 = vstv %s4380_s29  ;;  %s4392_s1 = sld [smem:[#allocation46_spill]]  ;;  %v3315_v35 = vstv %s3192_s10  ;;  %v3321_v38 = vstv %s3196_s11  ;;  %v3324_v39 = vstv %s3198_s15  ;;  %s4430_s8 = smov 122  }
 0x130   : > { %789 = vrot.lane.b32.xlu1 %v2993_v50, %s4283_s17  ;;  %901 = vrot.lane.b32.xlu0 %v3002_v55, %s4279_s4  ;;  %v652_v63 = vadd.f32 %v647_v56, %v635_v61  ;;  %s3146_s17 = sld [smem:[#allocation12 + $0x3]]  ;;  %4398 = vst [vmem:[#allocation50_spill] sm:$0xff] %v3315_v35  ;;  %4401 = vst [vmem:[#allocation52_spill] sm:$0xff] %v3321_v38  ;;  %v3327_v40 = vstv %s3200_s21  ;;  %v3334_v44 = vstv %s3206_s5  ;;  %s4417_s21 = smov 127  }
 0x131   : > { %v3289_v24 = vstv %s4381_s9  ;;  %s4399_s22 = sld [smem:[#allocation30_spill]]  ;;  %4402 = vst [vmem:[#allocation53_spill] sm:$0xff] %v3324_v39  ;;  %4403 = vst [vmem:[#allocation54_spill] sm:$0xff] %v3327_v40  ;;  %v3337_v46 = vstv %s3209_s23  ;;  %v3342_v41 = vstv %s3221_s25  ;;  %s4418_s23 = smov 126  }
 0x132   : > { %v3084_v0 = vadd.f32 %v664_v57, %v652_v63  ;;  %4405 = vst [vmem:[#allocation56_spill] sm:$0xff] %v3334_v44  ;;  %4406 = vst [vmem:[#allocation57_spill] sm:$0xff] %v3337_v46  ;;  %v3348_v45 = vstv %s3247_s7  ;;  %s4424_s25 = smov 124   ;;  %s3822_s10 = sld [smem:[#allocation12 + $0x82]] }
 0x133   : > { %v3292_v25 = vstv %s4382_s12  ;;  %4407 = vst [vmem:[#allocation58_spill] sm:$0xff] %v3342_v41  ;;  %4409 = vst [vmem:[#allocation60_spill] sm:$0xff] %v3348_v45  ;;  %s2354_s15 = sld [smem:[#allocation12 + $0x88]] }
 0x134   : > { %497 = vrot.lane.b32.xlu1 %v405_v30, %s4285_s28  ;;  %487 = vrot.lane.b32.xlu0 %v405_v30, %s2680_s19  ;;  %s4277_s19 = smov 124   ;;  %s3148_s28 = sld [smem:[#allocation12 + $0x2c]]  ;;  %v3318_v36 = vstv %s4391_s0 }
 0x135   : > { %4400 = vst [vmem:[#allocation51_spill] sm:$0xff] %v3318_v36  ;;  %v3330_v42 = vstv %s4392_s1  ;;  %s2355_s11 = sld [smem:[#allocation12 + $0x8f]] }
 0x136   : > { %4361 = sst [smem:[#allocation31_spill]] %s3146_s17  ;;  %4404 = vst [vmem:[#allocation55_spill] sm:$0xff] %v3330_v42 }
 0x137   : > { %s4383_s17 = sld [smem:[#allocation37_spill]] }
 0x138   : > { %503 = vrot.lane.b32.xlu1 %v405_v30, %s2682_s26  ;;  %505 = vrot.lane.b32.xlu0 %v3013_v59, %s2682_s26  ;;  %s4275_s26 = smov 123   ;;  %s4413_s5 = sld [smem:[#allocation31_spill]] }
 0x139   : > { %s2362_s29 = sld [smem:[#allocation12 + $0x90]] }
 0x13a   : > { %v3253_v12 = vstv %s3148_s28  ;;  %s4390_s28 = sld [smem:[#allocation44_spill]] }
 0x13b   : > { %s2363_s9 = sld [smem:[#allocation12 + $0x97]] }
 0x13c   : > { %903 = vrot.lane.b32.xlu1 %v2993_v50, %s4279_s4  ;;  %511 = vrot.lane.b32.xlu0 %v3013_v59, %s2683_s14  ;;  %s3142_s4 = sld [smem:[#allocation12 + $0x1e]] }
 0x13d   : > { %s2364_s7 = sld [smem:[#allocation12 + $0x9e]] }
 0x13e   : > { %s2365_s12 = sld [smem:[#allocation12 + $0xa5]] }
 0x13f   : > { %s2371_s0 = sld [smem:[#allocation12 + $0x9f]] }
 0x140   : > { %509 = vrot.lane.b32.xlu1 %v405_v30, %s2683_s14  ;;  %517 = vrot.lane.b32.xlu0 %v3013_v59, %s2684_s13  ;;  %s4281_s14 = smov 122   ;;  %v3312_v34 = vstv %s4390_s28  ;;  %s2370_s28 = sld [smem:[#allocation12 + $0x98]] }
 0x141   : > { %4396 = vst [vmem:[#allocation49_spill] sm:$0xff] %v3312_v34  ;;  %s2372_s1 = sld [smem:[#allocation12 + $0xa6]] }
 0x142   : > { %v3245_v10 = vstv %s3142_s4  ;;  %s4387_s4 = sld [smem:[#allocation40_spill]] }
 0x144   : > { %515 = vrot.lane.b32.xlu1 %v405_v30, %s2684_s13  ;;  %523 = vrot.lane.b32.xlu0 %v3013_v59, %s4358_s16  ;;  %s3116_s13 = sld [smem:[#allocation12 + $0x2]]  ;;  %v3213_v59 = vstv %s3124_s6 }
 0x145   : > { %s4377_s6 = sld [smem:[#allocation32_spill]] }
 0x148   : > { %1013 = vrot.lane.b32.xlu1 %v3020_v62, %s4277_s19  ;;  %521 = vrot.lane.b32.xlu0 %v405_v30, %s4358_s16  ;;  %s3136_s16 = sld [smem:[#allocation12 + $0x9]]  ;;  %v3303_v32 = vstv %s4387_s4 }
 0x149   : > { %s2368_s4 = sld [smem:[#allocation12 + $0x8a]] }
 0x14a   : > { %4359 = sst [smem:[#allocation29_spill]] %s3116_s13 }
 0x14b   : > { %s4397_s3 = sld [smem:[#allocation29_spill]] }
 0x14c   : > { %1017 = vrot.lane.b32.xlu1 %v2993_v50, %s4277_s19  ;;  %1015 = vrot.lane.b32.xlu0 %v3002_v55, %s4277_s19  ;;  %s3140_s19 = sld [smem:[#allocation12 + $0x17]] }
 0x14e   : > { %v3236_v6 = vstv %s3136_s16  ;;  %s4384_s16 = sld [smem:[#allocation41_spill]] }
 0x150   : > { %1129 = vrot.lane.b32.xlu1 %v3002_v55, %s4275_s26  ;;  %1127 = vrot.lane.b32.xlu0 %v3020_v62, %s4275_s26 }
 0x152   : > { %v3242_v9 = vstv %s3140_s19  ;;  %s4386_s19 = sld [smem:[#allocation39_spill]] }
 0x154   : > { %1241 = vrot.lane.b32.xlu1 %v3020_v62, %s4281_s14  ;;  %1131 = vrot.lane.b32.xlu0 %v2993_v50, %s4275_s26  ;;  %s3138_s26 = sld [smem:[#allocation12 + $0x10]]  ;;  %v3216_v62 = vstv %s3126_s27 }
 0x155   : > { %s4379_s27 = sld [smem:[#allocation33_spill]] }
 0x158   : > { %1245 = vrot.lane.b32.xlu1 %v2993_v50, %s4281_s14  ;;  %1243 = vrot.lane.b32.xlu0 %v3002_v55, %s4281_s14  ;;  %s3144_s14 = sld [smem:[#allocation12 + $0x25]]  ;;  %v4310_v50 = vstv %s3116_s13  ;;  %v4309_v55 = vstv %s3118_s18 }
 0x159   : > { %s3233_s18 = sld [smem:[#allocation12 + $0x9c]]  ;;  %v3300_v29 = vstv %s4386_s19 }
 0x15a   : > { %v3239_v7 = vstv %s3138_s26  ;;  %s4385_s26 = sld [smem:[#allocation38_spill]] }
 0x15b   : > { %s3261_s13 = sld [smem:[#allocation12 + $0xaa]]  ;;  %v3280_v21 = vstv %s4379_s27 }
 0x15c   : > { %s2361_s27 = sld [smem:[#allocation12 + $0x89]] }
 0x15d   : > { %s3826_s19 = sld [smem:[#allocation12 + $0x84]] }
 0x15e   : > { %v3250_v11 = vstv %s3144_s14  ;;  %s4389_s14 = sld [smem:[#allocation43_spill]] }
 0x15f   : > { %4378 = sst [smem:[#allocation32_spill]] %s3233_s18 }
 0x160   : > { %s4388_s18 = sld [smem:[#allocation42_spill]]  ;;  %v3297_v28 = vstv %s4385_s26 }
 0x161   : > { %s4393_s2 = sld [smem:[#allocation32_spill]]  ;;  %v3351_v48 = vstv %s3261_s13 }
 0x162   : > { %4410 = vst [vmem:[#allocation61_spill] sm:$0xff] %v3351_v48  ;;  %s2357_s13 = sld [smem:[#allocation12 + $0x9d]] }
 0x163   : > { %s3824_s26 = sld [smem:[#allocation12 + $0x83]] }
 0x164   : > { %v3309_v33 = vstv %s4389_s14  ;;  %s2369_s14 = sld [smem:[#allocation12 + $0x91]] }
 0x165   : > { %4395 = vst [vmem:[#allocation48_spill] sm:$0xff] %v3309_v33 }
 0x166   : > { %v3306_v31 = vstv %s4388_s18  ;;  %s2358_s18 = sld [smem:[#allocation12 + $0xa4]] }
 0x167   : > { %4394 = vst [vmem:[#allocation47_spill] sm:$0xff] %v3306_v31  ;;  %v3345_v47 = vstv %s4393_s2  ;;  %s2373_s2 = sld [smem:[#allocation12 + $0xad]] }
 0x168   : > { %4408 = vst [vmem:[#allocation59_spill] sm:$0xff] %v3345_v47 }
 0x18e   : > { %v3339_v30 = vpop.permute.xlu0 %787  ;;  %v674_v37 = vpop.permute.xlu1 %673 }
 0x18f   : > { %v3356_v49 = vmul.f32 %v4310_v50, %v3339_v30  ;;  %v680_v52 = vmul.f32 %v4309_v55, %v674_v37  ;;  %v686_v54 = vmul.f32 %v3213_v59, %v674_v37  ;;  %v703_v53 = vmul.f32 %v3216_v62, %v674_v37 }
 0x190   : > { %v720_v56 = vmul.f32 %v3219_v1, %v674_v37  ;;  %v3364_v57 = vmul.f32 %v3224_v2, %v674_v37  ;;  %v3367_v51 = vmul.f32 %v3227_v3, %v674_v37  ;;  %v3370_v58 = vmul.f32 %v3230_v4, %v674_v37 }
 0x191   : > { %v682_v61 = vadd.f32 %v680_v52, %v3078_v60  ;;  %v692_v63 = vrot.slane %v686_v54, 1  ;;  %v709_v43 = vrot.slane %v703_v53, 2  ;;  %v3375_v27 = vmul.f32 %v3236_v6, %v3339_v30 }
 0x192   : > { %v3377_v26 = vpop.permute.xlu1 %785  ;;  %v672_v19 = vpop.permute.xlu0 %671  ;;  %v726_v5 = vrot.slane %v720_v56, 3  ;;  %v743_v55 = vrot.slane %v3364_v57, 4  ;;  %v760_v50 = vrot.slane %v3367_v51, 5  ;;  %v777_v48 = vrot.slane %v3370_v58, 6 }
 0x193   : > { %v4411_v37 = vstv %s4397_s3  ;;  %v4412_v60 = vstv %s4399_s22  ;;  %v685_v54 = vmul.f32 %v3213_v59, %v672_v19  ;;  %v702_v53 = vmul.f32 %v3216_v62, %v672_v19  ;;  %s2375_s3 = sld [smem:[#allocation12 + $0x8b]] }
 0x194   : > { %v3385_v45 = vmul.f32 %v4411_v37, %v3377_v26  ;;  %v679_v52 = vmul.f32 %v4412_v60, %v672_v19  ;;  %v719_v47 = vmul.f32 %v3219_v1, %v672_v19  ;;  %v736_v56 = vmul.f32 %v3224_v2, %v672_v19  ;;  %s2376_s22 = sld [smem:[#allocation12 + $0x92]] }
 0x195   : > { %v753_v57 = vmul.f32 %v3227_v3, %v672_v19  ;;  %v770_v51 = vmul.f32 %v3230_v4, %v672_v19  ;;  %v691_v41 = vrot.slane %v685_v54, 1  ;;  %v708_v46 = vrot.slane %v702_v53, 2 }
 0x196   : > { %v681_v58 = vadd.f32 %v679_v52, %v3084_v0  ;;  %v799_v37 = vmul.f32 %v3236_v6, %v3377_v26  ;;  %v494_v60 = vpop.permute.xlu1 %493  ;;  %v725_v44 = vrot.slane %v719_v47, 3  ;;  %v742_v42 = vrot.slane %v736_v56, 4  ;;  %v676_v38 = vpop.permute.xlu0 %675 }
 0x197   : > { %v759_v40 = vrot.slane %v753_v57, 5  ;;  %v776_v39 = vrot.slane %v770_v51, 6  ;;  %v693_v36 = vsel %vm573_vm10, %v691_v41, %v692_v63  ;;  %v710_v35 = vsel %vm591_vm11, %v708_v46, %v709_v43 }
 0x198   : > { %v687_v34 = vmul.f32 %v3213_v59, %v676_v38  ;;  %v704_v19 = vmul.f32 %v3216_v62, %v676_v38  ;;  %v727_v0 = vsel %vm609_vm12, %v725_v44, %v726_v5  ;;  %v744_v52 = vsel %vm627_vm13, %v742_v42, %v743_v55 }
 0x199   : > { %v761_v54 = vsel %vm475_vm9, %v759_v40, %v760_v50  ;;  %v778_v47 = vsel %vm464_vm8, %v776_v39, %v777_v48  ;;  %v698_v56 = vadd.f32 %v693_v36, %v681_v58  ;;  %v721_v51 = vmul.f32 %v3219_v1, %v676_v38 }
 0x19a   : > { %v694_v53 = vrot.slane %v687_v34, 1  ;;  %v711_v57 = vrot.slane %v704_v19, 2  ;;  %v738_v41 = vmul.f32 %v3224_v2, %v676_v38  ;;  %v755_v59 = vmul.f32 %v3227_v3, %v676_v38  ;;  %v3410_v46 = vpop.permute.xlu1 %899  ;;  %v490_v44 = vpop.permute.xlu0 %489 }
 0x19b   : > { %v772_v62 = vmul.f32 %v3230_v4, %v676_v38  ;;  %v805_v42 = vrot.slane %v799_v37, 1  ;;  %v715_v34 = vadd.f32 %v710_v35, %v698_v56  ;;  %v728_v36 = vrot.slane %v721_v51, 3 }
 0x19c   : > { %v695_v40 = vsel %vm573_vm10, %v692_v63, %v694_v53  ;;  %v712_v39 = vsel %vm591_vm11, %v709_v43, %v711_v57  ;;  %v745_v19 = vrot.slane %v738_v41, 4  ;;  %v762_v1 = vrot.slane %v755_v59, 5 }
 0x19d   : > { %v699_v58 = vadd.f32 %v695_v40, %v682_v61  ;;  %v779_v33 = vrot.slane %v772_v62, 6  ;;  %v729_v2 = vsel %vm609_vm12, %v726_v5, %v728_v36  ;;  %v732_v31 = vadd.f32 %v727_v0, %v715_v34 }
 0x19e   : > { %v4414_v3 = vstv %s4413_s5  ;;  %v496_v38 = vsel %vm417_vm1, %v494_v60, %v490_v44  ;;  %v746_v63 = vsel %vm627_vm13, %v743_v55, %v745_v19  ;;  %v763_v35 = vsel %vm475_vm9, %v760_v50, %v762_v1  ;;  %v3425_v61 = vpop.permute.xlu1 %491  ;;  %v500_v53 = vpop.permute.xlu0 %499 }
 0x19f   : > { %v3418_v4 = vmul.f32 %v4414_v3, %v3410_v46  ;;  %v716_v37 = vadd.f32 %v712_v39, %v699_v58  ;;  %v780_v43 = vsel %vm464_vm8, %v777_v48, %v779_v33  ;;  %v749_v56 = vadd.f32 %v744_v52, %v732_v31 }
 0x1a0   : > { %v3429_v5 = vsel %vm424_vm2, %v500_v53, %v496_v38  ;;  %v806_v0 = vrot.slane %v3375_v27, 1  ;;  %v816_v60 = vmul.f32 %v3239_v7, %v3377_v26  ;;  %v817_v55 = vmul.f32 %v3239_v7, %v3339_v30 }
 0x1a1   : > { %v733_v57 = vadd.f32 %v729_v2, %v716_v37  ;;  %v833_v50 = vmul.f32 %v3242_v9, %v3377_v26  ;;  %v834_v33 = vmul.f32 %v3242_v9, %v3339_v30  ;;  %v766_v31 = vadd.f32 %v761_v54, %v749_v56 }
 0x1a2   : > { %v807_v48 = vsel %vm573_vm10, %v805_v42, %v806_v0  ;;  %v822_v52 = vrot.slane %v816_v60, 2  ;;  %v850_v27 = vmul.f32 %v3245_v10, %v3377_v26  ;;  %v823_v41 = vrot.slane %v817_v55, 2  ;;  %v790_v44 = vpop.permute.xlu1 %789  ;;  %v3443_v40 = vpop.permute.xlu0 %901 }
 0x1a3   : > { %v750_v51 = vadd.f32 %v746_v63, %v733_v57  ;;  %v839_v59 = vrot.slane %v833_v50, 3  ;;  %v840_v62 = vrot.slane %v834_v33, 3  ;;  %v783_v39 = vadd.f32 %v778_v47, %v766_v31 }
 0x1a4   : > { %v851_v34 = vmul.f32 %v3245_v10, %v3339_v30  ;;  %v856_v36 = vrot.slane %v850_v27, 4  ;;  %v867_v54 = vmul.f32 %v3250_v11, %v3377_v26  ;;  %v824_v58 = vsel %vm591_vm11, %v822_v52, %v823_v41 }
 0x1a5   : > { %v767_v42 = vadd.f32 %v763_v35, %v750_v51  ;;  %v841_v19 = vsel %vm609_vm12, %v839_v59, %v840_v62  ;;  %v868_v1 = vmul.f32 %v3250_v11, %v3339_v30  ;;  %v884_v47 = vmul.f32 %v3253_v12, %v3377_v26 }
 0x1a6   : > { %v857_v2 = vrot.slane %v851_v34, 4  ;;  %v873_v3 = vrot.slane %v867_v54, 5  ;;  %v885_v38 = vmul.f32 %v3253_v12, %v3339_v30  ;;  %v795_v53 = vadd.f32 %v3385_v45, %v783_v39  ;;  %v498_v56 = vpop.permute.xlu1 %497  ;;  %v488_v60 = vpop.permute.xlu0 %487 }
 0x1a7   : > { %v784_v37 = vadd.f32 %v780_v43, %v767_v42  ;;  %v874_v63 = vrot.slane %v868_v1, 5  ;;  %v801_v35 = vmul.f32 %v3236_v6, %v790_v44  ;;  %v890_v55 = vrot.slane %v884_v47, 6 }
 0x1a8   : > { %v858_v57 = vsel %vm627_vm13, %v856_v36, %v857_v2  ;;  %v891_v50 = vrot.slane %v885_v38, 6  ;;  %v818_v33 = vmul.f32 %v3239_v7, %v790_v44  ;;  %v812_v30 = vadd.f32 %v807_v48, %v795_v53 }
 0x1a9   : > { %v875_v31 = vsel %vm475_vm9, %v873_v3, %v874_v63  ;;  %v796_v26 = vadd.f32 %v3356_v49, %v784_v37  ;;  %v808_v52 = vrot.slane %v801_v35, 1  ;;  %v835_v6 = vmul.f32 %v3242_v9, %v790_v44 }
 0x1aa   : > { %v892_v43 = vsel %vm464_vm8, %v890_v55, %v891_v50  ;;  %v825_v27 = vrot.slane %v818_v33, 2  ;;  %v852_v45 = vmul.f32 %v3245_v10, %v790_v44  ;;  %v829_v59 = vadd.f32 %v824_v58, %v812_v30  ;;  %v504_v34 = vpop.permute.xlu1 %503  ;;  %v506_v36 = vpop.permute.xlu0 %505 }
 0x1ab   : > { %v809_v51 = vsel %vm573_vm10, %v806_v0, %v808_v52  ;;  %v869_v39 = vmul.f32 %v3250_v11, %v790_v44  ;;  %v886_v7 = vmul.f32 %v3253_v12, %v790_v44  ;;  %v842_v54 = vrot.slane %v835_v6, 3 }
 0x1ac   : > { %v813_v49 = vadd.f32 %v809_v51, %v796_v26  ;;  %v826_v48 = vsel %vm591_vm11, %v823_v41, %v825_v27  ;;  %v859_v42 = vrot.slane %v852_v45, 4  ;;  %v846_v1 = vadd.f32 %v841_v19, %v829_v59 }
 0x1ad   : > { %v876_v3 = vrot.slane %v869_v39, 5  ;;  %v893_v47 = vrot.slane %v886_v7, 6  ;;  %v4415_v9 = vstv %s4413_s5  ;;  %v843_v0 = vsel %vm609_vm12, %v840_v62, %v842_v54  ;;  %s3828_s5 = sld [smem:[#allocation12 + $0x99]] }
 0x1ae   : > { %v908_v10 = vmul.f32 %v4415_v9, %v3443_v40  ;;  %v830_v38 = vadd.f32 %v826_v48, %v813_v49  ;;  %v860_v11 = vsel %vm627_vm13, %v857_v2, %v859_v42  ;;  %v495_v12 = vsel %vm417_vm1, %v3425_v61, %v488_v60  ;;  %v904_v37 = vpop.permute.xlu1 %903  ;;  %v3482_v53 = vpop.permute.xlu0 %511 }
 0x1af   : > { %v863_v44 = vadd.f32 %v858_v57, %v846_v1  ;;  %v877_v41 = vsel %vm475_vm9, %v874_v63, %v876_v3  ;;  %v894_v58 = vsel %vm464_vm8, %v891_v50, %v893_v47  ;;  %v501_v19 = vsel %vm424_vm2, %v498_v56, %v495_v12 }
 0x1b0   : > { %v847_v35 = vadd.f32 %v843_v0, %v830_v38  ;;  %v3486_v62 = vsel %vm431_vm3, %v504_v34, %v501_v19  ;;  %v3491_v61 = vsel %vm431_vm3, %v506_v36, %v3429_v5  ;;  %v913_v2 = vmul.f32 %v3256_v13, %v3410_v46 }
 0x1b1   : > { %v880_v63 = vadd.f32 %v875_v31, %v863_v44  ;;  %v930_v56 = vmul.f32 %v3259_v14, %v3410_v46  ;;  %v947_v60 = vmul.f32 %v3264_v15, %v3410_v46  ;;  %v964_v57 = vmul.f32 %v3267_v16, %v3410_v46 }
 0x1b2   : > { %v864_v55 = vadd.f32 %v860_v11, %v847_v35  ;;  %v919_v50 = vrot.slane %v913_v2, 1  ;;  %v981_v33 = vmul.f32 %v3270_v17, %v3410_v46  ;;  %v3505_v5 = vmul.f32 %v3273_v18, %v3410_v46  ;;  %v510_v59 = vpop.permute.xlu1 %509  ;;  %v518_v39 = vpop.permute.xlu0 %517 }
 0x1b3   : > { %v897_v26 = vadd.f32 %v892_v43, %v880_v63  ;;  %v936_v31 = vrot.slane %v930_v56, 2  ;;  %v953_v52 = vrot.slane %v947_v60, 3  ;;  %v970_v30 = vrot.slane %v964_v57, 4 }
 0x1b4   : > { %v881_v27 = vadd.f32 %v877_v41, %v864_v55  ;;  %v987_v6 = vrot.slane %v981_v33, 5  ;;  %v1004_v45 = vrot.slane %v3505_v5, 6  ;;  %v914_v51 = vmul.f32 %v3256_v13, %v3443_v40 }
 0x1b5   : > { %v909_v7 = vadd.f32 %v3418_v4, %v897_v26  ;;  %v915_v34 = vmul.f32 %v3256_v13, %v904_v37  ;;  %v931_v46 = vmul.f32 %v3259_v14, %v3443_v40  ;;  %v932_v43 = vmul.f32 %v3259_v14, %v904_v37 }
 0x1b6   : > { %v898_v36 = vadd.f32 %v894_v58, %v881_v27  ;;  %v920_v49 = vrot.slane %v914_v51, 1  ;;  %v948_v48 = vmul.f32 %v3264_v15, %v3443_v40  ;;  %v949_v54 = vmul.f32 %v3264_v15, %v904_v37  ;;  %v516_v19 = vpop.permute.xlu1 %515 }
 0x1b7   : > { %v922_v42 = vrot.slane %v915_v34, 1  ;;  %v937_v1 = vrot.slane %v931_v46, 2  ;;  %v939_v3 = vrot.slane %v932_v43, 2  ;;  %v965_v4 = vmul.f32 %v3267_v16, %v3443_v40 }
 0x1b8   : > { %v910_v47 = vadd.f32 %v908_v10, %v898_v36  ;;  %v921_v13 = vsel %vm573_vm10, %v919_v50, %v920_v49  ;;  %v954_v9 = vrot.slane %v948_v48, 3  ;;  %v956_v38 = vrot.slane %v949_v54, 3  ;;  %v524_v10 = vpop.permute.xlu0 %523 }
 0x1b9   : > { %v923_v14 = vsel %vm573_vm10, %v920_v49, %v922_v42  ;;  %v926_v0 = vadd.f32 %v921_v13, %v909_v7  ;;  %v938_v11 = vsel %vm591_vm11, %v936_v31, %v937_v1  ;;  %v940_v12 = vsel %vm591_vm11, %v937_v1, %v939_v3 }
 0x1ba   : > { %v927_v44 = vadd.f32 %v923_v14, %v910_v47  ;;  %v955_v15 = vsel %vm609_vm12, %v953_v52, %v954_v9  ;;  %v957_v41 = vsel %vm609_vm12, %v954_v9, %v956_v38  ;;  %v966_v58 = vmul.f32 %v3267_v16, %v904_v37  ;;  %v1014_v43 = vpop.permute.xlu1 %1013 }
 0x1bb   : > { %v943_v35 = vadd.f32 %v938_v11, %v926_v0  ;;  %v971_v2 = vrot.slane %v965_v4, 4  ;;  %v982_v63 = vmul.f32 %v3270_v17, %v3443_v40  ;;  %v983_v56 = vmul.f32 %v3270_v17, %v904_v37 }
 0x1bc   : > { %v944_v60 = vadd.f32 %v940_v12, %v927_v44  ;;  %v973_v57 = vrot.slane %v966_v58, 4  ;;  %v999_v55 = vmul.f32 %v3273_v18, %v3443_v40  ;;  %v1000_v50 = vmul.f32 %v3273_v18, %v904_v37 }
 0x1bd   : > { %v960_v33 = vadd.f32 %v955_v15, %v943_v35  ;;  %v972_v5 = vsel %vm627_vm13, %v970_v30, %v971_v2  ;;  %v988_v16 = vrot.slane %v982_v63, 5  ;;  %v990_v26 = vrot.slane %v983_v56, 5 }
 0x1be   : > { %v961_v31 = vadd.f32 %v957_v41, %v944_v60  ;;  %v974_v52 = vsel %vm627_vm13, %v971_v2, %v973_v57  ;;  %v1005_v27 = vrot.slane %v999_v55, 6  ;;  %v1007_v51 = vrot.slane %v1000_v50, 6  ;;  %v1018_v58 = vpop.permute.xlu1 %1017 }
 0x1bf   : > { %v977_v7 = vadd.f32 %v972_v5, %v960_v33  ;;  %v989_v17 = vsel %vm475_vm9, %v987_v6, %v988_v16  ;;  %v991_v34 = vsel %vm475_vm9, %v988_v16, %v990_v26  ;;  %v514_v18 = vsel %vm438_vm4, %v3482_v53, %v3491_v61  ;;  %v522_v6 = vpop.permute.xlu0 %521 }
 0x1c0   : > { %v978_v40 = vadd.f32 %v974_v52, %v961_v31  ;;  %v1008_v37 = vsel %vm464_vm8, %v1005_v27, %v1007_v51  ;;  %v513_v30 = vsel %vm438_vm4, %v510_v59, %v3486_v62  ;;  %v520_v46 = vsel %vm445_vm5, %v518_v39, %v514_v18 }
 0x1c1   : > { %v519_v36 = vsel %vm445_vm5, %v516_v19, %v513_v30  ;;  %v526_v49 = vsel %vm452_vm6, %v524_v10, %v520_v46  ;;  %v994_v53 = vadd.f32 %v989_v17, %v977_v7  ;;  %v1006_v61 = vsel %vm464_vm8, %v1004_v45, %v1005_v27 }
 0x1c2   : > { %v995_v48 = vadd.f32 %v991_v34, %v978_v40  ;;  %v537_v54 = vrot.slane %v526_v49, 6  ;;  %v539_v42 = vrot.slane %v526_v49, 4  ;;  %v541_v1 = vrot.slane %v526_v49, 2  ;;  %v3585_v30 = vpop.permute.xlu1 %1129 }
 0x1c3   : > { %v546_v3 = vrot.slane %v526_v49, 5  ;;  %v1011_v62 = vadd.f32 %v1006_v61, %v994_v53  ;;  %v4416_v59 = vstv %s4377_s6  ;;  %v525_v39 = vsel %vm452_vm6, %v522_v6, %v519_v36  ;;  %v1016_v57 = vpop.permute.xlu0 %1015  ;;  %s2359_s6 = sld [smem:[#allocation12 + $0xab]] }
 0x1c4   : > { %v1021_v4 = vmul.f32 %v4416_v59, %v1014_v43  ;;  %v1012_v47 = vadd.f32 %v1008_v37, %v995_v48  ;;  %v543_v13 = vsel %vm462_vm7, %v537_v54, %v539_v42  ;;  %v528_v9 = vrot.slane %v525_v39, 3 }
 0x1c5   : > { %v530_v38 = vrot.slane %v525_v39, 1  ;;  %v544_v14 = vsel %vm464_vm8, %v543_v13, %v541_v1  ;;  %v532_v45 = vrot.slane %v525_v39, 7  ;;  %v545_v11 = vrot.slane %v525_v39, 5 }
 0x1c6   : > { %v1023_v0 = vadd.f32 %v1021_v4, %v1011_v62  ;;  %v552_v12 = vrot.slane %v544_v14, 5  ;;  %v1027_v15 = vmul.f32 %v3277_v20, %v1014_v43  ;;  %v1044_v41 = vmul.f32 %v3280_v21, %v1014_v43 }
 0x1c7   : > { %v534_v44 = vsel %vm462_vm7, %v528_v9, %v530_v38  ;;  %v3563_v19 = vsel %vm475_vm9, %v545_v11, %v546_v3  ;;  %v1061_v10 = vmul.f32 %v3283_v22, %v1014_v43  ;;  %v1078_v35 = vmul.f32 %v3286_v23, %v1014_v43  ;;  %v3598_v42 = vpop.permute.xlu0 %1127 }
 0x1c8   : > { %v535_v8 = vsel %vm464_vm8, %v534_v44, %v532_v45  ;;  %v3568_v2 = vsel %vm475_vm9, %v546_v3, %v552_v12  ;;  %v1033_v56 = vrot.slane %v1027_v15, 1  ;;  %v1050_v60 = vrot.slane %v1044_v41, 2  ;;  %1465 = vrot.lane.b32.xlu1 %v3563_v19, %s4417_s21 }
 0x1c9   : > { %v3571_v63 = vsel %vm475_vm9, %v535_v8, %v545_v11  ;;  %v1067_v55 = vrot.slane %v1061_v10, 3  ;;  %v1084_v50 = vrot.slane %v1078_v35, 4  ;;  %v1095_v33 = vmul.f32 %v3289_v24, %v1014_v43  ;;  %v3617_v11 = vpop.permute.xlu1 %1241 }
 0x1ca   : > { %v1112_v5 = vmul.f32 %v3292_v25, %v1014_v43  ;;  %1463 = vrot.lane.b32.xlu0 %v3571_v63, %s4417_s21  ;;  %v1029_v16 = vmul.f32 %v3277_v20, %v1018_v58  ;;  %v1046_v26 = vmul.f32 %v3280_v21, %v1018_v58  ;;  %v1063_v31 = vmul.f32 %v3283_v22, %v1018_v58 }
 0x1cb   : > { %v1080_v52 = vmul.f32 %v3286_v23, %v1018_v58  ;;  %v1101_v27 = vrot.slane %v1095_v33, 5  ;;  %v1097_v7 = vmul.f32 %v3289_v24, %v1018_v58  ;;  %v1114_v17 = vmul.f32 %v3292_v25, %v1018_v58 }
 0x1cc   : > { %v1118_v51 = vrot.slane %v1112_v5, 6  ;;  %v1036_v34 = vrot.slane %v1029_v16, 1  ;;  %v1053_v18 = vrot.slane %v1046_v26, 2  ;;  %v1070_v40 = vrot.slane %v1063_v31, 3  ;;  %1577 = vrot.lane.b32.xlu1 %v3571_v63, %s4418_s23 }
 0x1cd   : > { %v1087_v37 = vrot.slane %v1080_v52, 4  ;;  %v1104_v46 = vrot.slane %v1097_v7, 5  ;;  %v1121_v43 = vrot.slane %v1114_v17, 6  ;;  %v4419_v6 = vmov %v4416_v59 }
 0x1ce   : > { %v1022_v36 = vmul.f32 %v4419_v6, %v1016_v57  ;;  %v1028_v49 = vmul.f32 %v3277_v20, %v1016_v57  ;;  %1467 = vrot.lane.b32.xlu0 %v3568_v2, %s4417_s21  ;;  %v1045_v53 = vmul.f32 %v3280_v21, %v1016_v57  ;;  %v1062_v61 = vmul.f32 %v3283_v22, %v1016_v57  ;;  %s3834_s21 = sld [smem:[#allocation12 + $0xa0]] }
 0x1cf   : > { %v1079_v48 = vmul.f32 %v3286_v23, %v1016_v57  ;;  %v1096_v54 = vmul.f32 %v3289_v24, %v1016_v57  ;;  %v1113_v62 = vmul.f32 %v3292_v25, %v1016_v57  ;;  %v4420_v20 = vstv %s4383_s17  ;;  %s2356_s17 = sld [smem:[#allocation12 + $0x96]] }
 0x1d0   : > { %v1024_v1 = vadd.f32 %v1022_v36, %v1012_v47  ;;  %v1034_v3 = vrot.slane %v1028_v49, 1  ;;  %v3604_v59 = vmul.f32 %v4420_v20, %v3585_v30  ;;  %v1051_v4 = vrot.slane %v1045_v53, 2  ;;  %1581 = vrot.lane.b32.xlu1 %v3568_v2, %s4418_s23 }
 0x1d1   : > { %v1068_v39 = vrot.slane %v1062_v61, 3  ;;  %v1085_v21 = vrot.slane %v1079_v48, 4  ;;  %v1102_v13 = vrot.slane %v1096_v54, 5  ;;  %v1119_v24 = vrot.slane %v1113_v62, 6  ;;  %v1132_v61 = vpop.permute.xlu0 %1131 }
 0x1d2   : > { %v1035_v22 = vsel %vm573_vm10, %v1033_v56, %v1034_v3  ;;  %v1037_v23 = vsel %vm573_vm10, %v1034_v3, %v1036_v34  ;;  %v4421_v47 = vmov %v4420_v20  ;;  %1579 = vrot.lane.b32.xlu0 %v3563_v19, %s4418_s23  ;;  %v1052_v14 = vsel %vm591_vm11, %v1050_v60, %v1051_v4  ;;  %v4426_v3 = vld [vmem:[#allocation48_spill] sm:$0xff]  ;;  %s3852_s23 = sld [smem:[#allocation12 + $0xa7]] }
 0x1d3   : > { %v1135_v9 = vmul.f32 %v4421_v47, %v3598_v42  ;;  %v1040_v25 = vadd.f32 %v1035_v22, %v1023_v0  ;;  %v1041_v38 = vadd.f32 %v1037_v23, %v1024_v1  ;;  %v1054_v45 = vsel %vm591_vm11, %v1051_v4, %v1053_v18  ;;  %v4427_v22 = vld [vmem:[#allocation49_spill] sm:$0xff] }
 0x1d4   : > { %v1069_v12 = vsel %vm609_vm12, %v1067_v55, %v1068_v39  ;;  %v1071_v44 = vsel %vm609_vm12, %v1068_v39, %v1070_v40  ;;  %v1086_v15 = vsel %vm627_vm13, %v1084_v50, %v1085_v21  ;;  %v1088_v41 = vsel %vm627_vm13, %v1085_v21, %v1087_v37  ;;  %1693 = vrot.lane.b32.xlu1 %v3563_v19, %s4422_s24 }
 0x1d5   : > { %v1057_v58 = vadd.f32 %v1052_v14, %v1040_v25  ;;  %v1058_v8 = vadd.f32 %v1054_v45, %v1041_v38  ;;  %v1103_v0 = vsel %vm475_vm9, %v1101_v27, %v1102_v13  ;;  %v1105_v10 = vsel %vm475_vm9, %v1102_v13, %v1104_v46  ;;  %v4425_v46 = vld [vmem:[#allocation47_spill] sm:$0xff] }
 0x1d6   : > { %v1122_v35 = vsel %vm464_vm8, %v1119_v24, %v1121_v43  ;;  %v1120_v56 = vsel %vm464_vm8, %v1118_v51, %v1119_v24  ;;  %v4423_v60 = vstv %s4384_s16  ;;  %v1141_v55 = vmul.f32 %v3297_v28, %v3598_v42  ;;  %1691 = vrot.lane.b32.xlu0 %v3571_v63, %s4422_s24 }
 0x1d7   : > { %v3632_v57 = vmul.f32 %v4423_v60, %v3617_v11  ;;  %v1074_v50 = vadd.f32 %v1069_v12, %v1057_v58  ;;  %v1075_v33 = vadd.f32 %v1071_v44, %v1058_v8  ;;  %v1142_v5 = vmul.f32 %v3297_v28, %v3585_v30 }
 0x1d8   : > { %v1158_v16 = vmul.f32 %v3300_v29, %v3598_v42  ;;  %v1147_v26 = vrot.slane %v1141_v55, 1  ;;  %v1159_v31 = vmul.f32 %v3300_v29, %v3585_v30  ;;  %v1175_v52 = vmul.f32 %v3303_v32, %v3598_v42  ;;  %1805 = vrot.lane.b32.xlu1 %v3571_v63, %s4424_s25 }
 0x1d9   : > { %v1176_v27 = vmul.f32 %v3303_v32, %v3585_v30  ;;  %v1091_v51 = vadd.f32 %v1086_v15, %v1074_v50  ;;  %v1092_v7 = vadd.f32 %v1088_v41, %v1075_v33  ;;  %v1148_v17 = vrot.slane %v1142_v5, 1  ;;  %v4429_v50 = vld [vmem:[#allocation50_spill] sm:$0xff] }
 0x1da   : > { %v1164_v34 = vrot.slane %v1158_v16, 2  ;;  %v1165_v18 = vrot.slane %v1159_v31, 2  ;;  %v1181_v40 = vrot.slane %v1175_v52, 3  ;;  %v1192_v43 = vmul.f32 %v4425_v46, %v3598_v42  ;;  %1695 = vrot.lane.b32.xlu0 %v3568_v2, %s4422_s24  ;;  %s3860_s24 = sld [smem:[#allocation12 + $0xae]] }
 0x1db   : > { %v1182_v37 = vrot.slane %v1176_v27, 3  ;;  %v1109_v6 = vadd.f32 %v1105_v10, %v1092_v7  ;;  %v1108_v36 = vadd.f32 %v1103_v0, %v1091_v51  ;;  %v1149_v49 = vsel %vm573_vm10, %v1147_v26, %v1148_v17  ;;  %v4431_v7 = vld [vmem:[#allocation51_spill] sm:$0xff] }
 0x1dc   : > { %v1193_v53 = vmul.f32 %v4425_v46, %v3585_v30  ;;  %v1166_v48 = vsel %vm591_vm11, %v1164_v34, %v1165_v18  ;;  %v1198_v1 = vrot.slane %v1192_v43, 4  ;;  %v1209_v62 = vmul.f32 %v4426_v3, %v3598_v42  ;;  %1809 = vrot.lane.b32.xlu1 %v3568_v2, %s4424_s25 }
 0x1dd   : > { %v1183_v54 = vsel %vm609_vm12, %v1181_v40, %v1182_v37  ;;  %v1126_v20 = vadd.f32 %v1122_v35, %v1109_v6  ;;  %v1125_v4 = vadd.f32 %v1120_v56, %v1108_v36  ;;  %v1210_v21 = vmul.f32 %v4426_v3, %v3585_v30  ;;  %v4432_v40 = vld [vmem:[#allocation52_spill] sm:$0xff]  ;;  %v1246_v6 = vpop.permute.xlu1 %1245 }
 0x1de   : > { %v1199_v39 = vrot.slane %v1193_v53, 4  ;;  %v1215_v13 = vrot.slane %v1209_v62, 5  ;;  %v1226_v23 = vmul.f32 %v4427_v22, %v3598_v42  ;;  %v1227_v24 = vmul.f32 %v4427_v22, %v3585_v30  ;;  %1807 = vrot.lane.b32.xlu0 %v3563_v19, %s4424_s25  ;;  %v4434_v53 = vld [vmem:[#allocation54_spill] sm:$0xff]  ;;  %s3870_s25 = sld [smem:[#allocation12 + $0x85]] }
 0x1df   : > { %v1143_v47 = vmul.f32 %v3297_v28, %v1132_v61  ;;  %v1138_v25 = vadd.f32 %v3604_v59, %v1126_v20  ;;  %v1137_v38 = vadd.f32 %v1135_v9, %v1125_v4  ;;  %v1216_v45 = vrot.slane %v1210_v21, 5 }
 0x1e0   : > { %v1200_v14 = vsel %vm627_vm13, %v1198_v1, %v1199_v39  ;;  %v1232_v12 = vrot.slane %v1226_v23, 6  ;;  %v1233_v44 = vrot.slane %v1227_v24, 6  ;;  %v1160_v41 = vmul.f32 %v3300_v29, %v1132_v61  ;;  %1921 = vrot.lane.b32.xlu1 %v3563_v19, %s4428_s30 }
 0x1e1   : > { %v1150_v15 = vrot.slane %v1143_v47, 1  ;;  %v1217_v42 = vsel %vm475_vm9, %v1215_v13, %v1216_v45  ;;  %v1154_v58 = vadd.f32 %v1149_v49, %v1137_v38  ;;  %v1177_v30 = vmul.f32 %v3303_v32, %v1132_v61 }
 0x1e2   : > { %v1194_v28 = vmul.f32 %v4425_v46, %v1132_v61  ;;  %v1234_v59 = vsel %vm464_vm8, %v1232_v12, %v1233_v44  ;;  %v1167_v8 = vrot.slane %v1160_v41, 2  ;;  %v1211_v0 = vmul.f32 %v4426_v3, %v1132_v61  ;;  %1919 = vrot.lane.b32.xlu0 %v3571_v63, %s4428_s30  ;;  %v4433_v46 = vld [vmem:[#allocation53_spill] sm:$0xff] }
 0x1e3   : > { %v1151_v9 = vsel %vm573_vm10, %v1148_v17, %v1150_v15  ;;  %v1171_v10 = vadd.f32 %v1166_v48, %v1154_v58  ;;  %v1184_v35 = vrot.slane %v1177_v30, 3  ;;  %v1228_v55 = vmul.f32 %v4427_v22, %v1132_v61  ;;  %v4435_v48 = vld [vmem:[#allocation55_spill] sm:$0xff] }
 0x1e4   : > { %v1155_v29 = vadd.f32 %v1151_v9, %v1138_v25  ;;  %v1201_v56 = vrot.slane %v1194_v28, 4  ;;  %v1168_v32 = vsel %vm591_vm11, %v1165_v18, %v1167_v8  ;;  %v1218_v60 = vrot.slane %v1211_v0, 5  ;;  %2033 = vrot.lane.b32.xlu1 %v3571_v63, %s4430_s8  ;;  %v4438_v8 = vld [vmem:[#allocation56_spill] sm:$0xff] }
 0x1e5   : > { %v3689_v33 = vmul.f32 %v4429_v50, %v3617_v11  ;;  %v1185_v16 = vsel %vm609_vm12, %v1182_v37, %v1184_v35  ;;  %v1188_v26 = vadd.f32 %v1183_v54, %v1171_v10  ;;  %v1235_v27 = vrot.slane %v1228_v55, 6 }
 0x1e6   : > { %v1172_v5 = vadd.f32 %v1168_v32, %v1155_v29  ;;  %v1202_v31 = vsel %vm627_vm13, %v1199_v39, %v1201_v56  ;;  %v1219_v52 = vsel %vm475_vm9, %v1216_v45, %v1218_v60  ;;  %v1272_v17 = vmul.f32 %v4431_v7, %v3617_v11  ;;  %1923 = vrot.lane.b32.xlu0 %v3568_v2, %s4428_s30  ;;  %v1244_v45 = vpop.permute.xlu0 %1243  ;;  %s3891_s30 = sld [smem:[#allocation12 + $0x8c]] }
 0x1e7   : > { %v1261_v51 = vrot.slane %v3689_v33, 1  ;;  %v1205_v18 = vadd.f32 %v1200_v14, %v1188_v26  ;;  %v1289_v37 = vmul.f32 %v4432_v40, %v3617_v11  ;;  %v3705_v43 = vmul.f32 %v4433_v46, %v3617_v11 }
 0x1e8   : > { %v1189_v34 = vadd.f32 %v1185_v16, %v1172_v5  ;;  %v1236_v36 = vsel %vm464_vm8, %v1233_v44, %v1235_v27  ;;  %v1278_v49 = vrot.slane %v1272_v17, 2  ;;  %v3710_v61 = vmul.f32 %v4434_v53, %v3617_v11  ;;  %2037 = vrot.lane.b32.xlu1 %v3568_v2, %s4430_s8 }
 0x1e9   : > { %v3714_v54 = vmul.f32 %v4435_v48, %v3617_v11  ;;  %v1222_v3 = vadd.f32 %v1217_v42, %v1205_v18  ;;  %v1295_v62 = vrot.slane %v1289_v37, 3  ;;  %v1312_v20 = vrot.slane %v3705_v43, 4 }
 0x1ea   : > { %v1206_v1 = vadd.f32 %v1202_v31, %v1189_v34  ;;  %v1329_v4 = vrot.slane %v3710_v61, 5  ;;  %v1257_v21 = vmul.f32 %v4429_v50, %v1246_v6  ;;  %v1274_v13 = vmul.f32 %v4431_v7, %v1246_v6  ;;  %2035 = vrot.lane.b32.xlu0 %v3563_v19, %s4430_s8  ;;  %s3964_s8 = sld [smem:[#allocation12 + $0x93]] }
 0x1eb   : > { %v1346_v39 = vrot.slane %v3714_v54, 6  ;;  %v1239_v22 = vadd.f32 %v1234_v59, %v1222_v3  ;;  %v1291_v23 = vmul.f32 %v4432_v40, %v1246_v6  ;;  %v1308_v24 = vmul.f32 %v4433_v46, %v1246_v6 }
 0x1ec   : > { %v1223_v11 = vadd.f32 %v1219_v52, %v1206_v1  ;;  %v1264_v47 = vrot.slane %v1257_v21, 1  ;;  %v1281_v25 = vrot.slane %v1274_v13, 2  ;;  %v1325_v38 = vmul.f32 %v4434_v53, %v1246_v6  ;;  %v4440_v13 = vld [vmem:[#allocation57_spill] sm:$0xff] }
 0x1ed   : > { %v1342_v14 = vmul.f32 %v4435_v48, %v1246_v6  ;;  %v1251_v44 = vadd.f32 %v3632_v57, %v1239_v22  ;;  %v1298_v15 = vrot.slane %v1291_v23, 3  ;;  %v1315_v41 = vrot.slane %v1308_v24, 4 }
 0x1ee   : > { %v1240_v12 = vadd.f32 %v1236_v36, %v1223_v11  ;;  %v1332_v42 = vrot.slane %v1325_v38, 5  ;;  %v4436_v30 = vstv %s3204_s20  ;;  %v1363_v0 = vmul.f32 %v4438_v8, %v3571_v63  ;;  %s3820_s20 = sld [smem:[#allocation12 + $0x81]] }
 0x1ef   : > { %v1349_v58 = vrot.slane %v1342_v14, 6  ;;  %v3733_v28 = vmul.f32 %v4436_v30, %v3571_v63  ;;  %v4437_v59 = vmov %v4436_v30  ;;  %v1364_v29 = vmul.f32 %v4438_v8, %v3563_v19 }
 0x1f0   : > { %v3738_v9 = vmul.f32 %v4437_v59, %v3563_v19  ;;  %v1365_v57 = vmul.f32 %v4438_v8, %v3568_v2  ;;  %v4439_v10 = vstv %s4384_s16  ;;  %v1256_v56 = vmul.f32 %v4429_v50, %v1244_v45  ;;  %s2366_s16 = sld [smem:[#allocation12 + $0xac]] }
 0x1f1   : > { %v1250_v35 = vmul.f32 %v4439_v10, %v1244_v45  ;;  %v1273_v32 = vmul.f32 %v4431_v7, %v1244_v45  ;;  %v1290_v60 = vmul.f32 %v4432_v40, %v1244_v45  ;;  %v1307_v55 = vmul.f32 %v4433_v46, %v1244_v45 }
 0x1f2   : > { %v1369_v33 = vrot.slane %v1363_v0, 1  ;;  %v1370_v5 = vrot.slane %v1364_v29, 1  ;;  %v1372_v16 = vrot.slane %v1365_v57, 1  ;;  %v1262_v31 = vrot.slane %v1256_v56, 1 }
 0x1f3   : > { %v1252_v26 = vadd.f32 %v1250_v35, %v1240_v12  ;;  %v1279_v52 = vrot.slane %v1273_v32, 2  ;;  %v1296_v27 = vrot.slane %v1290_v60, 3  ;;  %v1313_v17 = vrot.slane %v1307_v55, 4 }
 0x1f4   : > { %v3753_v34 = vsel %vm573_vm10, %v1369_v33, %v1370_v5  ;;  %v3756_v18 = vsel %vm573_vm10, %v1370_v5, %v1372_v16  ;;  %v1324_v50 = vmul.f32 %v4434_v53, %v1244_v45  ;;  %v1341_v7 = vmul.f32 %v4435_v48, %v1244_v45  ;;  %v4442_v45 = vld [vmem:[#allocation59_spill] sm:$0xff] }
 0x1f5   : > { %v1263_v40 = vsel %vm573_vm10, %v1261_v51, %v1262_v31  ;;  %v1265_v37 = vsel %vm573_vm10, %v1262_v31, %v1264_v47  ;;  %v1280_v46 = vsel %vm591_vm11, %v1278_v49, %v1279_v52  ;;  %v1282_v43 = vsel %vm591_vm11, %v1279_v52, %v1281_v25  ;;  %v4441_v49 = vld [vmem:[#allocation58_spill] sm:$0xff] }
 0x1f6   : > { %v1268_v6 = vadd.f32 %v1263_v40, %v1251_v44  ;;  %v1269_v36 = vadd.f32 %v1265_v37, %v1252_v26  ;;  %v1297_v61 = vsel %vm609_vm12, %v1295_v62, %v1296_v27  ;;  %v1299_v54 = vsel %vm609_vm12, %v1296_v27, %v1298_v15  ;;  %v4443_v44 = vld [vmem:[#allocation60_spill] sm:$0xff] }
 0x1f7   : > { %v1314_v1 = vsel %vm627_vm13, %v1312_v20, %v1313_v17  ;;  %v1316_v53 = vsel %vm627_vm13, %v1313_v17, %v1315_v41  ;;  %v1330_v3 = vrot.slane %v1324_v50, 5  ;;  %v1347_v48 = vrot.slane %v1341_v7, 6  ;;  %v4444_v41 = vld [vmem:[#allocation61_spill] sm:$0xff] }
 0x1f8   : > { %v1285_v21 = vadd.f32 %v1280_v46, %v1268_v6  ;;  %v1286_v51 = vadd.f32 %v1282_v43, %v1269_v36  ;;  %v1382_v11 = vmul.f32 %v4440_v13, %v3568_v2  ;;  %v1399_v22 = vmul.f32 %v4441_v49, %v3568_v2 }
 0x1f9   : > { %v1331_v23 = vsel %vm475_vm9, %v1329_v4, %v1330_v3  ;;  %v1333_v62 = vsel %vm475_vm9, %v1330_v3, %v1332_v42  ;;  %v1348_v24 = vsel %vm464_vm8, %v1346_v39, %v1347_v48  ;;  %v1350_v20 = vsel %vm464_vm8, %v1347_v48, %v1349_v58 }
 0x1fa   : > { %v1302_v47 = vadd.f32 %v1297_v61, %v1285_v21  ;;  %v1303_v25 = vadd.f32 %v1299_v54, %v1286_v51  ;;  %v1389_v38 = vrot.slane %v1382_v11, 2  ;;  %v1406_v14 = vrot.slane %v1399_v22, 3 }
 0x1fb   : > { %v1416_v12 = vmul.f32 %v4442_v45, %v3568_v2  ;;  %v1433_v15 = vmul.f32 %v4443_v44, %v3568_v2  ;;  %v1450_v30 = vmul.f32 %v4444_v41, %v3568_v2  ;;  %v1381_v4 = vmul.f32 %v4440_v13, %v3563_v19 }
 0x1fc   : > { %v1319_v42 = vadd.f32 %v1314_v1, %v1302_v47  ;;  %v1320_v39 = vadd.f32 %v1316_v53, %v1303_v25  ;;  %v1398_v58 = vmul.f32 %v4441_v49, %v3563_v19  ;;  %v1415_v59 = vmul.f32 %v4442_v45, %v3563_v19 }
 0x1fd   : > { %v1423_v8 = vrot.slane %v1416_v12, 4  ;;  %v1440_v0 = vrot.slane %v1433_v15, 5  ;;  %v1457_v29 = vrot.slane %v1450_v30, 6  ;;  %v1387_v57 = vrot.slane %v1381_v4, 2 }
 0x1fe   : > { %v1336_v10 = vadd.f32 %v1331_v23, %v1319_v42  ;;  %v1337_v35 = vadd.f32 %v1333_v62, %v1320_v39  ;;  %v1404_v56 = vrot.slane %v1398_v58, 3  ;;  %v1421_v32 = vrot.slane %v1415_v59, 4 }
 0x1ff   : > { %v1390_v2 = vsel %vm591_vm11, %v1387_v57, %v1389_v38  ;;  %v1432_v60 = vmul.f32 %v4443_v44, %v3563_v19  ;;  %v1449_v55 = vmul.f32 %v4444_v41, %v3563_v19  ;;  %v1380_v33 = vmul.f32 %v4440_v13, %v3571_v63 }
 0x200   : > { %v1353_v5 = vadd.f32 %v1348_v24, %v1336_v10  ;;  %v1354_v16 = vadd.f32 %v1350_v20, %v1337_v35  ;;  %v1407_v26 = vsel %vm609_vm12, %v1404_v56, %v1406_v14  ;;  %v1424_v31 = vsel %vm627_vm13, %v1421_v32, %v1423_v8 }
 0x201   : > { %v1438_v52 = vrot.slane %v1432_v60, 5  ;;  %v1455_v27 = vrot.slane %v1449_v55, 6  ;;  %v1386_v17 = vrot.slane %v1380_v33, 2  ;;  %v1397_v50 = vmul.f32 %v4441_v49, %v3571_v63 }
 0x202   : > { %v1359_v7 = vadd.f32 %v3733_v28, %v1353_v5  ;;  %v1360_v40 = vadd.f32 %v3738_v9, %v1354_v16  ;;  %v1414_v19 = vmul.f32 %v4442_v45, %v3571_v63  ;;  %v1431_v37 = vmul.f32 %v4443_v44, %v3571_v63 }
 0x203   : > { %v1441_v46 = vsel %vm475_vm9, %v1438_v52, %v1440_v0  ;;  %v1458_v43 = vsel %vm464_vm8, %v1455_v27, %v1457_v29  ;;  %v1388_v6 = vsel %vm591_vm11, %v1386_v17, %v1387_v57  ;;  %v1403_v36 = vrot.slane %v1397_v50, 3 }
 0x204   : > { %v1376_v61 = vadd.f32 %v3753_v34, %v1359_v7  ;;  %v1377_v54 = vadd.f32 %v3756_v18, %v1360_v40  ;;  %v1420_v28 = vrot.slane %v1414_v19, 4  ;;  %v1437_v1 = vrot.slane %v1431_v37, 5 }
 0x205   : > { %v1405_v9 = vsel %vm609_vm12, %v1403_v36, %v1404_v56  ;;  %v1448_v53 = vmul.f32 %v4444_v41, %v3571_v63  ;;  %v1470_v63 = vstv %s3820_s20  ;;  %v1584_v47 = vstv %s3822_s10  ;;  %s3966_s20 = sld [smem:[#allocation12 + $0x9a]] }
 0x206   : > { %v1394_v3 = vadd.f32 %v1390_v2, %v1377_v54  ;;  %v1422_v48 = vsel %vm627_vm13, %v1420_v28, %v1421_v32  ;;  %v1439_v21 = vsel %vm475_vm9, %v1437_v1, %v1438_v52  ;;  %v1393_v51 = vadd.f32 %v1388_v6, %v1376_v61  ;;  %s3970_s10 = sld [smem:[#allocation12 + $0xa1]] }
 0x207   : > { %v1454_v13 = vrot.slane %v1448_v53, 6  ;;  %v1476_v25 = vstv %s2354_s15  ;;  %v3832_v38 = vstv %s2355_s11  ;;  %v3836_v14 = vstv %s2356_s17  ;;  %s3995_s15 = sld [smem:[#allocation12 + $0xa8]] }
 0x208   : > { %v1411_v11 = vadd.f32 %v1407_v26, %v1394_v3  ;;  %v1410_v49 = vadd.f32 %v1405_v9, %v1393_v51  ;;  %v3838_v45 = vstv %s2357_s13  ;;  %v3840_v12 = vstv %s2358_s18  ;;  %s4011_s11 = sld [smem:[#allocation12 + $0xaf]] }
 0x209   : > { %v1456_v34 = vsel %vm464_vm8, %v1454_v13, %v1455_v27  ;;  %v3842_v44 = vstv %s2359_s6  ;;  %v3844_v15 = vstv %s2361_s27  ;;  %v3846_v41 = vstv %s2362_s29  ;;  %s4018_s17 = sld [smem:[#allocation12 + $0x8d]] }
 0x20a   : > { %v1428_v22 = vadd.f32 %v1424_v31, %v1411_v11  ;;  %v1427_v18 = vadd.f32 %v1422_v48, %v1410_v49  ;;  %v3848_v30 = vstv %s2363_s9  ;;  %v3850_v4 = vstv %s2364_s7  ;;  %s4023_s13 = sld [smem:[#allocation12 + $0x94]] }
 0x20b   : > { %v3854_v42 = vstv %s2365_s12  ;;  %v3856_v39 = vstv %s2366_s16  ;;  %v1698_v58 = vstv %s3824_s26  ;;  %v1812_v59 = vstv %s3826_s19  ;;  %s4030_s18 = sld [smem:[#allocation12 + $0x9b]] }
 0x20c   : > { %v1445_v23 = vadd.f32 %v1441_v46, %v1428_v22  ;;  %v1444_v62 = vadd.f32 %v1439_v21, %v1427_v18  ;;  %v3862_v8 = vstv %s2368_s4  ;;  %v3864_v0 = vstv %s2369_s14  ;;  %s4086_s6 = sld [smem:[#allocation12 + $0xa2]] }
 0x20d   : > { %v3866_v29 = vstv %s2370_s28  ;;  %v3868_v57 = vstv %s2371_s0  ;;  %v3872_v35 = vstv %s2372_s1  ;;  %v3874_v56 = vstv %s2373_s2  ;;  %s4089_s27 = sld [smem:[#allocation12 + $0xa9]] }
 0x20e   : > { %v3816_v24 = vadd.f32 %v1458_v43, %v1445_v23  ;;  %v3818_v20 = vadd.f32 %v1456_v34, %v1444_v62  ;;  %v3876_v32 = vstv %s2375_s3  ;;  %v3878_v2 = vstv %s2376_s22  ;;  %s4096_s29 = sld [smem:[#allocation12 + $0xb0]] }
 0x20f   : > { %v3883_v16 = vstv %s3828_s5  ;;  %v3888_v40 = vstv %s3834_s21  ;;  %v3899_v53 = vstv %s3852_s23  ;;  %v3902_v3 = vstv %s3860_s24  ;;  %s4109_s9 = sld [smem:[#allocation12 + $0x86]]  ;;  %s2690_s5 = smov [#allocation13]  }
 0x210   : > { %v1926_v13 = vstv %s3870_s25  ;;  %s4445_s7 = sld [smem:[#allocation28_spill]]  ;;  %s2587_s21 = sshll.u32 %s2690_s5, 4  ;;  %s2588_s21 = int_to_ptr.vmem [resolvable:$false] %s2587_s21 }
 0x211   : > { %s4446_s12 = sld [smem:[#allocation21_spill]]  ;;  %s2589_s23 = scalar_lea.vmem %s2588_s21, 512 }
 0x212   : > { %s4448_s1 = sld [smem:[#allocation66_spill]] }
 0x216   : > { %s2293_s16 = sshll.u32 %s4445_s7, 4  ;;  %s2150_s3 = scalar_lea.sflag [#allocation7], %s4445_s7 }
 0x217   : > { %s2401_s26 = sshll.u32 %s4446_s12, 8  ;;  %s299_s4 = scalar_lea.vmem [#allocation13], %s2293_s16 }
 0x218   : > { %s2163_s14 = sshll.u32 %s299_s4, 4  ;;  %s4213_s2 = scalar_lea.hbm %s4448_s1, %s2401_s26  ;;  %s4215_s14 = int_to_ptr.vmem [resolvable:$true] %s2163_s14 }
 0x219   : > { %s2583_s22 = scalar_lea.vmem %s4215_s14, 256  ;;  %p2590_p1 = scmp.lt.s32.totalorder %s4215_s14, %s2588_s21 }
 0x21a   : > { %p2584_p3 = scmp.ne.s32.totalorder %s4215_s14, %s2583_s22  ;;  %p2591_p5 = scmp.lt.s32.totalorder %s2589_s23, %s2583_s22 }
 0x21c   : > { %p2585_p11 = pnand %p2584_p3, %p2833_p12  ;;  %p2592_p2 = por %p2591_p5, %p2590_p1 }
 0x21e   : > { %p2586_p6 = pneg %p2585_p11 }
 0x220   : > { %p2593_p4 = pnand %p2592_p2, %p2586_p6 }
 0x23a   : > { %v1466_v10 = vpop.permute.xlu1 %1465 }
 0x23b   : > { %v1478_v55 = vmul.f32 %v1476_v25, %v1466_v10  ;;  %v1495_v33 = vmul.f32 %v3832_v38, %v1466_v10  ;;  %v1512_v5 = vmul.f32 %v3836_v14, %v1466_v10  ;;  %v1472_v17 = vmul.f32 %v1470_v63, %v1466_v10 }
 0x23c   : > { %v1464_v60 = vpop.permute.xlu0 %1463  ;;  %v1529_v61 = vmul.f32 %v3838_v45, %v1466_v10  ;;  %v1546_v9 = vmul.f32 %v3840_v12, %v1466_v10 }
 0x23d   : > { %v1471_v26 = vmul.f32 %v1470_v63, %v1464_v60  ;;  %v1477_v31 = vmul.f32 %v1476_v25, %v1464_v60  ;;  %v1494_v52 = vmul.f32 %v3832_v38, %v1464_v60  ;;  %v1511_v27 = vmul.f32 %v3836_v14, %v1464_v60 }
 0x23e   : > { %v1484_v50 = vrot.slane %v1478_v55, 1  ;;  %v1501_v7 = vrot.slane %v1495_v33, 2  ;;  %v1518_v6 = vrot.slane %v1512_v5, 3  ;;  %v1528_v36 = vmul.f32 %v3838_v45, %v1464_v60  ;;  %v1578_v18 = vpop.permute.xlu1 %1577 }
 0x23f   : > { %v1473_v19 = vadd.f32 %v1471_v26, %v3818_v20  ;;  %v1483_v37 = vrot.slane %v1477_v31, 1  ;;  %v1500_v46 = vrot.slane %v1494_v52, 2  ;;  %v1517_v43 = vrot.slane %v1511_v27, 3 }
 0x240   : > { %v1545_v54 = vmul.f32 %v3840_v12, %v1464_v60  ;;  %v1468_v28 = vpop.permute.xlu0 %1467  ;;  %v1474_v48 = vadd.f32 %v1472_v17, %v3816_v24  ;;  %v1534_v11 = vrot.slane %v1528_v36, 4  ;;  %v1535_v49 = vrot.slane %v1529_v61, 4 }
 0x241   : > { %v1485_v1 = vsel %vm573_vm10, %v1483_v37, %v1484_v50  ;;  %v1502_v21 = vsel %vm591_vm11, %v1500_v46, %v1501_v7  ;;  %v1519_v51 = vsel %vm609_vm12, %v1517_v43, %v1518_v6  ;;  %v1479_v34 = vmul.f32 %v1476_v25, %v1468_v28 }
 0x242   : > { %v1490_v22 = vadd.f32 %v1485_v1, %v1473_v19  ;;  %v1551_v23 = vrot.slane %v1545_v54, 5  ;;  %v1562_v62 = vmul.f32 %v3842_v44, %v1464_v60  ;;  %v1496_v20 = vmul.f32 %v3832_v38, %v1468_v28 }
 0x243   : > { %v1513_v63 = vmul.f32 %v3836_v14, %v1468_v28  ;;  %v1552_v55 = vrot.slane %v1546_v9, 5  ;;  %v1563_v24 = vmul.f32 %v3842_v44, %v1466_v10  ;;  %v1486_v33 = vrot.slane %v1479_v34, 1 }
 0x244   : > { %v1507_v5 = vadd.f32 %v1502_v21, %v1490_v22  ;;  %v1503_v26 = vrot.slane %v1496_v20, 2  ;;  %v1530_v52 = vmul.f32 %v3838_v45, %v1468_v28  ;;  %v1547_v25 = vmul.f32 %v3840_v12, %v1468_v28 }
 0x245   : > { %v1520_v31 = vrot.slane %v1513_v63, 3  ;;  %v1487_v27 = vsel %vm573_vm10, %v1484_v50, %v1486_v33  ;;  %v1564_v60 = vmul.f32 %v3842_v44, %v1468_v28  ;;  %v3917_v19 = vstv %s3891_s30  ;;  %v1582_v44 = vpop.permute.xlu1 %1581  ;;  %v1580_v33 = vpop.permute.xlu0 %1579 }
 0x246   : > { %v1524_v17 = vadd.f32 %v1519_v51, %v1507_v5  ;;  %v1536_v38 = vsel %vm627_vm13, %v1534_v11, %v1535_v49  ;;  %v1553_v14 = vsel %vm475_vm9, %v1551_v23, %v1552_v55  ;;  %v1568_v10 = vrot.slane %v1562_v62, 6 }
 0x247   : > { %v1491_v37 = vadd.f32 %v1487_v27, %v1474_v48  ;;  %v1569_v46 = vrot.slane %v1563_v24, 6  ;;  %v1504_v43 = vsel %vm591_vm11, %v1501_v7, %v1503_v26  ;;  %v1537_v45 = vrot.slane %v1530_v52, 4 }
 0x248   : > { %v1541_v36 = vadd.f32 %v1536_v38, %v1524_v17  ;;  %v1521_v50 = vsel %vm609_vm12, %v1518_v6, %v1520_v31  ;;  %v1554_v61 = vrot.slane %v1547_v25, 5  ;;  %v1571_v54 = vrot.slane %v1564_v60, 6 }
 0x249   : > { %v1508_v12 = vadd.f32 %v1504_v43, %v1491_v37  ;;  %v1591_v1 = vmul.f32 %v3844_v15, %v1578_v18  ;;  %v1608_v9 = vmul.f32 %v3846_v41, %v1578_v18  ;;  %v1625_v21 = vmul.f32 %v3848_v30, %v1578_v18 }
 0x24a   : > { %v1558_v28 = vadd.f32 %v1553_v14, %v1541_v36  ;;  %v1585_v48 = vmul.f32 %v1584_v47, %v1578_v18  ;;  %v1570_v51 = vsel %vm464_vm8, %v1568_v10, %v1569_v46  ;;  %v3930_v11 = vmul.f32 %v3850_v4, %v1578_v18 }
 0x24b   : > { %v1525_v7 = vadd.f32 %v1521_v50, %v1508_v12  ;;  %v1538_v6 = vsel %vm627_vm13, %v1535_v49, %v1537_v45  ;;  %v3934_v22 = vmul.f32 %v3854_v42, %v1578_v18  ;;  %v1593_v23 = vmul.f32 %v3844_v15, %v1582_v44 }
 0x24c   : > { %v1575_v34 = vadd.f32 %v1570_v51, %v1558_v28  ;;  %v1555_v20 = vsel %vm475_vm9, %v1552_v55, %v1554_v61  ;;  %v1572_v63 = vsel %vm464_vm8, %v1569_v46, %v1571_v54  ;;  %v1610_v24 = vmul.f32 %v3846_v41, %v1582_v44 }
 0x24d   : > { %v1542_v62 = vadd.f32 %v1538_v6, %v1525_v7  ;;  %v1597_v5 = vrot.slane %v1591_v1, 1  ;;  %v1614_v26 = vrot.slane %v1608_v9, 2  ;;  %v1631_v31 = vrot.slane %v1625_v21, 3 }
 0x24e   : > { %v3941_v49 = vmul.f32 %v3856_v39, %v1578_v18  ;;  %v1587_v25 = vadd.f32 %v1585_v48, %v1575_v34  ;;  %v1648_v27 = vrot.slane %v3930_v11, 4  ;;  %v1627_v17 = vmul.f32 %v3848_v30, %v1582_v44  ;;  %v3962_v11 = vpop.permute.xlu0 %1691 }
 0x24f   : > { %v1559_v52 = vadd.f32 %v1555_v20, %v1542_v62  ;;  %v1665_v55 = vrot.slane %v3934_v22, 5  ;;  %v1600_v60 = vrot.slane %v1593_v23, 1  ;;  %v1617_v38 = vrot.slane %v1610_v24, 2  ;;  %v1694_v22 = vpop.permute.xlu1 %1693 }
 0x250   : > { %v1592_v14 = vmul.f32 %v3844_v15, %v1580_v33  ;;  %v1586_v37 = vmul.f32 %v1584_v47, %v1580_v33  ;;  %v1609_v46 = vmul.f32 %v3846_v41, %v1580_v33  ;;  %v1626_v18 = vmul.f32 %v3848_v30, %v1580_v33 }
 0x251   : > { %v1576_v10 = vadd.f32 %v1572_v63, %v1559_v52  ;;  %v1644_v43 = vmul.f32 %v3850_v4, %v1582_v44  ;;  %v1661_v45 = vmul.f32 %v3854_v42, %v1582_v44  ;;  %v1643_v12 = vmul.f32 %v3850_v4, %v1580_v33 }
 0x252   : > { %v1598_v36 = vrot.slane %v1592_v14, 1  ;;  %v1678_v50 = vmul.f32 %v3856_v39, %v1582_v44  ;;  %v1615_v54 = vrot.slane %v1609_v46, 2  ;;  %v1660_v15 = vmul.f32 %v3854_v42, %v1580_v33 }
 0x253   : > { %v1588_v61 = vadd.f32 %v1586_v37, %v1576_v10  ;;  %v1632_v41 = vrot.slane %v1626_v18, 3  ;;  %v1677_v30 = vmul.f32 %v3856_v39, %v1580_v33  ;;  %v1682_v1 = vrot.slane %v3941_v49, 6 }
 0x254   : > { %v1599_v28 = vsel %vm573_vm10, %v1597_v5, %v1598_v36  ;;  %v1601_v47 = vsel %vm573_vm10, %v1598_v36, %v1600_v60  ;;  %v1649_v48 = vrot.slane %v1643_v12, 4  ;;  %v1634_v51 = vrot.slane %v1627_v17, 3 }
 0x255   : > { %v1604_v9 = vadd.f32 %v1599_v28, %v1587_v25  ;;  %v1605_v21 = vadd.f32 %v1601_v47, %v1588_v61  ;;  %v1651_v4 = vrot.slane %v1644_v43, 4  ;;  %v1616_v44 = vsel %vm591_vm11, %v1614_v26, %v1615_v54 }
 0x256   : > { %v1618_v7 = vsel %vm591_vm11, %v1615_v54, %v1617_v38  ;;  %v1668_v42 = vrot.slane %v1661_v45, 5  ;;  %v1666_v39 = vrot.slane %v1660_v15, 5  ;;  %v1685_v23 = vrot.slane %v1678_v50, 6 }
 0x257   : > { %v1621_v6 = vadd.f32 %v1616_v44, %v1604_v9  ;;  %v1622_v34 = vadd.f32 %v1618_v7, %v1605_v21  ;;  %v1633_v62 = vsel %vm609_vm12, %v1631_v31, %v1632_v41  ;;  %v1635_v20 = vsel %vm609_vm12, %v1632_v41, %v1634_v51  ;;  %v1696_v41 = vpop.permute.xlu0 %1695 }
 0x258   : > { %v1683_v63 = vrot.slane %v1677_v30, 6  ;;  %v1650_v5 = vsel %vm627_vm13, %v1648_v27, %v1649_v48  ;;  %v1705_v26 = vmul.f32 %v3862_v8, %v3962_v11  ;;  %v1652_v49 = vsel %vm627_vm13, %v1649_v48, %v1651_v4 }
 0x259   : > { %v1638_v24 = vadd.f32 %v1633_v62, %v1621_v6  ;;  %v1639_v33 = vadd.f32 %v1635_v20, %v1622_v34  ;;  %v1667_v52 = vsel %vm475_vm9, %v1665_v55, %v1666_v39  ;;  %v1699_v25 = vmul.f32 %v1698_v58, %v3962_v11 }
 0x25a   : > { %v1706_v31 = vmul.f32 %v3862_v8, %v1694_v22  ;;  %v1722_v38 = vmul.f32 %v3864_v0, %v3962_v11  ;;  %v1723_v14 = vmul.f32 %v3864_v0, %v1694_v22  ;;  %v1669_v27 = vsel %vm475_vm9, %v1666_v39, %v1668_v42 }
 0x25b   : > { %v1655_v17 = vadd.f32 %v1650_v5, %v1638_v24  ;;  %v1656_v60 = vadd.f32 %v1652_v49, %v1639_v33  ;;  %v1686_v10 = vsel %vm464_vm8, %v1683_v63, %v1685_v23  ;;  %v1739_v37 = vmul.f32 %v3866_v29, %v3962_v11  ;;  %v4025_v5 = vpop.permute.xlu1 %1805 }
 0x25c   : > { %v3989_v55 = vmul.f32 %v3866_v29, %v1694_v22  ;;  %v1711_v43 = vrot.slane %v1705_v26, 1  ;;  %v1728_v45 = vrot.slane %v1722_v38, 2  ;;  %v1684_v36 = vsel %vm464_vm8, %v1682_v1, %v1683_v63 }
 0x25d   : > { %v1673_v46 = vadd.f32 %v1669_v27, %v1656_v60  ;;  %v1672_v18 = vadd.f32 %v1667_v52, %v1655_v17  ;;  %v1712_v12 = vrot.slane %v1706_v31, 1  ;;  %v1745_v50 = vrot.slane %v1739_v37, 3 }
 0x25e   : > { %v1756_v61 = vmul.f32 %v3868_v57, %v3962_v11  ;;  %v1729_v28 = vrot.slane %v1723_v14, 2  ;;  %v1757_v47 = vmul.f32 %v3868_v57, %v1694_v22  ;;  %v1746_v30 = vrot.slane %v3989_v55, 3 }
 0x25f   : > { %v1690_v54 = vadd.f32 %v1686_v10, %v1673_v46  ;;  %v1689_v15 = vadd.f32 %v1684_v36, %v1672_v18  ;;  %v3999_v9 = vstv %s3964_s8  ;;  %v4002_v21 = vstv %s3966_s20 }
 0x260   : > { %v4005_v1 = vstv %s3970_s10  ;;  %v1700_v48 = vmul.f32 %v1698_v58, %v1694_v22  ;;  %v1713_v4 = vsel %vm573_vm10, %v1711_v43, %v1712_v12  ;;  %v1730_v44 = vsel %vm591_vm11, %v1728_v45, %v1729_v28 }
 0x261   : > { %v1701_v51 = vadd.f32 %v1699_v25, %v1689_v15  ;;  %v1747_v7 = vsel %vm609_vm12, %v1745_v50, %v1746_v30  ;;  %v1762_v42 = vrot.slane %v1756_v61, 4  ;;  %v1773_v6 = vmul.f32 %v3872_v35, %v3962_v11  ;;  %v1810_v61 = vpop.permute.xlu1 %1809 }
 0x262   : > { %v1707_v34 = vmul.f32 %v3862_v8, %v1696_v41  ;;  %v1702_v39 = vadd.f32 %v1700_v48, %v1690_v54  ;;  %v1763_v23 = vrot.slane %v1757_v47, 4  ;;  %v1724_v58 = vmul.f32 %v3864_v0, %v1696_v41 }
 0x263   : > { %v1718_v62 = vadd.f32 %v1713_v4, %v1701_v51  ;;  %v1774_v20 = vmul.f32 %v3872_v35, %v1694_v22  ;;  %v1741_v24 = vmul.f32 %v3866_v29, %v1696_v41  ;;  %v1758_v33 = vmul.f32 %v3868_v57, %v1696_v41 }
 0x264   : > { %v1714_v63 = vrot.slane %v1707_v34, 1  ;;  %v1790_v8 = vmul.f32 %v3874_v56, %v3962_v11  ;;  %v1791_v26 = vmul.f32 %v3874_v56, %v1694_v22  ;;  %v1731_v0 = vrot.slane %v1724_v58, 2 }
 0x265   : > { %v1735_v49 = vadd.f32 %v1730_v44, %v1718_v62  ;;  %v1779_v52 = vrot.slane %v1773_v6, 5  ;;  %v1748_v25 = vrot.slane %v1741_v24, 3  ;;  %v1775_v57 = vmul.f32 %v3872_v35, %v1696_v41  ;;  %v1808_v6 = vpop.permute.xlu0 %1807 }
 0x266   : > { %v1715_v29 = vsel %vm573_vm10, %v1712_v12, %v1714_v63  ;;  %v1792_v60 = vmul.f32 %v3874_v56, %v1696_v41  ;;  %v4036_v38 = vstv %s3995_s15  ;;  %v1764_v11 = vsel %vm627_vm13, %v1762_v42, %v1763_v23 }
 0x267   : > { %v1719_v31 = vadd.f32 %v1715_v29, %v1702_v39  ;;  %v1752_v17 = vadd.f32 %v1747_v7, %v1735_v49  ;;  %v1780_v22 = vrot.slane %v1774_v20, 5  ;;  %v1732_v14 = vsel %vm591_vm11, %v1729_v28, %v1731_v0 }
 0x268   : > { %v1765_v27 = vrot.slane %v1758_v33, 4  ;;  %v1796_v10 = vrot.slane %v1790_v8, 6  ;;  %v4041_v46 = vstv %s4011_s11  ;;  %v1797_v18 = vrot.slane %v1791_v26, 6 }
 0x269   : > { %v1736_v37 = vadd.f32 %v1732_v14, %v1719_v31  ;;  %v1769_v55 = vadd.f32 %v1764_v11, %v1752_v17  ;;  %v1781_v35 = vsel %vm475_vm9, %v1779_v52, %v1780_v22  ;;  %v1749_v56 = vsel %vm609_vm12, %v1746_v30, %v1748_v25 }
 0x26a   : > { %v1782_v43 = vrot.slane %v1775_v57, 5  ;;  %v1799_v12 = vrot.slane %v1792_v60, 6  ;;  %v1819_v50 = vmul.f32 %v3876_v32, %v4025_v5  ;;  %v1766_v54 = vsel %vm627_vm13, %v1763_v23, %v1765_v27 }
 0x26b   : > { %v1753_v45 = vadd.f32 %v1749_v56, %v1736_v37  ;;  %v1786_v36 = vadd.f32 %v1781_v35, %v1769_v55  ;;  %v1836_v15 = vmul.f32 %v3878_v2, %v4025_v5  ;;  %v1853_v28 = vmul.f32 %v3883_v16, %v4025_v5 }
 0x26c   : > { %v4053_v47 = vstv %s4018_s17  ;;  %v1798_v41 = vsel %vm464_vm8, %v1796_v10, %v1797_v18  ;;  %v4057_v48 = vstv %s4023_s13  ;;  %v4060_v51 = vstv %s4030_s18 }
 0x26d   : > { %v1770_v30 = vadd.f32 %v1766_v54, %v1753_v45  ;;  %v1813_v4 = vmul.f32 %v1812_v59, %v4025_v5  ;;  %v1783_v44 = vsel %vm475_vm9, %v1780_v22, %v1782_v43  ;;  %v1803_v7 = vadd.f32 %v1798_v41, %v1786_v36  ;;  %v4094_v43 = vpop.permute.xlu0 %1919  ;;  %v4101_v41 = vpop.permute.xlu1 %1921 }
 0x26e   : > { %v1821_v42 = vmul.f32 %v3876_v32, %v1810_v61  ;;  %v1800_v39 = vsel %vm464_vm8, %v1797_v18, %v1799_v12  ;;  %v1825_v23 = vrot.slane %v1819_v50, 1  ;;  %v1870_v62 = vmul.f32 %v3888_v40, %v4025_v5 }
 0x26f   : > { %v1787_v34 = vadd.f32 %v1783_v44, %v1770_v30  ;;  %v1842_v58 = vrot.slane %v1836_v15, 2  ;;  %v1859_v20 = vrot.slane %v1853_v28, 3  ;;  %v1887_v63 = vmul.f32 %v3899_v53, %v4025_v5 }
 0x270   : > { %v1838_v24 = vmul.f32 %v3878_v2, %v1810_v61  ;;  %v1814_v8 = vmul.f32 %v1812_v59, %v1808_v6  ;;  %v1820_v26 = vmul.f32 %v3876_v32, %v1808_v6  ;;  %v1837_v0 = vmul.f32 %v3878_v2, %v1808_v6 }
 0x271   : > { %v1804_v33 = vadd.f32 %v1800_v39, %v1787_v34  ;;  %v1815_v49 = vadd.f32 %v1813_v4, %v1803_v7  ;;  %v1828_v52 = vrot.slane %v1821_v42, 1  ;;  %v1855_v29 = vmul.f32 %v3883_v16, %v1810_v61 }
 0x272   : > { %v1854_v25 = vmul.f32 %v3883_v16, %v1808_v6  ;;  %v1826_v31 = vrot.slane %v1820_v26, 1  ;;  %v1843_v17 = vrot.slane %v1837_v0, 2  ;;  %v1871_v60 = vmul.f32 %v3888_v40, %v1808_v6 }
 0x273   : > { %v1816_v57 = vadd.f32 %v1814_v8, %v1804_v33  ;;  %v1876_v11 = vrot.slane %v1870_v62, 4  ;;  %v1904_v22 = vmul.f32 %v3902_v3, %v4025_v5  ;;  %v1845_v59 = vrot.slane %v1838_v24, 2 }
 0x274   : > { %v1872_v32 = vmul.f32 %v3888_v40, %v1810_v61  ;;  %v1827_v2 = vsel %vm573_vm10, %v1825_v23, %v1826_v31  ;;  %v1829_v14 = vsel %vm573_vm10, %v1826_v31, %v1828_v52  ;;  %v1860_v27 = vrot.slane %v1854_v25, 3 }
 0x275   : > { %v1888_v10 = vmul.f32 %v3899_v53, %v1808_v6  ;;  %v1862_v16 = vrot.slane %v1855_v29, 3  ;;  %v1889_v37 = vmul.f32 %v3899_v53, %v1810_v61  ;;  %v1832_v55 = vadd.f32 %v1827_v2, %v1815_v49  ;;  %v1924_v29 = vpop.permute.xlu0 %1923 }
 0x276   : > { %v1833_v35 = vadd.f32 %v1829_v14, %v1816_v57  ;;  %v1844_v5 = vsel %vm591_vm11, %v1842_v58, %v1843_v17  ;;  %v1846_v40 = vsel %vm591_vm11, %v1843_v17, %v1845_v59  ;;  %v1877_v18 = vrot.slane %v1871_v60, 4 }
 0x277   : > { %v1905_v56 = vmul.f32 %v3902_v3, %v1808_v6  ;;  %v1893_v45 = vrot.slane %v1887_v63, 5  ;;  %v1906_v36 = vmul.f32 %v3902_v3, %v1810_v61  ;;  %v1849_v12 = vadd.f32 %v1844_v5, %v1832_v55 }
 0x278   : > { %v1850_v53 = vadd.f32 %v1846_v40, %v1833_v35  ;;  %v1879_v50 = vrot.slane %v1872_v32, 4  ;;  %v1861_v54 = vsel %vm609_vm12, %v1859_v20, %v1860_v27  ;;  %v1863_v15 = vsel %vm609_vm12, %v1860_v27, %v1862_v16  ;;  %v4136_v27 = vpop.permute.xlu1 %2033 }
 0x279   : > { %v1894_v28 = vrot.slane %v1888_v10, 5  ;;  %v1910_v30 = vrot.slane %v1904_v22, 6  ;;  %v1866_v4 = vadd.f32 %v1861_v54, %v1849_v12  ;;  %v1933_v7 = vmul.f32 %v3917_v19, %v4094_v43 }
 0x27a   : > { %v1867_v44 = vadd.f32 %v1863_v15, %v1850_v53  ;;  %v1896_v42 = vrot.slane %v1889_v37, 5  ;;  %v1878_v3 = vsel %vm627_vm13, %v1876_v11, %v1877_v18  ;;  %v1880_v61 = vsel %vm627_vm13, %v1877_v18, %v1879_v50 }
 0x27b   : > { %v1911_v6 = vrot.slane %v1905_v56, 6  ;;  %v1913_v34 = vrot.slane %v1906_v36, 6  ;;  %v1883_v39 = vadd.f32 %v1878_v3, %v1866_v4  ;;  %v1934_v62 = vmul.f32 %v3917_v19, %v4101_v41 }
 0x27c   : > { %v1884_v23 = vadd.f32 %v1880_v61, %v1867_v44  ;;  %v1895_v58 = vsel %vm475_vm9, %v1893_v45, %v1894_v28  ;;  %v1897_v20 = vsel %vm475_vm9, %v1894_v28, %v1896_v42  ;;  %v1950_v63 = vmul.f32 %v3999_v9, %v4094_v43  ;;  %v2038_v3 = vpop.permute.xlu1 %2037 }
 0x27d   : > { %v1951_v24 = vmul.f32 %v3999_v9, %v4101_v41  ;;  %v1900_v8 = vadd.f32 %v1895_v58, %v1883_v39  ;;  %v1939_v26 = vrot.slane %v1933_v7, 1  ;;  %v4118_v0 = vstv %s4086_s6 }
 0x27e   : > { %v1901_v33 = vadd.f32 %v1897_v20, %v1884_v23  ;;  %v1914_v49 = vsel %vm464_vm8, %v1911_v6, %v1913_v34  ;;  %v1912_v52 = vsel %vm464_vm8, %v1910_v30, %v1911_v6  ;;  %v4123_v25 = vstv %s4089_s27 }
 0x27f   : > { %v4126_v57 = vstv %s4096_s29  ;;  %v1917_v17 = vadd.f32 %v1912_v52, %v1900_v8  ;;  %v1927_v60 = vmul.f32 %v1926_v13, %v4094_v43  ;;  %v1940_v11 = vrot.slane %v1934_v62, 1 }
 0x280   : > { %v1918_v31 = vadd.f32 %v1914_v49, %v1901_v33  ;;  %v1928_v22 = vmul.f32 %v1926_v13, %v4101_v41  ;;  %v1956_v59 = vrot.slane %v1950_v63, 2  ;;  %v1957_v32 = vrot.slane %v1951_v24, 2 }
 0x281   : > { %v1967_v2 = vmul.f32 %v4002_v21, %v4094_v43  ;;  %v1929_v14 = vadd.f32 %v1927_v60, %v1917_v17  ;;  %v1941_v10 = vsel %vm573_vm10, %v1939_v26, %v1940_v11  ;;  %v1968_v16 = vmul.f32 %v4002_v21, %v4101_v41 }
 0x282   : > { %v1935_v37 = vmul.f32 %v3917_v19, %v1924_v29  ;;  %v1930_v55 = vadd.f32 %v1928_v22, %v1918_v31  ;;  %v1984_v13 = vmul.f32 %v4005_v1, %v4094_v43  ;;  %v1952_v35 = vmul.f32 %v3999_v9, %v1924_v29  ;;  %v2036_v31 = vpop.permute.xlu0 %2035 }
 0x283   : > { %v1969_v5 = vmul.f32 %v4002_v21, %v1924_v29  ;;  %v1946_v18 = vadd.f32 %v1941_v10, %v1929_v14  ;;  %v1986_v56 = vmul.f32 %v4005_v1, %v1924_v29  ;;  %v2040_v45 = vstv %s4109_s9 }
 0x284   : > { %v1942_v40 = vrot.slane %v1935_v37, 1  ;;  %v1958_v36 = vsel %vm591_vm11, %v1956_v59, %v1957_v32  ;;  %v1973_v12 = vrot.slane %v1967_v2, 3  ;;  %v1985_v53 = vmul.f32 %v4005_v1, %v4101_v41 }
 0x285   : > { %v1959_v19 = vrot.slane %v1952_v35, 2  ;;  %v1974_v50 = vrot.slane %v1968_v16, 3  ;;  %v1976_v15 = vrot.slane %v1969_v5, 3  ;;  %v2003_v9 = vmul.f32 %v4036_v38, %v1924_v29 }
 0x286   : > { %v1943_v54 = vsel %vm573_vm10, %v1940_v11, %v1942_v40  ;;  %v1990_v28 = vrot.slane %v1984_v13, 4  ;;  %v2001_v21 = vmul.f32 %v4036_v38, %v4094_v43  ;;  %v2002_v30 = vmul.f32 %v4036_v38, %v4101_v41 }
 0x287   : > { %v1947_v4 = vadd.f32 %v1943_v54, %v1930_v55  ;;  %v1960_v44 = vsel %vm591_vm11, %v1957_v32, %v1959_v19  ;;  %v1963_v7 = vadd.f32 %v1958_v36, %v1946_v18  ;;  %v1993_v42 = vrot.slane %v1986_v56, 4 }
 0x288   : > { %v2020_v1 = vmul.f32 %v4041_v46, %v1924_v29  ;;  %v1991_v61 = vrot.slane %v1985_v53, 4  ;;  %v2018_v6 = vmul.f32 %v4041_v46, %v4094_v43  ;;  %v2019_v34 = vmul.f32 %v4041_v46, %v4101_v41 }
 0x289   : > { %v1964_v39 = vadd.f32 %v1960_v44, %v1947_v4  ;;  %v1975_v23 = vsel %vm609_vm12, %v1973_v12, %v1974_v50  ;;  %v1977_v38 = vsel %vm609_vm12, %v1974_v50, %v1976_v15  ;;  %v2010_v62 = vrot.slane %v2003_v9, 5 }
 0x28a   : > { %v2047_v58 = vmul.f32 %v4053_v47, %v4136_v27  ;;  %v2007_v20 = vrot.slane %v2001_v21, 5  ;;  %v2049_v24 = vmul.f32 %v4053_v47, %v2038_v3  ;;  %v2066_v33 = vmul.f32 %v4057_v48, %v2038_v3 }
 0x28b   : > { %v1981_v63 = vadd.f32 %v1977_v38, %v1964_v39  ;;  %v2008_v8 = vrot.slane %v2002_v30, 5  ;;  %v1980_v43 = vadd.f32 %v1975_v23, %v1963_v7  ;;  %v1994_v26 = vsel %vm627_vm13, %v1991_v61, %v1993_v42 }
 0x28c   : > { %v2027_v46 = vrot.slane %v2020_v1, 6  ;;  %v1992_v41 = vsel %vm627_vm13, %v1990_v28, %v1991_v61  ;;  %v2024_v49 = vrot.slane %v2018_v6, 6  ;;  %v2025_v52 = vrot.slane %v2019_v34, 6 }
 0x28d   : > { %v1998_v29 = vadd.f32 %v1994_v26, %v1981_v63  ;;  %v2011_v17 = vsel %vm475_vm9, %v2008_v8, %v2010_v62  ;;  %v2053_v60 = vrot.slane %v2047_v58, 1  ;;  %v2064_v11 = vmul.f32 %v4057_v48, %v4136_v27 }
 0x28e   : > { %v2081_v22 = vmul.f32 %v4060_v51, %v4136_v27  ;;  %v2056_v59 = vrot.slane %v2049_v24, 1  ;;  %v2073_v32 = vrot.slane %v2066_v33, 2  ;;  %v2083_v2 = vmul.f32 %v4060_v51, %v2038_v3 }
 0x28f   : > { %v2015_v14 = vadd.f32 %v2011_v17, %v1998_v29  ;;  %v2009_v10 = vsel %vm475_vm9, %v2007_v20, %v2008_v8  ;;  %v2028_v16 = vsel %vm464_vm8, %v2025_v52, %v2027_v46  ;;  %v1997_v37 = vadd.f32 %v1992_v41, %v1980_v43 }
 0x290   : > { %v2048_v55 = vmul.f32 %v4053_v47, %v2036_v31  ;;  %v2042_v35 = vmul.f32 %v2040_v45, %v2036_v31  ;;  %v2065_v5 = vmul.f32 %v4057_v48, %v2036_v31  ;;  %v2082_v40 = vmul.f32 %v4060_v51, %v2036_v31 }
 0x291   : > { %v2032_v13 = vadd.f32 %v2028_v16, %v2015_v14  ;;  %v2100_v18 = vmul.f32 %v4118_v0, %v2038_v3  ;;  %v2014_v56 = vadd.f32 %v2009_v10, %v1997_v37  ;;  %v2099_v12 = vmul.f32 %v4118_v0, %v2036_v31 }
 0x292   : > { %v2054_v36 = vrot.slane %v2048_v55, 1  ;;  %v2026_v53 = vsel %vm464_vm8, %v2024_v49, %v2025_v52  ;;  %v2041_v19 = vmul.f32 %v2040_v45, %v4136_v27  ;;  %v2071_v54 = vrot.slane %v2065_v5, 2 }
 0x293   : > { %v2044_v50 = vadd.f32 %v2042_v35, %v2032_v13  ;;  %v2031_v15 = vadd.f32 %v2026_v53, %v2014_v56  ;;  %v2088_v9 = vrot.slane %v2082_v40, 3  ;;  %v2116_v48 = vmul.f32 %v4123_v25, %v2036_v31 }
 0x294   : > { %v2057_v47 = vsel %vm573_vm10, %v2054_v36, %v2056_v59  ;;  %v2098_v51 = vmul.f32 %v4118_v0, %v4136_v27  ;;  %v2090_v28 = vrot.slane %v2083_v2, 3  ;;  %v2117_v21 = vmul.f32 %v4123_v25, %v2038_v3 }
 0x295   : > { %v2061_v30 = vadd.f32 %v2057_v47, %v2044_v50  ;;  %v2043_v4 = vadd.f32 %v2041_v19, %v2031_v15  ;;  %v2074_v44 = vsel %vm591_vm11, %v2071_v54, %v2073_v32  ;;  %v2105_v7 = vrot.slane %v2099_v12, 4 }
 0x296   : > { %v2133_v45 = vmul.f32 %v4126_v57, %v2036_v31  ;;  %v2070_v42 = vrot.slane %v2064_v11, 2  ;;  %v2134_v1 = vmul.f32 %v4126_v57, %v2038_v3  ;;  %v2055_v61 = vsel %vm573_vm10, %v2053_v60, %v2054_v36 }
 0x297   : > { %v2078_v6 = vadd.f32 %v2074_v44, %v2061_v30  ;;  %v2107_v34 = vrot.slane %v2100_v18, 4  ;;  %v2060_v39 = vadd.f32 %v2055_v61, %v2043_v4  ;;  %v2091_v0 = vsel %vm609_vm12, %v2088_v9, %v2090_v28 }
 0x298   : > { %v2122_v23 = vrot.slane %v2116_v48, 5  ;;  %v2087_v38 = vrot.slane %v2081_v22, 3  ;;  %v2115_v62 = vmul.f32 %v4123_v25, %v4136_v27  ;;  %v2072_v58 = vsel %vm591_vm11, %v2070_v42, %v2071_v54 }
 0x299   : > { %v2095_v20 = vadd.f32 %v2091_v0, %v2078_v6  ;;  %v2124_v63 = vrot.slane %v2117_v21, 5  ;;  %v2077_v24 = vadd.f32 %v2072_v58, %v2060_v39  ;;  %v2108_v3 = vsel %vm627_vm13, %v2105_v7, %v2107_v34 }
 0x29a   : > { %v2139_v33 = vrot.slane %v2133_v45, 6  ;;  %v2104_v8 = vrot.slane %v2098_v51, 4  ;;  %v2132_v43 = vmul.f32 %v4126_v57, %v4136_v27  ;;  %v2089_v26 = vsel %vm609_vm12, %v2087_v38, %v2088_v9 }
 0x29b   : > { %v2112_v46 = vadd.f32 %v2108_v3, %v2095_v20  ;;  %v2141_v41 = vrot.slane %v2134_v1, 6  ;;  %v2094_v49 = vadd.f32 %v2089_v26, %v2077_v24  ;;  %v2125_v25 = vsel %vm475_vm9, %v2122_v23, %v2124_v63 }
 0x29c   : > { %v2121_v52 = vrot.slane %v2115_v62, 5  ;;  %v2106_v29 = vsel %vm627_vm13, %v2104_v8, %v2105_v7  ;;  %v2138_v57 = vrot.slane %v2132_v43, 6 }
 0x29d   : > { %v2129_v31 = vadd.f32 %v2125_v25, %v2112_v46  ;;  %v2111_v17 = vadd.f32 %v2106_v29, %v2094_v49  ;;  %v2142_v60 = vsel %vm464_vm8, %v2139_v33, %v2141_v41 }
 0x29e   : > { %v2123_v27 = vsel %vm475_vm9, %v2121_v52, %v2122_v23  ;;  %v2140_v59 = vsel %vm464_vm8, %v2138_v57, %v2139_v33 }
 0x29f   : > { %v2146_v11 = vadd.f32 %v2142_v60, %v2129_v31  ;;  %v2128_v22 = vadd.f32 %v2123_v27, %v2111_v17 }
 0x2a1   : > { %2148 = vst [vmem:[%s299_s4 + $0x8] sm:$0xff] %v2146_v11  ;;  %v2145_v32 = vadd.f32 %v2140_v59, %v2128_v22 }
 0x2a3   : > { %2147 = vst [vmem:[%s299_s4] sm:$0xff] %v2145_v32 }
 0x2a4   : > { %2596 = shalt.err (!%p2593_p4)
}
 0x2a5   : > { %s2597_s24 = scalar_lea.hbm %s4213_s2, 256  ;;  %s2601_s8 = scalar_lea.hbm %s4448_s1, 512 }
 0x2a6   : > { %p2598_p8 = scmp.ne.s32.totalorder %s4213_s2, %s2597_s24  ;;  %p2602_p10 = scmp.lt.s32.totalorder %s4213_s2, %s4448_s1 }
 0x2a7   : > { %p2603_p0 = scmp.lt.s32.totalorder %s2601_s8, %s2597_s24 }
 0x2a8   : > { %p2599_p13 = pnand %p2598_p8, %p2833_p12 }
 0x2a9   : > { %p2604_p9 = por %p2603_p0, %p2602_p10 }
 0x2aa   : > { %p2600_p7 = pneg %p2599_p13 }
 0x2ac   : > { %p2605_p3 = pnand %p2604_p9, %p2600_p7 }
 0x2ae   : > { %2608 = shalt.err (!%p2605_p3)
}
 0x2af   : > { %s2691_s15 = smov 128   ;;  %s2692_s11 = smov 8  }
 0x2b0   : > { %2416 = dma.vmem_to_hbm [thread:$0]  (%p2833_p12), %s4215_s14, 256, %s4213_s2, %s2150_s3, %s2691_s15, %s2691_s15, %s2692_s11  }
 0x2b1 PF: > { %s4449_s17 = sld [smem:[#allocation18_spill]] }
 0x2b2   : > { %s4450_s13 = sld [smem:[#allocation24_spill]] }
 0x2b3   : > { %s4451_s18 = sld [smem:[#allocation23_spill]] }
 0x2b7   : > { %s2178_s6 = sand.u32 1, %s4449_s17  }
 0x2b8   : > { %p4452_p11 = scmp.ne.s32.totalorder %s4450_s13, 0  ;;  %s2179_s27 = scalar_lea.sflag [#allocation7], %s2178_s6 }
 0x2b9   : > { %p4453_p6 = scmp.ge.s32.totalorder %s4451_s18, 2 }
 0x2bb   : > { %p2433_p1 = pnand %p4453_p6, %p4452_p11 }
 0x2bd   : > { %p2434_p5 = pneg %p2433_p1 }
 0x2bf   : > { %2646 = dma.done.wait (%p2434_p5), %s2179_s27, 256  }
 0x2c0   : > { %2648 = vsyncadd (%p2434_p5), %s2179_s27, 4294967040  ;;  %s24_s25 = sadd.s32 1, %s4451_s18   ;;  %s4454_s20 = sld [smem:[#allocation19_spill]] }
 0x2c1   : > { %p21_p2 = scmp.ge.s32.totalorder %s24_s25, 4   ;;  %s4455_s21 = sld [smem:[#allocation20_spill]] }
 0x2c2   : > { %s4456_s22 = sld [smem:[#allocation27_spill]] }
 0x2c3   : > { %s4457_s23 = sld [smem:[#allocation22_spill]]  ;;  %23 = sbr.rel (!%p21_p2) target bundleno = 15 (0xf), region = 110 }
 0x2c4   : > { %s4458_s24 = sld [smem:[#allocation26_spill]] }
 0x2c8   :  { %2184 = vsyncpa [#allocation6], 1 }
 0x2c9   :  { %2186 = vsyncpa [#allocation6 + $0x1], 1 }
 0x2ca   :  { %2187 = vsyncpa [#allocation7], 1 }
 0x2cb   :  { %2189 = vsyncpa [#allocation7 + $0x1], 1 }
 0x2cc   :  { %2190 = vsyncpa [#allocation8], 1 }
 0x2cd   :  { %2192 = vsyncpa [#allocation8 + $0x1], 1 }
 0x2ce   :  { %2193 = vsyncpa [#allocation11], 1 }

</bundles_post_ra>
